<compile_context>
chip_gen: v5e
topology: v5e:2x2
jax: 0.10.0
libtpu: 0.0.40
codegen_flags: <defaults>
</compile_context>

<pallas_src>
import functools
import math

import jax
import jax.numpy as jnp
from jax.experimental import pallas as pl
from jax.experimental.pallas import tpu as pltpu

_COMPUTE_DTYPE = jnp.bfloat16   # MXU input dtype; accumulation stays f32
_HALO = 128                     # lane halo block (>= K - 1 for every layer)


# ----------------------------------------------------------------------------
# Pallas kernel: fused Conv1d (im2col matmul) + folded-BN affine + activation
# ----------------------------------------------------------------------------
def _fused_conv_kernel(*refs, n_in, K, Lt, act):
    # refs layout:
    #   [x_curr_0, x_halo_0, ..., x_curr_{n-1}, x_halo_{n-1},
    #    w_0, ..., w_{n-1}, affine, o_ref]
    # x_curr_i : (1, C_in_i, Lt)    bf16 lane-aligned tile
    # x_halo_i : (1, C_in_i, 128)   bf16 next 128 lanes (halo)
    # w_i      : (C_out, K*C_in_i)  bf16, column order = (k, c_in)
    # affine   : (C_out, 2)         f32  [scale, shift] (bias + BN folded)
    # o_ref    : (1, C_out, Lt)
    x_refs = refs[:2 * n_in]
    w_refs = refs[2 * n_in:3 * n_in]
    affine_ref = refs[3 * n_in]
    o_ref = refs[3 * n_in + 1]
    c_out = o_ref.shape[1]

    acc = jnp.zeros((c_out, Lt), jnp.float32)
    for i in range(n_in):
        curr = x_refs[2 * i][0]          # (C_in_i, Lt)
        halo = x_refs[2 * i + 1][0]      # (C_in_i, 128)
        window = jnp.concatenate([curr, halo], axis=-1)      # (C_in_i, Lt+128)
        # im2col: K shifted views stacked along the contraction axis, then one
        # deep MXU matmul instead of K skinny per-tap matmuls.
        patch = jnp.concatenate([window[:, k:k + Lt] for k in range(K)], axis=0)
        acc = acc + jnp.dot(w_refs[i][...], patch,
                            preferred_element_type=jnp.float32)

    aff = affine_ref[...]                # (C_out, 2) f32
    y = acc * aff[:, 0:1] + aff[:, 1:2]  # folded conv-bias + eval BatchNorm
    if act == "lrelu":
        y = jnp.where(y >= 0, y, 0.1 * y)       # LeakyReLU(negative_slope=0.1)
    elif act == "tanh":
        y = jnp.tanh(y)
    o_ref[0] = y.astype(o_ref.dtype)


def _pick_lane_tile(l_out, c_in_total, c_out, K):
    """Largest lane tile (multiple of 128) keeping the per-block working set
    (im2col patch + accumulator + I/O buffers) small enough to double-buffer
    well inside v7x's 64 MiB VMEM; clamped to the 128-aligned output length."""
    lt = 2048
    while lt > 128 and (K * c_in_total * lt * 2 + c_out * lt * 8) > (6 << 20):
        lt //= 2
    lt = min(lt, 128 * ((l_out + 127) // 128))
    return max(lt, 128)


def fused_conv_block(xs, ws, scale, shift, *, K, padding, act, out_dtype):
    """Fused Conv1d(+folded BN)+activation over logically channel-concatenated
    inputs.  xs: list of (B, C_i, L);  ws: list of (C_out, C_i, K)."""
    B, _, L = xs[0].shape
    c_out = ws[0].shape[0]
    c_ins = [x.shape[1] for x in xs]
    l_out = L + 2 * padding - K + 1
    assert K - 1 <= _HALO

    lt = _pick_lane_tile(l_out, sum(c_ins), c_out, K)
    n_t = -(-l_out // lt)                 # number of lane tiles (ceil)
    l_out_pad = n_t * lt                  # lane-dense padded output length
    l_in_pad = (n_t + 1) * lt             # +1 tile so the halo block always exists
    halo_blocks = lt // _HALO

    args, in_specs = [], []
    for x, c_in in zip(xs, c_ins):
        x_pad = jnp.pad(
            x, ((0, 0), (0, 0), (padding, l_in_pad - padding - L))
        ).astype(_COMPUTE_DTYPE)
        args += [x_pad, x_pad]            # same buffer: lane tile + 128-lane halo
        in_specs += [
            pl.BlockSpec((1, c_in, lt), lambda b, t: (b, 0, t)),
            pl.BlockSpec((1, c_in, _HALO),
                         lambda b, t, n=halo_blocks: (b, 0, (t + 1) * n)),
        ]
    for w, c_in in zip(ws, c_ins):
        # (C_out, C_in, K) -> (C_out, K*C_in) matching the im2col row order.
        w2 = jnp.transpose(w, (0, 2, 1)).reshape(c_out, K * c_in)
        args.append(w2.astype(_COMPUTE_DTYPE))
        in_specs.append(pl.BlockSpec((c_out, K * c_in), lambda b, t: (0, 0)))

    affine = jnp.stack([scale, shift], axis=1).astype(jnp.float32)  # (C_out, 2)
    args.append(affine)
    in_specs.append(pl.BlockSpec((c_out, 2), lambda b, t: (0, 0)))

    kernel = functools.partial(_fused_conv_kernel,
                               n_in=len(xs), K=K, Lt=lt, act=act)
    out = pl.pallas_call(
        kernel,
        out_shape=jax.ShapeDtypeStruct((B, c_out, l_out_pad), out_dtype),
        grid_spec=pl.GridSpec(
            grid=(B, n_t),
            in_specs=in_specs,
            out_specs=pl.BlockSpec((1, c_out, lt), lambda b, t: (b, 0, t)),
        ),
        compiler_params=pltpu.CompilerParams(
            dimension_semantics=("parallel", "parallel"),
            vmem_limit_bytes=48 * 1024 * 1024,
        ),
    )(*args)
    if l_out_pad != l_out:
        out = out[:, :, :l_out]
    return out


# ----------------------------------------------------------------------------
# Plain-JAX glue: linear interpolation x2 (align_corners=True), like torch
# ----------------------------------------------------------------------------
def linear_interp_x2(o):
    B, C, Lin = o.shape
    Lout = 2 * Lin
    j = jnp.arange(Lout, dtype=jnp.float32)
    coord = j * (Lin - 1) / (Lout - 1)
    i0 = jnp.floor(coord).astype(jnp.int32)
    i1 = jnp.minimum(i0 + 1, Lin - 1)
    w1 = coord - i0.astype(jnp.float32)
    w0 = 1.0 - w1
    return o[:, :, i0] * w0 + o[:, :, i1] * w1


# ----------------------------------------------------------------------------
# Parameter construction (deterministic, matches torch layer shapes)
# ----------------------------------------------------------------------------
def init_conv_bn(key, c_in, c_out, ksize):
    k1, k2, k3, k4 = jax.random.split(key, 4)
    bound = 1.0 / math.sqrt(c_in * ksize)
    w = jax.random.uniform(k1, (c_out, c_in, ksize), jnp.float32, -bound, bound)
    b = jax.random.uniform(k2, (c_out,), jnp.float32, -bound, bound)
    gamma = 1.0 + 0.1 * jax.random.normal(k3, (c_out,), jnp.float32)
    beta = 0.1 * jax.random.normal(k4, (c_out,), jnp.float32)
    running_mean = jnp.zeros((c_out,), jnp.float32)
    running_var = jnp.ones((c_out,), jnp.float32)
    eps = 1e-5
    scale = gamma / jnp.sqrt(running_var + eps)
    # conv bias folded into the BatchNorm shift: y = scale*conv + shift
    shift = scale * (b - running_mean) + beta
    return {"w": w, "scale": scale, "shift": shift}


def init_tasnet_params(key, inchannels, outchannels, n_layers, channels_interval):
    enc_in = [inchannels] + [i * channels_interval for i in range(1, n_layers)]
    enc_out = [i * channels_interval for i in range(1, n_layers + 1)]

    keys = jax.random.split(key, 2 * n_layers + 2)
    params = {"enc": [], "dec": []}
    for i in range(n_layers):
        params["enc"].append(init_conv_bn(keys[i], enc_in[i], enc_out[i], 15))
    mid_c = n_layers * channels_interval
    params["mid"] = init_conv_bn(keys[n_layers], mid_c, mid_c, 15)

    dec_in = [(2 * i + 1) * channels_interval for i in range(1, n_layers)] \
             + [2 * n_layers * channels_interval]
    dec_in = dec_in[::-1]
    dec_out = enc_out[::-1]
    for i in range(n_layers):
        params["dec"].append(
            init_conv_bn(keys[n_layers + 1 + i], dec_in[i], dec_out[i], 5))

    kout = keys[-1]
    bound = 1.0 / math.sqrt(inchannels + channels_interval)
    b_out = jax.random.uniform(jax.random.fold_in(kout, 1), (outchannels,),
                               jnp.float32, -bound, bound)
    params["out"] = {
        "w": jax.random.uniform(
            kout, (outchannels, inchannels + channels_interval, 1),
            jnp.float32, -bound, bound),
        "scale": jnp.ones((outchannels,), jnp.float32),
        "shift": b_out,   # plain conv bias (no BN on the output layer)
    }
    return params


# ----------------------------------------------------------------------------
# TasNet forward pass
# ----------------------------------------------------------------------------
def tasnet_forward(params, x, n_layers):
    x = x.astype(jnp.float32)
    o = x
    tmp = []
    for i in range(n_layers):
        p = params["enc"][i]
        o = fused_conv_block([o], [p["w"]], p["scale"], p["shift"],
                             K=15, padding=7, act="lrelu",
                             out_dtype=jnp.bfloat16)
        tmp.append(o)
        o = o[:, :, ::2]                       # decimate by 2 (XLA strided slice)

    p = params["mid"]
    o = fused_conv_block([o], [p["w"]], p["scale"], p["shift"],
                         K=15, padding=7, act="lrelu", out_dtype=jnp.bfloat16)

    for i in range(n_layers):
        o = linear_interp_x2(o)
        skip = tmp[n_layers - i - 1]
        if o.shape[2] != skip.shape[2]:
            o = o[:, :, :skip.shape[2]]
        p = params["dec"][i]
        c1 = o.shape[1]
        # channel concat fused into the kernel: weight split along C_in,
        # partial matmuls summed in-kernel (no HBM concat).
        o = fused_conv_block([o, skip], [p["w"][:, :c1], p["w"][:, c1:]],
                             p["scale"], p["shift"],
                             K=5, padding=2, act="lrelu",
                             out_dtype=jnp.bfloat16)

    p = params["out"]
    c1 = o.shape[1]
    o = fused_conv_block([o, x], [p["w"][:, :c1], p["w"][:, c1:]],
                         p["scale"], p["shift"],
                         K=1, padding=0, act="tanh", out_dtype=jnp.float32)
    return o


# ----------------------------------------------------------------------------
if __name__ == "__main__":
    # Small configuration consistent with TasNet(__init__) shape logic.
    INCHANNELS = 3
    OUTCHANNELS = 2
    N_LAYERS = 4
    CHANNELS_INTERVAL = 8
    B, L = 2, 64                       # L divisible by 2**N_LAYERS

    key = jax.random.PRNGKey(0)
    kp, kx = jax.random.split(key)
    params = init_tasnet_params(kp, INCHANNELS, OUTCHANNELS,
                                N_LAYERS, CHANNELS_INTERVAL)
    x = jax.random.normal(kx, (B, INCHANNELS, L), jnp.float32)

    fwd = jax.jit(lambda p, inp: tasnet_forward(p, inp, N_LAYERS))
    y = fwd(params, x)
    jax.block_until_ready(y)

    assert y.shape == (B, OUTCHANNELS, L), y.shape
    assert bool(jnp.all(jnp.isfinite(y)))
    assert bool(jnp.all(jnp.abs(y) <= 1.0 + 1e-6))   # tanh output range
    print("KERNEL_OK")
</pallas_src>

<mosaic_0001>
module attributes {stable_mosaic.version = 11 : i64} {
  func.func @_fused_conv_kernel(%arg0: i32, %arg1: i32, %arg2: memref<1x3x128xbf16, #tpu.memory_space<vmem>>, %arg3: memref<1x3x128xbf16, #tpu.memory_space<vmem>>, %arg4: memref<8x45xbf16, #tpu.memory_space<vmem>>, %arg5: memref<8x2xf32, #tpu.memory_space<vmem>>, %arg6: memref<1x8x128xbf16, #tpu.memory_space<vmem>>) attributes {dimension_semantics = [#tpu.dimension_semantics<parallel>, #tpu.dimension_semantics<parallel>], iteration_bounds = array<i64: 2, 1>, scalar_prefetch = 0 : i64, scratch_operands = 0 : i64, tpu.core_type = #tpu.core_type<tc>, window_params = [{transform_indices = @transform_0, window_bounds = array<i64: 1, 3, 128>}, {transform_indices = @transform_1, window_bounds = array<i64: 1, 3, 128>}, {pipeline_mode = #tpu.pipeline_mode<synchronous>, transform_indices = @transform_2, window_bounds = array<i64: 8, 45>}, {pipeline_mode = #tpu.pipeline_mode<synchronous>, transform_indices = @transform_3, window_bounds = array<i64: 8, 2>}, {transform_indices = @transform_4, window_bounds = array<i64: 1, 8, 128>}]} {
    %cst = arith.constant 0.000000e+00 : f32
    %0 = vector.broadcast %cst : f32 to vector<8x128xf32>
    %c0 = arith.constant 0 : index
    %c0_0 = arith.constant 0 : index
    %c0_1 = arith.constant 0 : index
    %1 = vector.load %arg2[%c0, %c0_0, %c0_1] : memref<1x3x128xbf16, #tpu.memory_space<vmem>>, vector<1x3x128xbf16>
    %2 = vector.shape_cast %1 : vector<1x3x128xbf16> to vector<3x128xbf16>
    %c0_2 = arith.constant 0 : index
    %c0_3 = arith.constant 0 : index
    %c0_4 = arith.constant 0 : index
    %3 = vector.load %arg3[%c0_2, %c0_3, %c0_4] : memref<1x3x128xbf16, #tpu.memory_space<vmem>>, vector<1x3x128xbf16>
    %4 = vector.shape_cast %3 : vector<1x3x128xbf16> to vector<3x128xbf16>
    %5 = tpu.concatenate %2, %4 in 1 : vector<3x128xbf16>, vector<3x128xbf16> -> vector<3x256xbf16>
    %6 = vector.extract_strided_slice %5 {offsets = [0, 0], sizes = [3, 128], strides = [1, 1]} : vector<3x256xbf16> to vector<3x128xbf16>
    %7 = vector.extract_strided_slice %5 {offsets = [0, 1], sizes = [3, 128], strides = [1, 1]} : vector<3x256xbf16> to vector<3x128xbf16>
    %8 = vector.extract_strided_slice %5 {offsets = [0, 2], sizes = [3, 128], strides = [1, 1]} : vector<3x256xbf16> to vector<3x128xbf16>
    %9 = vector.extract_strided_slice %5 {offsets = [0, 3], sizes = [3, 128], strides = [1, 1]} : vector<3x256xbf16> to vector<3x128xbf16>
    %10 = vector.extract_strided_slice %5 {offsets = [0, 4], sizes = [3, 128], strides = [1, 1]} : vector<3x256xbf16> to vector<3x128xbf16>
    %11 = vector.extract_strided_slice %5 {offsets = [0, 5], sizes = [3, 128], strides = [1, 1]} : vector<3x256xbf16> to vector<3x128xbf16>
    %12 = vector.extract_strided_slice %5 {offsets = [0, 6], sizes = [3, 128], strides = [1, 1]} : vector<3x256xbf16> to vector<3x128xbf16>
    %13 = vector.extract_strided_slice %5 {offsets = [0, 7], sizes = [3, 128], strides = [1, 1]} : vector<3x256xbf16> to vector<3x128xbf16>
    %14 = vector.extract_strided_slice %5 {offsets = [0, 8], sizes = [3, 128], strides = [1, 1]} : vector<3x256xbf16> to vector<3x128xbf16>
    %15 = vector.extract_strided_slice %5 {offsets = [0, 9], sizes = [3, 128], strides = [1, 1]} : vector<3x256xbf16> to vector<3x128xbf16>
    %16 = vector.extract_strided_slice %5 {offsets = [0, 10], sizes = [3, 128], strides = [1, 1]} : vector<3x256xbf16> to vector<3x128xbf16>
    %17 = vector.extract_strided_slice %5 {offsets = [0, 11], sizes = [3, 128], strides = [1, 1]} : vector<3x256xbf16> to vector<3x128xbf16>
    %18 = vector.extract_strided_slice %5 {offsets = [0, 12], sizes = [3, 128], strides = [1, 1]} : vector<3x256xbf16> to vector<3x128xbf16>
    %19 = vector.extract_strided_slice %5 {offsets = [0, 13], sizes = [3, 128], strides = [1, 1]} : vector<3x256xbf16> to vector<3x128xbf16>
    %20 = vector.extract_strided_slice %5 {offsets = [0, 14], sizes = [3, 128], strides = [1, 1]} : vector<3x256xbf16> to vector<3x128xbf16>
    %21 = tpu.concatenate %6, %7, %8, %9, %10, %11, %12, %13, %14, %15, %16, %17, %18, %19, %20 in 0 : vector<3x128xbf16>, vector<3x128xbf16>, vector<3x128xbf16>, vector<3x128xbf16>, vector<3x128xbf16>, vector<3x128xbf16>, vector<3x128xbf16>, vector<3x128xbf16>, vector<3x128xbf16>, vector<3x128xbf16>, vector<3x128xbf16>, vector<3x128xbf16>, vector<3x128xbf16>, vector<3x128xbf16>, vector<3x128xbf16> -> vector<45x128xbf16>
    %c0_5 = arith.constant 0 : index
    %c0_6 = arith.constant 0 : index
    %22 = vector.load %arg4[%c0_5, %c0_6] : memref<8x45xbf16, #tpu.memory_space<vmem>>, vector<8x45xbf16>
    %cst_7 = arith.constant dense<0.000000e+00> : vector<8x128xf32>
    %23 = tpu.matmul %22, %21, %cst_7 {dimension_numbers = #tpu.dot_dimension_numbers<[1], [0], [0], [1], [0, 0, 1, 1], [], []>} : vector<8x45xbf16>, vector<45x128xbf16>, vector<8x128xf32> -> vector<8x128xf32>
    %24 = arith.addf %0, %23 : vector<8x128xf32>
    %c0_8 = arith.constant 0 : index
    %c0_9 = arith.constant 0 : index
    %25 = vector.load %arg5[%c0_8, %c0_9] : memref<8x2xf32, #tpu.memory_space<vmem>>, vector<8x2xf32>
    %26 = vector.extract_strided_slice %25 {offsets = [0, 0], sizes = [8, 1], strides = [1, 1]} : vector<8x2xf32> to vector<8x1xf32>
    %27 = vector.broadcast %26 : vector<8x1xf32> to vector<8x128xf32>
    %28 = arith.mulf %24, %27 : vector<8x128xf32>
    %29 = vector.extract_strided_slice %25 {offsets = [0, 1], sizes = [8, 1], strides = [1, 1]} : vector<8x2xf32> to vector<8x1xf32>
    %30 = vector.broadcast %29 : vector<8x1xf32> to vector<8x128xf32>
    %31 = arith.addf %28, %30 : vector<8x128xf32>
    %cst_10 = arith.constant 0.000000e+00 : f32
    %32 = vector.broadcast %cst_10 : f32 to vector<8x128xf32>
    %33 = arith.cmpf oge, %31, %32 : vector<8x128xf32>
    %cst_11 = arith.constant 1.000000e-01 : f32
    %34 = vector.broadcast %cst_11 : f32 to vector<8x128xf32>
    %35 = arith.mulf %34, %31 : vector<8x128xf32>
    %36 = arith.select %33, %31, %35 : vector<8x128xi1>, vector<8x128xf32>
    %37 = arith.truncf %36 : vector<8x128xf32> to vector<8x128xbf16>
    %c0_12 = arith.constant 0 : index
    %c0_13 = arith.constant 0 : index
    %c0_14 = arith.constant 0 : index
    %38 = vector.load %arg6[%c0_12, %c0_13, %c0_14] : memref<1x8x128xbf16, #tpu.memory_space<vmem>>, vector<1x8x128xbf16>
    %39 = vector.shape_cast %38 : vector<1x8x128xbf16> to vector<8x128xbf16>
    %40 = vector.shape_cast %37 : vector<8x128xbf16> to vector<1x8x128xbf16>
    tpu.vector_store %arg6[%c0_12, %c0_13, %c0_14], %40 {strides = array<i32>} : memref<1x8x128xbf16, #tpu.memory_space<vmem>>, vector<1x8x128xbf16>,
    return
  }
  func.func @transform_0(%arg0: i32, %arg1: i32) -> (i32, i32, i32) {
    %c0_i32 = arith.constant 0 : i32
    %c0_i32_0 = arith.constant 0 : i32
    return %arg0, %c0_i32, %arg1 : i32, i32, i32
  }
  func.func @transform_1(%arg0: i32, %arg1: i32) -> (i32, i32, i32) {
    %c1_i32 = arith.constant 1 : i32
    %0 = arith.addi %arg1, %c1_i32 : i32
    %c1_i32_0 = arith.constant 1 : i32
    %1 = arith.muli %0, %c1_i32_0 : i32
    %c0_i32 = arith.constant 0 : i32
    %c0_i32_1 = arith.constant 0 : i32
    return %arg0, %c0_i32, %1 : i32, i32, i32
  }
  func.func @transform_2(%arg0: i32, %arg1: i32) -> (i32, i32) {
    %c0_i32 = arith.constant 0 : i32
    %c0_i32_0 = arith.constant 0 : i32
    %c0_i32_1 = arith.constant 0 : i32
    return %c0_i32, %c0_i32_0 : i32, i32
  }
  func.func @transform_3(%arg0: i32, %arg1: i32) -> (i32, i32) {
    %c0_i32 = arith.constant 0 : i32
    %c0_i32_0 = arith.constant 0 : i32
    %c0_i32_1 = arith.constant 0 : i32
    return %c0_i32, %c0_i32_0 : i32, i32
  }
  func.func @transform_4(%arg0: i32, %arg1: i32) -> (i32, i32, i32) {
    %c0_i32 = arith.constant 0 : i32
    %c0_i32_0 = arith.constant 0 : i32
    return %arg0, %c0_i32, %arg1 : i32, i32, i32
  }
}

module attributes {stable_mosaic.version = 11 : i64} {
  func.func @_fused_conv_kernel(%arg0: i32, %arg1: i32, %arg2: memref<1x8x128xbf16, #tpu.memory_space<vmem>>, %arg3: memref<1x8x128xbf16, #tpu.memory_space<vmem>>, %arg4: memref<16x120xbf16, #tpu.memory_space<vmem>>, %arg5: memref<16x2xf32, #tpu.memory_space<vmem>>, %arg6: memref<1x16x128xbf16, #tpu.memory_space<vmem>>) attributes {dimension_semantics = [#tpu.dimension_semantics<parallel>, #tpu.dimension_semantics<parallel>], iteration_bounds = array<i64: 2, 1>, scalar_prefetch = 0 : i64, scratch_operands = 0 : i64, tpu.core_type = #tpu.core_type<tc>, window_params = [{transform_indices = @transform_0, window_bounds = array<i64: 1, 8, 128>}, {transform_indices = @transform_1, window_bounds = array<i64: 1, 8, 128>}, {pipeline_mode = #tpu.pipeline_mode<synchronous>, transform_indices = @transform_2, window_bounds = array<i64: 16, 120>}, {pipeline_mode = #tpu.pipeline_mode<synchronous>, transform_indices = @transform_3, window_bounds = array<i64: 16, 2>}, {transform_indices = @transform_4, window_bounds = array<i64: 1, 16, 128>}]} {
    %cst = arith.constant 0.000000e+00 : f32
    %0 = vector.broadcast %cst : f32 to vector<16x128xf32>
    %c0 = arith.constant 0 : index
    %c0_0 = arith.constant 0 : index
    %c0_1 = arith.constant 0 : index
    %1 = vector.load %arg2[%c0, %c0_0, %c0_1] : memref<1x8x128xbf16, #tpu.memory_space<vmem>>, vector<1x8x128xbf16>
    %2 = vector.shape_cast %1 : vector<1x8x128xbf16> to vector<8x128xbf16>
    %c0_2 = arith.constant 0 : index
    %c0_3 = arith.constant 0 : index
    %c0_4 = arith.constant 0 : index
    %3 = vector.load %arg3[%c0_2, %c0_3, %c0_4] : memref<1x8x128xbf16, #tpu.memory_space<vmem>>, vector<1x8x128xbf16>
    %4 = vector.shape_cast %3 : vector<1x8x128xbf16> to vector<8x128xbf16>
    %5 = tpu.concatenate %2, %4 in 1 : vector<8x128xbf16>, vector<8x128xbf16> -> vector<8x256xbf16>
    %6 = vector.extract_strided_slice %5 {offsets = [0, 0], sizes = [8, 128], strides = [1, 1]} : vector<8x256xbf16> to vector<8x128xbf16>
    %7 = vector.extract_strided_slice %5 {offsets = [0, 1], sizes = [8, 128], strides = [1, 1]} : vector<8x256xbf16> to vector<8x128xbf16>
    %8 = vector.extract_strided_slice %5 {offsets = [0, 2], sizes = [8, 128], strides = [1, 1]} : vector<8x256xbf16> to vector<8x128xbf16>
    %9 = vector.extract_strided_slice %5 {offsets = [0, 3], sizes = [8, 128], strides = [1, 1]} : vector<8x256xbf16> to vector<8x128xbf16>
    %10 = vector.extract_strided_slice %5 {offsets = [0, 4], sizes = [8, 128], strides = [1, 1]} : vector<8x256xbf16> to vector<8x128xbf16>
    %11 = vector.extract_strided_slice %5 {offsets = [0, 5], sizes = [8, 128], strides = [1, 1]} : vector<8x256xbf16> to vector<8x128xbf16>
    %12 = vector.extract_strided_slice %5 {offsets = [0, 6], sizes = [8, 128], strides = [1, 1]} : vector<8x256xbf16> to vector<8x128xbf16>
    %13 = vector.extract_strided_slice %5 {offsets = [0, 7], sizes = [8, 128], strides = [1, 1]} : vector<8x256xbf16> to vector<8x128xbf16>
    %14 = vector.extract_strided_slice %5 {offsets = [0, 8], sizes = [8, 128], strides = [1, 1]} : vector<8x256xbf16> to vector<8x128xbf16>
    %15 = vector.extract_strided_slice %5 {offsets = [0, 9], sizes = [8, 128], strides = [1, 1]} : vector<8x256xbf16> to vector<8x128xbf16>
    %16 = vector.extract_strided_slice %5 {offsets = [0, 10], sizes = [8, 128], strides = [1, 1]} : vector<8x256xbf16> to vector<8x128xbf16>
    %17 = vector.extract_strided_slice %5 {offsets = [0, 11], sizes = [8, 128], strides = [1, 1]} : vector<8x256xbf16> to vector<8x128xbf16>
    %18 = vector.extract_strided_slice %5 {offsets = [0, 12], sizes = [8, 128], strides = [1, 1]} : vector<8x256xbf16> to vector<8x128xbf16>
    %19 = vector.extract_strided_slice %5 {offsets = [0, 13], sizes = [8, 128], strides = [1, 1]} : vector<8x256xbf16> to vector<8x128xbf16>
    %20 = vector.extract_strided_slice %5 {offsets = [0, 14], sizes = [8, 128], strides = [1, 1]} : vector<8x256xbf16> to vector<8x128xbf16>
    %21 = tpu.concatenate %6, %7, %8, %9, %10, %11, %12, %13, %14, %15, %16, %17, %18, %19, %20 in 0 : vector<8x128xbf16>, vector<8x128xbf16>, vector<8x128xbf16>, vector<8x128xbf16>, vector<8x128xbf16>, vector<8x128xbf16>, vector<8x128xbf16>, vector<8x128xbf16>, vector<8x128xbf16>, vector<8x128xbf16>, vector<8x128xbf16>, vector<8x128xbf16>, vector<8x128xbf16>, vector<8x128xbf16>, vector<8x128xbf16> -> vector<120x128xbf16>
    %c0_5 = arith.constant 0 : index
    %c0_6 = arith.constant 0 : index
    %22 = vector.load %arg4[%c0_5, %c0_6] : memref<16x120xbf16, #tpu.memory_space<vmem>>, vector<16x120xbf16>
    %cst_7 = arith.constant dense<0.000000e+00> : vector<16x128xf32>
    %23 = tpu.matmul %22, %21, %cst_7 {dimension_numbers = #tpu.dot_dimension_numbers<[1], [0], [0], [1], [0, 0, 1, 1], [], []>} : vector<16x120xbf16>, vector<120x128xbf16>, vector<16x128xf32> -> vector<16x128xf32>
    %24 = arith.addf %0, %23 : vector<16x128xf32>
    %c0_8 = arith.constant 0 : index
    %c0_9 = arith.constant 0 : index
    %25 = vector.load %arg5[%c0_8, %c0_9] : memref<16x2xf32, #tpu.memory_space<vmem>>, vector<16x2xf32>
    %26 = vector.extract_strided_slice %25 {offsets = [0, 0], sizes = [16, 1], strides = [1, 1]} : vector<16x2xf32> to vector<16x1xf32>
    %27 = vector.broadcast %26 : vector<16x1xf32> to vector<16x128xf32>
    %28 = arith.mulf %24, %27 : vector<16x128xf32>
    %29 = vector.extract_strided_slice %25 {offsets = [0, 1], sizes = [16, 1], strides = [1, 1]} : vector<16x2xf32> to vector<16x1xf32>
    %30 = vector.broadcast %29 : vector<16x1xf32> to vector<16x128xf32>
    %31 = arith.addf %28, %30 : vector<16x128xf32>
    %cst_10 = arith.constant 0.000000e+00 : f32
    %32 = vector.broadcast %cst_10 : f32 to vector<16x128xf32>
    %33 = arith.cmpf oge, %31, %32 : vector<16x128xf32>
    %cst_11 = arith.constant 1.000000e-01 : f32
    %34 = vector.broadcast %cst_11 : f32 to vector<16x128xf32>
    %35 = arith.mulf %34, %31 : vector<16x128xf32>
    %36 = arith.select %33, %31, %35 : vector<16x128xi1>, vector<16x128xf32>
    %37 = arith.truncf %36 : vector<16x128xf32> to vector<16x128xbf16>
    %c0_12 = arith.constant 0 : index
    %c0_13 = arith.constant 0 : index
    %c0_14 = arith.constant 0 : index
    %38 = vector.load %arg6[%c0_12, %c0_13, %c0_14] : memref<1x16x128xbf16, #tpu.memory_space<vmem>>, vector<1x16x128xbf16>
    %39 = vector.shape_cast %38 : vector<1x16x128xbf16> to vector<16x128xbf16>
    %40 = vector.shape_cast %37 : vector<16x128xbf16> to vector<1x16x128xbf16>
    tpu.vector_store %arg6[%c0_12, %c0_13, %c0_14], %40 {strides = array<i32>} : memref<1x16x128xbf16, #tpu.memory_space<vmem>>, vector<1x16x128xbf16>,
    return
  }
  func.func @transform_0(%arg0: i32, %arg1: i32) -> (i32, i32, i32) {
    %c0_i32 = arith.constant 0 : i32
    %c0_i32_0 = arith.constant 0 : i32
    return %arg0, %c0_i32, %arg1 : i32, i32, i32
  }
  func.func @transform_1(%arg0: i32, %arg1: i32) -> (i32, i32, i32) {
    %c1_i32 = arith.constant 1 : i32
    %0 = arith.addi %arg1, %c1_i32 : i32
    %c1_i32_0 = arith.constant 1 : i32
    %1 = arith.muli %0, %c1_i32_0 : i32
    %c0_i32 = arith.constant 0 : i32
    %c0_i32_1 = arith.constant 0 : i32
    return %arg0, %c0_i32, %1 : i32, i32, i32
  }
  func.func @transform_2(%arg0: i32, %arg1: i32) -> (i32, i32) {
    %c0_i32 = arith.constant 0 : i32
    %c0_i32_0 = arith.constant 0 : i32
    %c0_i32_1 = arith.constant 0 : i32
    return %c0_i32, %c0_i32_0 : i32, i32
  }
  func.func @transform_3(%arg0: i32, %arg1: i32) -> (i32, i32) {
    %c0_i32 = arith.constant 0 : i32
    %c0_i32_0 = arith.constant 0 : i32
    %c0_i32_1 = arith.constant 0 : i32
    return %c0_i32, %c0_i32_0 : i32, i32
  }
  func.func @transform_4(%arg0: i32, %arg1: i32) -> (i32, i32, i32) {
    %c0_i32 = arith.constant 0 : i32
    %c0_i32_0 = arith.constant 0 : i32
    return %arg0, %c0_i32, %arg1 : i32, i32, i32
  }
}

module attributes {stable_mosaic.version = 11 : i64} {
  func.func @_fused_conv_kernel(%arg0: i32, %arg1: i32, %arg2: memref<1x16x128xbf16, #tpu.memory_space<vmem>>, %arg3: memref<1x16x128xbf16, #tpu.memory_space<vmem>>, %arg4: memref<24x240xbf16, #tpu.memory_space<vmem>>, %arg5: memref<24x2xf32, #tpu.memory_space<vmem>>, %arg6: memref<1x24x128xbf16, #tpu.memory_space<vmem>>) attributes {dimension_semantics = [#tpu.dimension_semantics<parallel>, #tpu.dimension_semantics<parallel>], iteration_bounds = array<i64: 2, 1>, scalar_prefetch = 0 : i64, scratch_operands = 0 : i64, tpu.core_type = #tpu.core_type<tc>, window_params = [{transform_indices = @transform_0, window_bounds = array<i64: 1, 16, 128>}, {transform_indices = @transform_1, window_bounds = array<i64: 1, 16, 128>}, {pipeline_mode = #tpu.pipeline_mode<synchronous>, transform_indices = @transform_2, window_bounds = array<i64: 24, 240>}, {pipeline_mode = #tpu.pipeline_mode<synchronous>, transform_indices = @transform_3, window_bounds = array<i64: 24, 2>}, {transform_indices = @transform_4, window_bounds = array<i64: 1, 24, 128>}]} {
    %cst = arith.constant 0.000000e+00 : f32
    %0 = vector.broadcast %cst : f32 to vector<24x128xf32>
    %c0 = arith.constant 0 : index
    %c0_0 = arith.constant 0 : index
    %c0_1 = arith.constant 0 : index
    %1 = vector.load %arg2[%c0, %c0_0, %c0_1] : memref<1x16x128xbf16, #tpu.memory_space<vmem>>, vector<1x16x128xbf16>
    %2 = vector.shape_cast %1 : vector<1x16x128xbf16> to vector<16x128xbf16>
    %c0_2 = arith.constant 0 : index
    %c0_3 = arith.constant 0 : index
    %c0_4 = arith.constant 0 : index
    %3 = vector.load %arg3[%c0_2, %c0_3, %c0_4] : memref<1x16x128xbf16, #tpu.memory_space<vmem>>, vector<1x16x128xbf16>
    %4 = vector.shape_cast %3 : vector<1x16x128xbf16> to vector<16x128xbf16>
    %5 = tpu.concatenate %2, %4 in 1 : vector<16x128xbf16>, vector<16x128xbf16> -> vector<16x256xbf16>
    %6 = vector.extract_strided_slice %5 {offsets = [0, 0], sizes = [16, 128], strides = [1, 1]} : vector<16x256xbf16> to vector<16x128xbf16>
    %7 = vector.extract_strided_slice %5 {offsets = [0, 1], sizes = [16, 128], strides = [1, 1]} : vector<16x256xbf16> to vector<16x128xbf16>
    %8 = vector.extract_strided_slice %5 {offsets = [0, 2], sizes = [16, 128], strides = [1, 1]} : vector<16x256xbf16> to vector<16x128xbf16>
    %9 = vector.extract_strided_slice %5 {offsets = [0, 3], sizes = [16, 128], strides = [1, 1]} : vector<16x256xbf16> to vector<16x128xbf16>
    %10 = vector.extract_strided_slice %5 {offsets = [0, 4], sizes = [16, 128], strides = [1, 1]} : vector<16x256xbf16> to vector<16x128xbf16>
    %11 = vector.extract_strided_slice %5 {offsets = [0, 5], sizes = [16, 128], strides = [1, 1]} : vector<16x256xbf16> to vector<16x128xbf16>
    %12 = vector.extract_strided_slice %5 {offsets = [0, 6], sizes = [16, 128], strides = [1, 1]} : vector<16x256xbf16> to vector<16x128xbf16>
    %13 = vector.extract_strided_slice %5 {offsets = [0, 7], sizes = [16, 128], strides = [1, 1]} : vector<16x256xbf16> to vector<16x128xbf16>
    %14 = vector.extract_strided_slice %5 {offsets = [0, 8], sizes = [16, 128], strides = [1, 1]} : vector<16x256xbf16> to vector<16x128xbf16>
    %15 = vector.extract_strided_slice %5 {offsets = [0, 9], sizes = [16, 128], strides = [1, 1]} : vector<16x256xbf16> to vector<16x128xbf16>
    %16 = vector.extract_strided_slice %5 {offsets = [0, 10], sizes = [16, 128], strides = [1, 1]} : vector<16x256xbf16> to vector<16x128xbf16>
    %17 = vector.extract_strided_slice %5 {offsets = [0, 11], sizes = [16, 128], strides = [1, 1]} : vector<16x256xbf16> to vector<16x128xbf16>
    %18 = vector.extract_strided_slice %5 {offsets = [0, 12], sizes = [16, 128], strides = [1, 1]} : vector<16x256xbf16> to vector<16x128xbf16>
    %19 = vector.extract_strided_slice %5 {offsets = [0, 13], sizes = [16, 128], strides = [1, 1]} : vector<16x256xbf16> to vector<16x128xbf16>
    %20 = vector.extract_strided_slice %5 {offsets = [0, 14], sizes = [16, 128], strides = [1, 1]} : vector<16x256xbf16> to vector<16x128xbf16>
    %21 = tpu.concatenate %6, %7, %8, %9, %10, %11, %12, %13, %14, %15, %16, %17, %18, %19, %20 in 0 : vector<16x128xbf16>, vector<16x128xbf16>, vector<16x128xbf16>, vector<16x128xbf16>, vector<16x128xbf16>, vector<16x128xbf16>, vector<16x128xbf16>, vector<16x128xbf16>, vector<16x128xbf16>, vector<16x128xbf16>, vector<16x128xbf16>, vector<16x128xbf16>, vector<16x128xbf16>, vector<16x128xbf16>, vector<16x128xbf16> -> vector<240x128xbf16>
    %c0_5 = arith.constant 0 : index
    %c0_6 = arith.constant 0 : index
    %22 = vector.load %arg4[%c0_5, %c0_6] : memref<24x240xbf16, #tpu.memory_space<vmem>>, vector<24x240xbf16>
    %cst_7 = arith.constant dense<0.000000e+00> : vector<24x128xf32>
    %23 = tpu.matmul %22, %21, %cst_7 {dimension_numbers = #tpu.dot_dimension_numbers<[1], [0], [0], [1], [0, 0, 1, 1], [], []>} : vector<24x240xbf16>, vector<240x128xbf16>, vector<24x128xf32> -> vector<24x128xf32>
    %24 = arith.addf %0, %23 : vector<24x128xf32>
    %c0_8 = arith.constant 0 : index
    %c0_9 = arith.constant 0 : index
    %25 = vector.load %arg5[%c0_8, %c0_9] : memref<24x2xf32, #tpu.memory_space<vmem>>, vector<24x2xf32>
    %26 = vector.extract_strided_slice %25 {offsets = [0, 0], sizes = [24, 1], strides = [1, 1]} : vector<24x2xf32> to vector<24x1xf32>
    %27 = vector.broadcast %26 : vector<24x1xf32> to vector<24x128xf32>
    %28 = arith.mulf %24, %27 : vector<24x128xf32>
    %29 = vector.extract_strided_slice %25 {offsets = [0, 1], sizes = [24, 1], strides = [1, 1]} : vector<24x2xf32> to vector<24x1xf32>
    %30 = vector.broadcast %29 : vector<24x1xf32> to vector<24x128xf32>
    %31 = arith.addf %28, %30 : vector<24x128xf32>
    %cst_10 = arith.constant 0.000000e+00 : f32
    %32 = vector.broadcast %cst_10 : f32 to vector<24x128xf32>
    %33 = arith.cmpf oge, %31, %32 : vector<24x128xf32>
    %cst_11 = arith.constant 1.000000e-01 : f32
    %34 = vector.broadcast %cst_11 : f32 to vector<24x128xf32>
    %35 = arith.mulf %34, %31 : vector<24x128xf32>
    %36 = arith.select %33, %31, %35 : vector<24x128xi1>, vector<24x128xf32>
    %37 = arith.truncf %36 : vector<24x128xf32> to vector<24x128xbf16>
    %c0_12 = arith.constant 0 : index
    %c0_13 = arith.constant 0 : index
    %c0_14 = arith.constant 0 : index
    %38 = vector.load %arg6[%c0_12, %c0_13, %c0_14] : memref<1x24x128xbf16, #tpu.memory_space<vmem>>, vector<1x24x128xbf16>
    %39 = vector.shape_cast %38 : vector<1x24x128xbf16> to vector<24x128xbf16>
    %40 = vector.shape_cast %37 : vector<24x128xbf16> to vector<1x24x128xbf16>
    tpu.vector_store %arg6[%c0_12, %c0_13, %c0_14], %40 {strides = array<i32>} : memref<1x24x128xbf16, #tpu.memory_space<vmem>>, vector<1x24x128xbf16>,
    return
  }
  func.func @transform_0(%arg0: i32, %arg1: i32) -> (i32, i32, i32) {
    %c0_i32 = arith.constant 0 : i32
    %c0_i32_0 = arith.constant 0 : i32
    return %arg0, %c0_i32, %arg1 : i32, i32, i32
  }
  func.func @transform_1(%arg0: i32, %arg1: i32) -> (i32, i32, i32) {
    %c1_i32 = arith.constant 1 : i32
    %0 = arith.addi %arg1, %c1_i32 : i32
    %c1_i32_0 = arith.constant 1 : i32
    %1 = arith.muli %0, %c1_i32_0 : i32
    %c0_i32 = arith.constant 0 : i32
    %c0_i32_1 = arith.constant 0 : i32
    return %arg0, %c0_i32, %1 : i32, i32, i32
  }
  func.func @transform_2(%arg0: i32, %arg1: i32) -> (i32, i32) {
    %c0_i32 = arith.constant 0 : i32
    %c0_i32_0 = arith.constant 0 : i32
    %c0_i32_1 = arith.constant 0 : i32
    return %c0_i32, %c0_i32_0 : i32, i32
  }
  func.func @transform_3(%arg0: i32, %arg1: i32) -> (i32, i32) {
    %c0_i32 = arith.constant 0 : i32
    %c0_i32_0 = arith.constant 0 : i32
    %c0_i32_1 = arith.constant 0 : i32
    return %c0_i32, %c0_i32_0 : i32, i32
  }
  func.func @transform_4(%arg0: i32, %arg1: i32) -> (i32, i32, i32) {
    %c0_i32 = arith.constant 0 : i32
    %c0_i32_0 = arith.constant 0 : i32
    return %arg0, %c0_i32, %arg1 : i32, i32, i32
  }
}

module attributes {stable_mosaic.version = 11 : i64} {
  func.func @_fused_conv_kernel(%arg0: i32, %arg1: i32, %arg2: memref<1x24x128xbf16, #tpu.memory_space<vmem>>, %arg3: memref<1x24x128xbf16, #tpu.memory_space<vmem>>, %arg4: memref<32x360xbf16, #tpu.memory_space<vmem>>, %arg5: memref<32x2xf32, #tpu.memory_space<vmem>>, %arg6: memref<1x32x128xbf16, #tpu.memory_space<vmem>>) attributes {dimension_semantics = [#tpu.dimension_semantics<parallel>, #tpu.dimension_semantics<parallel>], iteration_bounds = array<i64: 2, 1>, scalar_prefetch = 0 : i64, scratch_operands = 0 : i64, tpu.core_type = #tpu.core_type<tc>, window_params = [{transform_indices = @transform_0, window_bounds = array<i64: 1, 24, 128>}, {transform_indices = @transform_1, window_bounds = array<i64: 1, 24, 128>}, {pipeline_mode = #tpu.pipeline_mode<synchronous>, transform_indices = @transform_2, window_bounds = array<i64: 32, 360>}, {pipeline_mode = #tpu.pipeline_mode<synchronous>, transform_indices = @transform_3, window_bounds = array<i64: 32, 2>}, {transform_indices = @transform_4, window_bounds = array<i64: 1, 32, 128>}]} {
    %cst = arith.constant 0.000000e+00 : f32
    %0 = vector.broadcast %cst : f32 to vector<32x128xf32>
    %c0 = arith.constant 0 : index
    %c0_0 = arith.constant 0 : index
    %c0_1 = arith.constant 0 : index
    %1 = vector.load %arg2[%c0, %c0_0, %c0_1] : memref<1x24x128xbf16, #tpu.memory_space<vmem>>, vector<1x24x128xbf16>
    %2 = vector.shape_cast %1 : vector<1x24x128xbf16> to vector<24x128xbf16>
    %c0_2 = arith.constant 0 : index
    %c0_3 = arith.constant 0 : index
    %c0_4 = arith.constant 0 : index
    %3 = vector.load %arg3[%c0_2, %c0_3, %c0_4] : memref<1x24x128xbf16, #tpu.memory_space<vmem>>, vector<1x24x128xbf16>
    %4 = vector.shape_cast %3 : vector<1x24x128xbf16> to vector<24x128xbf16>
    %5 = tpu.concatenate %2, %4 in 1 : vector<24x128xbf16>, vector<24x128xbf16> -> vector<24x256xbf16>
    %6 = vector.extract_strided_slice %5 {offsets = [0, 0], sizes = [24, 128], strides = [1, 1]} : vector<24x256xbf16> to vector<24x128xbf16>
    %7 = vector.extract_strided_slice %5 {offsets = [0, 1], sizes = [24, 128], strides = [1, 1]} : vector<24x256xbf16> to vector<24x128xbf16>
    %8 = vector.extract_strided_slice %5 {offsets = [0, 2], sizes = [24, 128], strides = [1, 1]} : vector<24x256xbf16> to vector<24x128xbf16>
    %9 = vector.extract_strided_slice %5 {offsets = [0, 3], sizes = [24, 128], strides = [1, 1]} : vector<24x256xbf16> to vector<24x128xbf16>
    %10 = vector.extract_strided_slice %5 {offsets = [0, 4], sizes = [24, 128], strides = [1, 1]} : vector<24x256xbf16> to vector<24x128xbf16>
    %11 = vector.extract_strided_slice %5 {offsets = [0, 5], sizes = [24, 128], strides = [1, 1]} : vector<24x256xbf16> to vector<24x128xbf16>
    %12 = vector.extract_strided_slice %5 {offsets = [0, 6], sizes = [24, 128], strides = [1, 1]} : vector<24x256xbf16> to vector<24x128xbf16>
    %13 = vector.extract_strided_slice %5 {offsets = [0, 7], sizes = [24, 128], strides = [1, 1]} : vector<24x256xbf16> to vector<24x128xbf16>
    %14 = vector.extract_strided_slice %5 {offsets = [0, 8], sizes = [24, 128], strides = [1, 1]} : vector<24x256xbf16> to vector<24x128xbf16>
    %15 = vector.extract_strided_slice %5 {offsets = [0, 9], sizes = [24, 128], strides = [1, 1]} : vector<24x256xbf16> to vector<24x128xbf16>
    %16 = vector.extract_strided_slice %5 {offsets = [0, 10], sizes = [24, 128], strides = [1, 1]} : vector<24x256xbf16> to vector<24x128xbf16>
    %17 = vector.extract_strided_slice %5 {offsets = [0, 11], sizes = [24, 128], strides = [1, 1]} : vector<24x256xbf16> to vector<24x128xbf16>
    %18 = vector.extract_strided_slice %5 {offsets = [0, 12], sizes = [24, 128], strides = [1, 1]} : vector<24x256xbf16> to vector<24x128xbf16>
    %19 = vector.extract_strided_slice %5 {offsets = [0, 13], sizes = [24, 128], strides = [1, 1]} : vector<24x256xbf16> to vector<24x128xbf16>
    %20 = vector.extract_strided_slice %5 {offsets = [0, 14], sizes = [24, 128], strides = [1, 1]} : vector<24x256xbf16> to vector<24x128xbf16>
    %21 = tpu.concatenate %6, %7, %8, %9, %10, %11, %12, %13, %14, %15, %16, %17, %18, %19, %20 in 0 : vector<24x128xbf16>, vector<24x128xbf16>, vector<24x128xbf16>, vector<24x128xbf16>, vector<24x128xbf16>, vector<24x128xbf16>, vector<24x128xbf16>, vector<24x128xbf16>, vector<24x128xbf16>, vector<24x128xbf16>, vector<24x128xbf16>, vector<24x128xbf16>, vector<24x128xbf16>, vector<24x128xbf16>, vector<24x128xbf16> -> vector<360x128xbf16>
    %c0_5 = arith.constant 0 : index
    %c0_6 = arith.constant 0 : index
    %22 = vector.load %arg4[%c0_5, %c0_6] : memref<32x360xbf16, #tpu.memory_space<vmem>>, vector<32x360xbf16>
    %cst_7 = arith.constant dense<0.000000e+00> : vector<32x128xf32>
    %23 = tpu.matmul %22, %21, %cst_7 {dimension_numbers = #tpu.dot_dimension_numbers<[1], [0], [0], [1], [0, 0, 1, 1], [], []>} : vector<32x360xbf16>, vector<360x128xbf16>, vector<32x128xf32> -> vector<32x128xf32>
    %24 = arith.addf %0, %23 : vector<32x128xf32>
    %c0_8 = arith.constant 0 : index
    %c0_9 = arith.constant 0 : index
    %25 = vector.load %arg5[%c0_8, %c0_9] : memref<32x2xf32, #tpu.memory_space<vmem>>, vector<32x2xf32>
    %26 = vector.extract_strided_slice %25 {offsets = [0, 0], sizes = [32, 1], strides = [1, 1]} : vector<32x2xf32> to vector<32x1xf32>
    %27 = vector.broadcast %26 : vector<32x1xf32> to vector<32x128xf32>
    %28 = arith.mulf %24, %27 : vector<32x128xf32>
    %29 = vector.extract_strided_slice %25 {offsets = [0, 1], sizes = [32, 1], strides = [1, 1]} : vector<32x2xf32> to vector<32x1xf32>
    %30 = vector.broadcast %29 : vector<32x1xf32> to vector<32x128xf32>
    %31 = arith.addf %28, %30 : vector<32x128xf32>
    %cst_10 = arith.constant 0.000000e+00 : f32
    %32 = vector.broadcast %cst_10 : f32 to vector<32x128xf32>
    %33 = arith.cmpf oge, %31, %32 : vector<32x128xf32>
    %cst_11 = arith.constant 1.000000e-01 : f32
    %34 = vector.broadcast %cst_11 : f32 to vector<32x128xf32>
    %35 = arith.mulf %34, %31 : vector<32x128xf32>
    %36 = arith.select %33, %31, %35 : vector<32x128xi1>, vector<32x128xf32>
    %37 = arith.truncf %36 : vector<32x128xf32> to vector<32x128xbf16>
    %c0_12 = arith.constant 0 : index
    %c0_13 = arith.constant 0 : index
    %c0_14 = arith.constant 0 : index
    %38 = vector.load %arg6[%c0_12, %c0_13, %c0_14] : memref<1x32x128xbf16, #tpu.memory_space<vmem>>, vector<1x32x128xbf16>
    %39 = vector.shape_cast %38 : vector<1x32x128xbf16> to vector<32x128xbf16>
    %40 = vector.shape_cast %37 : vector<32x128xbf16> to vector<1x32x128xbf16>
    tpu.vector_store %arg6[%c0_12, %c0_13, %c0_14], %40 {strides = array<i32>} : memref<1x32x128xbf16, #tpu.memory_space<vmem>>, vector<1x32x128xbf16>,
    return
  }
  func.func @transform_0(%arg0: i32, %arg1: i32) -> (i32, i32, i32) {
    %c0_i32 = arith.constant 0 : i32
    %c0_i32_0 = arith.constant 0 : i32
    return %arg0, %c0_i32, %arg1 : i32, i32, i32
  }
  func.func @transform_1(%arg0: i32, %arg1: i32) -> (i32, i32, i32) {
    %c1_i32 = arith.constant 1 : i32
    %0 = arith.addi %arg1, %c1_i32 : i32
    %c1_i32_0 = arith.constant 1 : i32
    %1 = arith.muli %0, %c1_i32_0 : i32
    %c0_i32 = arith.constant 0 : i32
    %c0_i32_1 = arith.constant 0 : i32
    return %arg0, %c0_i32, %1 : i32, i32, i32
  }
  func.func @transform_2(%arg0: i32, %arg1: i32) -> (i32, i32) {
    %c0_i32 = arith.constant 0 : i32
    %c0_i32_0 = arith.constant 0 : i32
    %c0_i32_1 = arith.constant 0 : i32
    return %c0_i32, %c0_i32_0 : i32, i32
  }
  func.func @transform_3(%arg0: i32, %arg1: i32) -> (i32, i32) {
    %c0_i32 = arith.constant 0 : i32
    %c0_i32_0 = arith.constant 0 : i32
    %c0_i32_1 = arith.constant 0 : i32
    return %c0_i32, %c0_i32_0 : i32, i32
  }
  func.func @transform_4(%arg0: i32, %arg1: i32) -> (i32, i32, i32) {
    %c0_i32 = arith.constant 0 : i32
    %c0_i32_0 = arith.constant 0 : i32
    return %arg0, %c0_i32, %arg1 : i32, i32, i32
  }
}

module attributes {stable_mosaic.version = 11 : i64} {
  func.func @_fused_conv_kernel(%arg0: i32, %arg1: i32, %arg2: memref<1x32x128xbf16, #tpu.memory_space<vmem>>, %arg3: memref<1x32x128xbf16, #tpu.memory_space<vmem>>, %arg4: memref<32x480xbf16, #tpu.memory_space<vmem>>, %arg5: memref<32x2xf32, #tpu.memory_space<vmem>>, %arg6: memref<1x32x128xbf16, #tpu.memory_space<vmem>>) attributes {dimension_semantics = [#tpu.dimension_semantics<parallel>, #tpu.dimension_semantics<parallel>], iteration_bounds = array<i64: 2, 1>, scalar_prefetch = 0 : i64, scratch_operands = 0 : i64, tpu.core_type = #tpu.core_type<tc>, window_params = [{transform_indices = @transform_0, window_bounds = array<i64: 1, 32, 128>}, {transform_indices = @transform_1, window_bounds = array<i64: 1, 32, 128>}, {pipeline_mode = #tpu.pipeline_mode<synchronous>, transform_indices = @transform_2, window_bounds = array<i64: 32, 480>}, {pipeline_mode = #tpu.pipeline_mode<synchronous>, transform_indices = @transform_3, window_bounds = array<i64: 32, 2>}, {transform_indices = @transform_4, window_bounds = array<i64: 1, 32, 128>}]} {
    %cst = arith.constant 0.000000e+00 : f32
    %0 = vector.broadcast %cst : f32 to vector<32x128xf32>
    %c0 = arith.constant 0 : index
    %c0_0 = arith.constant 0 : index
    %c0_1 = arith.constant 0 : index
    %1 = vector.load %arg2[%c0, %c0_0, %c0_1] : memref<1x32x128xbf16, #tpu.memory_space<vmem>>, vector<1x32x128xbf16>
    %2 = vector.shape_cast %1 : vector<1x32x128xbf16> to vector<32x128xbf16>
    %c0_2 = arith.constant 0 : index
    %c0_3 = arith.constant 0 : index
    %c0_4 = arith.constant 0 : index
    %3 = vector.load %arg3[%c0_2, %c0_3, %c0_4] : memref<1x32x128xbf16, #tpu.memory_space<vmem>>, vector<1x32x128xbf16>
    %4 = vector.shape_cast %3 : vector<1x32x128xbf16> to vector<32x128xbf16>
    %5 = tpu.concatenate %2, %4 in 1 : vector<32x128xbf16>, vector<32x128xbf16> -> vector<32x256xbf16>
    %6 = vector.extract_strided_slice %5 {offsets = [0, 0], sizes = [32, 128], strides = [1, 1]} : vector<32x256xbf16> to vector<32x128xbf16>
    %7 = vector.extract_strided_slice %5 {offsets = [0, 1], sizes = [32, 128], strides = [1, 1]} : vector<32x256xbf16> to vector<32x128xbf16>
    %8 = vector.extract_strided_slice %5 {offsets = [0, 2], sizes = [32, 128], strides = [1, 1]} : vector<32x256xbf16> to vector<32x128xbf16>
    %9 = vector.extract_strided_slice %5 {offsets = [0, 3], sizes = [32, 128], strides = [1, 1]} : vector<32x256xbf16> to vector<32x128xbf16>
    %10 = vector.extract_strided_slice %5 {offsets = [0, 4], sizes = [32, 128], strides = [1, 1]} : vector<32x256xbf16> to vector<32x128xbf16>
    %11 = vector.extract_strided_slice %5 {offsets = [0, 5], sizes = [32, 128], strides = [1, 1]} : vector<32x256xbf16> to vector<32x128xbf16>
    %12 = vector.extract_strided_slice %5 {offsets = [0, 6], sizes = [32, 128], strides = [1, 1]} : vector<32x256xbf16> to vector<32x128xbf16>
    %13 = vector.extract_strided_slice %5 {offsets = [0, 7], sizes = [32, 128], strides = [1, 1]} : vector<32x256xbf16> to vector<32x128xbf16>
    %14 = vector.extract_strided_slice %5 {offsets = [0, 8], sizes = [32, 128], strides = [1, 1]} : vector<32x256xbf16> to vector<32x128xbf16>
    %15 = vector.extract_strided_slice %5 {offsets = [0, 9], sizes = [32, 128], strides = [1, 1]} : vector<32x256xbf16> to vector<32x128xbf16>
    %16 = vector.extract_strided_slice %5 {offsets = [0, 10], sizes = [32, 128], strides = [1, 1]} : vector<32x256xbf16> to vector<32x128xbf16>
    %17 = vector.extract_strided_slice %5 {offsets = [0, 11], sizes = [32, 128], strides = [1, 1]} : vector<32x256xbf16> to vector<32x128xbf16>
    %18 = vector.extract_strided_slice %5 {offsets = [0, 12], sizes = [32, 128], strides = [1, 1]} : vector<32x256xbf16> to vector<32x128xbf16>
    %19 = vector.extract_strided_slice %5 {offsets = [0, 13], sizes = [32, 128], strides = [1, 1]} : vector<32x256xbf16> to vector<32x128xbf16>
    %20 = vector.extract_strided_slice %5 {offsets = [0, 14], sizes = [32, 128], strides = [1, 1]} : vector<32x256xbf16> to vector<32x128xbf16>
    %21 = tpu.concatenate %6, %7, %8, %9, %10, %11, %12, %13, %14, %15, %16, %17, %18, %19, %20 in 0 : vector<32x128xbf16>, vector<32x128xbf16>, vector<32x128xbf16>, vector<32x128xbf16>, vector<32x128xbf16>, vector<32x128xbf16>, vector<32x128xbf16>, vector<32x128xbf16>, vector<32x128xbf16>, vector<32x128xbf16>, vector<32x128xbf16>, vector<32x128xbf16>, vector<32x128xbf16>, vector<32x128xbf16>, vector<32x128xbf16> -> vector<480x128xbf16>
    %c0_5 = arith.constant 0 : index
    %c0_6 = arith.constant 0 : index
    %22 = vector.load %arg4[%c0_5, %c0_6] : memref<32x480xbf16, #tpu.memory_space<vmem>>, vector<32x480xbf16>
    %cst_7 = arith.constant dense<0.000000e+00> : vector<32x128xf32>
    %23 = tpu.matmul %22, %21, %cst_7 {dimension_numbers = #tpu.dot_dimension_numbers<[1], [0], [0], [1], [0, 0, 1, 1], [], []>} : vector<32x480xbf16>, vector<480x128xbf16>, vector<32x128xf32> -> vector<32x128xf32>
    %24 = arith.addf %0, %23 : vector<32x128xf32>
    %c0_8 = arith.constant 0 : index
    %c0_9 = arith.constant 0 : index
    %25 = vector.load %arg5[%c0_8, %c0_9] : memref<32x2xf32, #tpu.memory_space<vmem>>, vector<32x2xf32>
    %26 = vector.extract_strided_slice %25 {offsets = [0, 0], sizes = [32, 1], strides = [1, 1]} : vector<32x2xf32> to vector<32x1xf32>
    %27 = vector.broadcast %26 : vector<32x1xf32> to vector<32x128xf32>
    %28 = arith.mulf %24, %27 : vector<32x128xf32>
    %29 = vector.extract_strided_slice %25 {offsets = [0, 1], sizes = [32, 1], strides = [1, 1]} : vector<32x2xf32> to vector<32x1xf32>
    %30 = vector.broadcast %29 : vector<32x1xf32> to vector<32x128xf32>
    %31 = arith.addf %28, %30 : vector<32x128xf32>
    %cst_10 = arith.constant 0.000000e+00 : f32
    %32 = vector.broadcast %cst_10 : f32 to vector<32x128xf32>
    %33 = arith.cmpf oge, %31, %32 : vector<32x128xf32>
    %cst_11 = arith.constant 1.000000e-01 : f32
    %34 = vector.broadcast %cst_11 : f32 to vector<32x128xf32>
    %35 = arith.mulf %34, %31 : vector<32x128xf32>
    %36 = arith.select %33, %31, %35 : vector<32x128xi1>, vector<32x128xf32>
    %37 = arith.truncf %36 : vector<32x128xf32> to vector<32x128xbf16>
    %c0_12 = arith.constant 0 : index
    %c0_13 = arith.constant 0 : index
    %c0_14 = arith.constant 0 : index
    %38 = vector.load %arg6[%c0_12, %c0_13, %c0_14] : memref<1x32x128xbf16, #tpu.memory_space<vmem>>, vector<1x32x128xbf16>
    %39 = vector.shape_cast %38 : vector<1x32x128xbf16> to vector<32x128xbf16>
    %40 = vector.shape_cast %37 : vector<32x128xbf16> to vector<1x32x128xbf16>
    tpu.vector_store %arg6[%c0_12, %c0_13, %c0_14], %40 {strides = array<i32>} : memref<1x32x128xbf16, #tpu.memory_space<vmem>>, vector<1x32x128xbf16>,
    return
  }
  func.func @transform_0(%arg0: i32, %arg1: i32) -> (i32, i32, i32) {
    %c0_i32 = arith.constant 0 : i32
    %c0_i32_0 = arith.constant 0 : i32
    return %arg0, %c0_i32, %arg1 : i32, i32, i32
  }
  func.func @transform_1(%arg0: i32, %arg1: i32) -> (i32, i32, i32) {
    %c1_i32 = arith.constant 1 : i32
    %0 = arith.addi %arg1, %c1_i32 : i32
    %c1_i32_0 = arith.constant 1 : i32
    %1 = arith.muli %0, %c1_i32_0 : i32
    %c0_i32 = arith.constant 0 : i32
    %c0_i32_1 = arith.constant 0 : i32
    return %arg0, %c0_i32, %1 : i32, i32, i32
  }
  func.func @transform_2(%arg0: i32, %arg1: i32) -> (i32, i32) {
    %c0_i32 = arith.constant 0 : i32
    %c0_i32_0 = arith.constant 0 : i32
    %c0_i32_1 = arith.constant 0 : i32
    return %c0_i32, %c0_i32_0 : i32, i32
  }
  func.func @transform_3(%arg0: i32, %arg1: i32) -> (i32, i32) {
    %c0_i32 = arith.constant 0 : i32
    %c0_i32_0 = arith.constant 0 : i32
    %c0_i32_1 = arith.constant 0 : i32
    return %c0_i32, %c0_i32_0 : i32, i32
  }
  func.func @transform_4(%arg0: i32, %arg1: i32) -> (i32, i32, i32) {
    %c0_i32 = arith.constant 0 : i32
    %c0_i32_0 = arith.constant 0 : i32
    return %arg0, %c0_i32, %arg1 : i32, i32, i32
  }
}

module attributes {stable_mosaic.version = 11 : i64} {
  func.func @_fused_conv_kernel(%arg0: i32, %arg1: i32, %arg2: memref<1x32x128xbf16, #tpu.memory_space<vmem>>, %arg3: memref<1x32x128xbf16, #tpu.memory_space<vmem>>, %arg4: memref<1x32x128xbf16, #tpu.memory_space<vmem>>, %arg5: memref<1x32x128xbf16, #tpu.memory_space<vmem>>, %arg6: memref<32x160xbf16, #tpu.memory_space<vmem>>, %arg7: memref<32x160xbf16, #tpu.memory_space<vmem>>, %arg8: memref<32x2xf32, #tpu.memory_space<vmem>>, %arg9: memref<1x32x128xbf16, #tpu.memory_space<vmem>>) attributes {dimension_semantics = [#tpu.dimension_semantics<parallel>, #tpu.dimension_semantics<parallel>], iteration_bounds = array<i64: 2, 1>, scalar_prefetch = 0 : i64, scratch_operands = 0 : i64, tpu.core_type = #tpu.core_type<tc>, window_params = [{transform_indices = @transform_0, window_bounds = array<i64: 1, 32, 128>}, {transform_indices = @transform_1, window_bounds = array<i64: 1, 32, 128>}, {transform_indices = @transform_2, window_bounds = array<i64: 1, 32, 128>}, {transform_indices = @transform_3, window_bounds = array<i64: 1, 32, 128>}, {pipeline_mode = #tpu.pipeline_mode<synchronous>, transform_indices = @transform_4, window_bounds = array<i64: 32, 160>}, {pipeline_mode = #tpu.pipeline_mode<synchronous>, transform_indices = @transform_5, window_bounds = array<i64: 32, 160>}, {pipeline_mode = #tpu.pipeline_mode<synchronous>, transform_indices = @transform_6, window_bounds = array<i64: 32, 2>}, {transform_indices = @transform_7, window_bounds = array<i64: 1, 32, 128>}]} {
    %cst = arith.constant 0.000000e+00 : f32
    %0 = vector.broadcast %cst : f32 to vector<32x128xf32>
    %c0 = arith.constant 0 : index
    %c0_0 = arith.constant 0 : index
    %c0_1 = arith.constant 0 : index
    %1 = vector.load %arg2[%c0, %c0_0, %c0_1] : memref<1x32x128xbf16, #tpu.memory_space<vmem>>, vector<1x32x128xbf16>
    %2 = vector.shape_cast %1 : vector<1x32x128xbf16> to vector<32x128xbf16>
    %c0_2 = arith.constant 0 : index
    %c0_3 = arith.constant 0 : index
    %c0_4 = arith.constant 0 : index
    %3 = vector.load %arg3[%c0_2, %c0_3, %c0_4] : memref<1x32x128xbf16, #tpu.memory_space<vmem>>, vector<1x32x128xbf16>
    %4 = vector.shape_cast %3 : vector<1x32x128xbf16> to vector<32x128xbf16>
    %5 = tpu.concatenate %2, %4 in 1 : vector<32x128xbf16>, vector<32x128xbf16> -> vector<32x256xbf16>
    %6 = vector.extract_strided_slice %5 {offsets = [0, 0], sizes = [32, 128], strides = [1, 1]} : vector<32x256xbf16> to vector<32x128xbf16>
    %7 = vector.extract_strided_slice %5 {offsets = [0, 1], sizes = [32, 128], strides = [1, 1]} : vector<32x256xbf16> to vector<32x128xbf16>
    %8 = vector.extract_strided_slice %5 {offsets = [0, 2], sizes = [32, 128], strides = [1, 1]} : vector<32x256xbf16> to vector<32x128xbf16>
    %9 = vector.extract_strided_slice %5 {offsets = [0, 3], sizes = [32, 128], strides = [1, 1]} : vector<32x256xbf16> to vector<32x128xbf16>
    %10 = vector.extract_strided_slice %5 {offsets = [0, 4], sizes = [32, 128], strides = [1, 1]} : vector<32x256xbf16> to vector<32x128xbf16>
    %11 = tpu.concatenate %6, %7, %8, %9, %10 in 0 : vector<32x128xbf16>, vector<32x128xbf16>, vector<32x128xbf16>, vector<32x128xbf16>, vector<32x128xbf16> -> vector<160x128xbf16>
    %c0_5 = arith.constant 0 : index
    %c0_6 = arith.constant 0 : index
    %12 = vector.load %arg6[%c0_5, %c0_6] : memref<32x160xbf16, #tpu.memory_space<vmem>>, vector<32x160xbf16>
    %cst_7 = arith.constant dense<0.000000e+00> : vector<32x128xf32>
    %13 = tpu.matmul %12, %11, %cst_7 {dimension_numbers = #tpu.dot_dimension_numbers<[1], [0], [0], [1], [0, 0, 1, 1], [], []>} : vector<32x160xbf16>, vector<160x128xbf16>, vector<32x128xf32> -> vector<32x128xf32>
    %14 = arith.addf %0, %13 : vector<32x128xf32>
    %c0_8 = arith.constant 0 : index
    %c0_9 = arith.constant 0 : index
    %c0_10 = arith.constant 0 : index
    %15 = vector.load %arg4[%c0_8, %c0_9, %c0_10] : memref<1x32x128xbf16, #tpu.memory_space<vmem>>, vector<1x32x128xbf16>
    %16 = vector.shape_cast %15 : vector<1x32x128xbf16> to vector<32x128xbf16>
    %c0_11 = arith.constant 0 : index
    %c0_12 = arith.constant 0 : index
    %c0_13 = arith.constant 0 : index
    %17 = vector.load %arg5[%c0_11, %c0_12, %c0_13] : memref<1x32x128xbf16, #tpu.memory_space<vmem>>, vector<1x32x128xbf16>
    %18 = vector.shape_cast %17 : vector<1x32x128xbf16> to vector<32x128xbf16>
    %19 = tpu.concatenate %16, %18 in 1 : vector<32x128xbf16>, vector<32x128xbf16> -> vector<32x256xbf16>
    %20 = vector.extract_strided_slice %19 {offsets = [0, 0], sizes = [32, 128], strides = [1, 1]} : vector<32x256xbf16> to vector<32x128xbf16>
    %21 = vector.extract_strided_slice %19 {offsets = [0, 1], sizes = [32, 128], strides = [1, 1]} : vector<32x256xbf16> to vector<32x128xbf16>
    %22 = vector.extract_strided_slice %19 {offsets = [0, 2], sizes = [32, 128], strides = [1, 1]} : vector<32x256xbf16> to vector<32x128xbf16>
    %23 = vector.extract_strided_slice %19 {offsets = [0, 3], sizes = [32, 128], strides = [1, 1]} : vector<32x256xbf16> to vector<32x128xbf16>
    %24 = vector.extract_strided_slice %19 {offsets = [0, 4], sizes = [32, 128], strides = [1, 1]} : vector<32x256xbf16> to vector<32x128xbf16>
    %25 = tpu.concatenate %20, %21, %22, %23, %24 in 0 : vector<32x128xbf16>, vector<32x128xbf16>, vector<32x128xbf16>, vector<32x128xbf16>, vector<32x128xbf16> -> vector<160x128xbf16>
    %c0_14 = arith.constant 0 : index
    %c0_15 = arith.constant 0 : index
    %26 = vector.load %arg7[%c0_14, %c0_15] : memref<32x160xbf16, #tpu.memory_space<vmem>>, vector<32x160xbf16>
    %cst_16 = arith.constant dense<0.000000e+00> : vector<32x128xf32>
    %27 = tpu.matmul %26, %25, %cst_16 {dimension_numbers = #tpu.dot_dimension_numbers<[1], [0], [0], [1], [0, 0, 1, 1], [], []>} : vector<32x160xbf16>, vector<160x128xbf16>, vector<32x128xf32> -> vector<32x128xf32>
    %28 = arith.addf %14, %27 : vector<32x128xf32>
    %c0_17 = arith.constant 0 : index
    %c0_18 = arith.constant 0 : index
    %29 = vector.load %arg8[%c0_17, %c0_18] : memref<32x2xf32, #tpu.memory_space<vmem>>, vector<32x2xf32>
    %30 = vector.extract_strided_slice %29 {offsets = [0, 0], sizes = [32, 1], strides = [1, 1]} : vector<32x2xf32> to vector<32x1xf32>
    %31 = vector.broadcast %30 : vector<32x1xf32> to vector<32x128xf32>
    %32 = arith.mulf %28, %31 : vector<32x128xf32>
    %33 = vector.extract_strided_slice %29 {offsets = [0, 1], sizes = [32, 1], strides = [1, 1]} : vector<32x2xf32> to vector<32x1xf32>
    %34 = vector.broadcast %33 : vector<32x1xf32> to vector<32x128xf32>
    %35 = arith.addf %32, %34 : vector<32x128xf32>
    %cst_19 = arith.constant 0.000000e+00 : f32
    %36 = vector.broadcast %cst_19 : f32 to vector<32x128xf32>
    %37 = arith.cmpf oge, %35, %36 : vector<32x128xf32>
    %cst_20 = arith.constant 1.000000e-01 : f32
    %38 = vector.broadcast %cst_20 : f32 to vector<32x128xf32>
    %39 = arith.mulf %38, %35 : vector<32x128xf32>
    %40 = arith.select %37, %35, %39 : vector<32x128xi1>, vector<32x128xf32>
    %41 = arith.truncf %40 : vector<32x128xf32> to vector<32x128xbf16>
    %c0_21 = arith.constant 0 : index
    %c0_22 = arith.constant 0 : index
    %c0_23 = arith.constant 0 : index
    %42 = vector.load %arg9[%c0_21, %c0_22, %c0_23] : memref<1x32x128xbf16, #tpu.memory_space<vmem>>, vector<1x32x128xbf16>
    %43 = vector.shape_cast %42 : vector<1x32x128xbf16> to vector<32x128xbf16>
    %44 = vector.shape_cast %41 : vector<32x128xbf16> to vector<1x32x128xbf16>
    tpu.vector_store %arg9[%c0_21, %c0_22, %c0_23], %44 {strides = array<i32>} : memref<1x32x128xbf16, #tpu.memory_space<vmem>>, vector<1x32x128xbf16>,
    return
  }
  func.func @transform_0(%arg0: i32, %arg1: i32) -> (i32, i32, i32) {
    %c0_i32 = arith.constant 0 : i32
    %c0_i32_0 = arith.constant 0 : i32
    return %arg0, %c0_i32, %arg1 : i32, i32, i32
  }
  func.func @transform_1(%arg0: i32, %arg1: i32) -> (i32, i32, i32) {
    %c1_i32 = arith.constant 1 : i32
    %0 = arith.addi %arg1, %c1_i32 : i32
    %c1_i32_0 = arith.constant 1 : i32
    %1 = arith.muli %0, %c1_i32_0 : i32
    %c0_i32 = arith.constant 0 : i32
    %c0_i32_1 = arith.constant 0 : i32
    return %arg0, %c0_i32, %1 : i32, i32, i32
  }
  func.func @transform_2(%arg0: i32, %arg1: i32) -> (i32, i32, i32) {
    %c0_i32 = arith.constant 0 : i32
    %c0_i32_0 = arith.constant 0 : i32
    return %arg0, %c0_i32, %arg1 : i32, i32, i32
  }
  func.func @transform_3(%arg0: i32, %arg1: i32) -> (i32, i32, i32) {
    %c1_i32 = arith.constant 1 : i32
    %0 = arith.addi %arg1, %c1_i32 : i32
    %c1_i32_0 = arith.constant 1 : i32
    %1 = arith.muli %0, %c1_i32_0 : i32
    %c0_i32 = arith.constant 0 : i32
    %c0_i32_1 = arith.constant 0 : i32
    return %arg0, %c0_i32, %1 : i32, i32, i32
  }
  func.func @transform_4(%arg0: i32, %arg1: i32) -> (i32, i32) {
    %c0_i32 = arith.constant 0 : i32
    %c0_i32_0 = arith.constant 0 : i32
    %c0_i32_1 = arith.constant 0 : i32
    return %c0_i32, %c0_i32_0 : i32, i32
  }
  func.func @transform_5(%arg0: i32, %arg1: i32) -> (i32, i32) {
    %c0_i32 = arith.constant 0 : i32
    %c0_i32_0 = arith.constant 0 : i32
    %c0_i32_1 = arith.constant 0 : i32
    return %c0_i32, %c0_i32_0 : i32, i32
  }
  func.func @transform_6(%arg0: i32, %arg1: i32) -> (i32, i32) {
    %c0_i32 = arith.constant 0 : i32
    %c0_i32_0 = arith.constant 0 : i32
    %c0_i32_1 = arith.constant 0 : i32
    return %c0_i32, %c0_i32_0 : i32, i32
  }
  func.func @transform_7(%arg0: i32, %arg1: i32) -> (i32, i32, i32) {
    %c0_i32 = arith.constant 0 : i32
    %c0_i32_0 = arith.constant 0 : i32
    return %arg0, %c0_i32, %arg1 : i32, i32, i32
  }
}

module attributes {stable_mosaic.version = 11 : i64} {
  func.func @_fused_conv_kernel(%arg0: i32, %arg1: i32, %arg2: memref<1x32x128xbf16, #tpu.memory_space<vmem>>, %arg3: memref<1x32x128xbf16, #tpu.memory_space<vmem>>, %arg4: memref<1x24x128xbf16, #tpu.memory_space<vmem>>, %arg5: memref<1x24x128xbf16, #tpu.memory_space<vmem>>, %arg6: memref<24x160xbf16, #tpu.memory_space<vmem>>, %arg7: memref<24x120xbf16, #tpu.memory_space<vmem>>, %arg8: memref<24x2xf32, #tpu.memory_space<vmem>>, %arg9: memref<1x24x128xbf16, #tpu.memory_space<vmem>>) attributes {dimension_semantics = [#tpu.dimension_semantics<parallel>, #tpu.dimension_semantics<parallel>], iteration_bounds = array<i64: 2, 1>, scalar_prefetch = 0 : i64, scratch_operands = 0 : i64, tpu.core_type = #tpu.core_type<tc>, window_params = [{transform_indices = @transform_0, window_bounds = array<i64: 1, 32, 128>}, {transform_indices = @transform_1, window_bounds = array<i64: 1, 32, 128>}, {transform_indices = @transform_2, window_bounds = array<i64: 1, 24, 128>}, {transform_indices = @transform_3, window_bounds = array<i64: 1, 24, 128>}, {pipeline_mode = #tpu.pipeline_mode<synchronous>, transform_indices = @transform_4, window_bounds = array<i64: 24, 160>}, {pipeline_mode = #tpu.pipeline_mode<synchronous>, transform_indices = @transform_5, window_bounds = array<i64: 24, 120>}, {pipeline_mode = #tpu.pipeline_mode<synchronous>, transform_indices = @transform_6, window_bounds = array<i64: 24, 2>}, {transform_indices = @transform_7, window_bounds = array<i64: 1, 24, 128>}]} {
    %cst = arith.constant 0.000000e+00 : f32
    %0 = vector.broadcast %cst : f32 to vector<24x128xf32>
    %c0 = arith.constant 0 : index
    %c0_0 = arith.constant 0 : index
    %c0_1 = arith.constant 0 : index
    %1 = vector.load %arg2[%c0, %c0_0, %c0_1] : memref<1x32x128xbf16, #tpu.memory_space<vmem>>, vector<1x32x128xbf16>
    %2 = vector.shape_cast %1 : vector<1x32x128xbf16> to vector<32x128xbf16>
    %c0_2 = arith.constant 0 : index
    %c0_3 = arith.constant 0 : index
    %c0_4 = arith.constant 0 : index
    %3 = vector.load %arg3[%c0_2, %c0_3, %c0_4] : memref<1x32x128xbf16, #tpu.memory_space<vmem>>, vector<1x32x128xbf16>
    %4 = vector.shape_cast %3 : vector<1x32x128xbf16> to vector<32x128xbf16>
    %5 = tpu.concatenate %2, %4 in 1 : vector<32x128xbf16>, vector<32x128xbf16> -> vector<32x256xbf16>
    %6 = vector.extract_strided_slice %5 {offsets = [0, 0], sizes = [32, 128], strides = [1, 1]} : vector<32x256xbf16> to vector<32x128xbf16>
    %7 = vector.extract_strided_slice %5 {offsets = [0, 1], sizes = [32, 128], strides = [1, 1]} : vector<32x256xbf16> to vector<32x128xbf16>
    %8 = vector.extract_strided_slice %5 {offsets = [0, 2], sizes = [32, 128], strides = [1, 1]} : vector<32x256xbf16> to vector<32x128xbf16>
    %9 = vector.extract_strided_slice %5 {offsets = [0, 3], sizes = [32, 128], strides = [1, 1]} : vector<32x256xbf16> to vector<32x128xbf16>
    %10 = vector.extract_strided_slice %5 {offsets = [0, 4], sizes = [32, 128], strides = [1, 1]} : vector<32x256xbf16> to vector<32x128xbf16>
    %11 = tpu.concatenate %6, %7, %8, %9, %10 in 0 : vector<32x128xbf16>, vector<32x128xbf16>, vector<32x128xbf16>, vector<32x128xbf16>, vector<32x128xbf16> -> vector<160x128xbf16>
    %c0_5 = arith.constant 0 : index
    %c0_6 = arith.constant 0 : index
    %12 = vector.load %arg6[%c0_5, %c0_6] : memref<24x160xbf16, #tpu.memory_space<vmem>>, vector<24x160xbf16>
    %cst_7 = arith.constant dense<0.000000e+00> : vector<24x128xf32>
    %13 = tpu.matmul %12, %11, %cst_7 {dimension_numbers = #tpu.dot_dimension_numbers<[1], [0], [0], [1], [0, 0, 1, 1], [], []>} : vector<24x160xbf16>, vector<160x128xbf16>, vector<24x128xf32> -> vector<24x128xf32>
    %14 = arith.addf %0, %13 : vector<24x128xf32>
    %c0_8 = arith.constant 0 : index
    %c0_9 = arith.constant 0 : index
    %c0_10 = arith.constant 0 : index
    %15 = vector.load %arg4[%c0_8, %c0_9, %c0_10] : memref<1x24x128xbf16, #tpu.memory_space<vmem>>, vector<1x24x128xbf16>
    %16 = vector.shape_cast %15 : vector<1x24x128xbf16> to vector<24x128xbf16>
    %c0_11 = arith.constant 0 : index
    %c0_12 = arith.constant 0 : index
    %c0_13 = arith.constant 0 : index
    %17 = vector.load %arg5[%c0_11, %c0_12, %c0_13] : memref<1x24x128xbf16, #tpu.memory_space<vmem>>, vector<1x24x128xbf16>
    %18 = vector.shape_cast %17 : vector<1x24x128xbf16> to vector<24x128xbf16>
    %19 = tpu.concatenate %16, %18 in 1 : vector<24x128xbf16>, vector<24x128xbf16> -> vector<24x256xbf16>
    %20 = vector.extract_strided_slice %19 {offsets = [0, 0], sizes = [24, 128], strides = [1, 1]} : vector<24x256xbf16> to vector<24x128xbf16>
    %21 = vector.extract_strided_slice %19 {offsets = [0, 1], sizes = [24, 128], strides = [1, 1]} : vector<24x256xbf16> to vector<24x128xbf16>
    %22 = vector.extract_strided_slice %19 {offsets = [0, 2], sizes = [24, 128], strides = [1, 1]} : vector<24x256xbf16> to vector<24x128xbf16>
    %23 = vector.extract_strided_slice %19 {offsets = [0, 3], sizes = [24, 128], strides = [1, 1]} : vector<24x256xbf16> to vector<24x128xbf16>
    %24 = vector.extract_strided_slice %19 {offsets = [0, 4], sizes = [24, 128], strides = [1, 1]} : vector<24x256xbf16> to vector<24x128xbf16>
    %25 = tpu.concatenate %20, %21, %22, %23, %24 in 0 : vector<24x128xbf16>, vector<24x128xbf16>, vector<24x128xbf16>, vector<24x128xbf16>, vector<24x128xbf16> -> vector<120x128xbf16>
    %c0_14 = arith.constant 0 : index
    %c0_15 = arith.constant 0 : index
    %26 = vector.load %arg7[%c0_14, %c0_15] : memref<24x120xbf16, #tpu.memory_space<vmem>>, vector<24x120xbf16>
    %cst_16 = arith.constant dense<0.000000e+00> : vector<24x128xf32>
    %27 = tpu.matmul %26, %25, %cst_16 {dimension_numbers = #tpu.dot_dimension_numbers<[1], [0], [0], [1], [0, 0, 1, 1], [], []>} : vector<24x120xbf16>, vector<120x128xbf16>, vector<24x128xf32> -> vector<24x128xf32>
    %28 = arith.addf %14, %27 : vector<24x128xf32>
    %c0_17 = arith.constant 0 : index
    %c0_18 = arith.constant 0 : index
    %29 = vector.load %arg8[%c0_17, %c0_18] : memref<24x2xf32, #tpu.memory_space<vmem>>, vector<24x2xf32>
    %30 = vector.extract_strided_slice %29 {offsets = [0, 0], sizes = [24, 1], strides = [1, 1]} : vector<24x2xf32> to vector<24x1xf32>
    %31 = vector.broadcast %30 : vector<24x1xf32> to vector<24x128xf32>
    %32 = arith.mulf %28, %31 : vector<24x128xf32>
    %33 = vector.extract_strided_slice %29 {offsets = [0, 1], sizes = [24, 1], strides = [1, 1]} : vector<24x2xf32> to vector<24x1xf32>
    %34 = vector.broadcast %33 : vector<24x1xf32> to vector<24x128xf32>
    %35 = arith.addf %32, %34 : vector<24x128xf32>
    %cst_19 = arith.constant 0.000000e+00 : f32
    %36 = vector.broadcast %cst_19 : f32 to vector<24x128xf32>
    %37 = arith.cmpf oge, %35, %36 : vector<24x128xf32>
    %cst_20 = arith.constant 1.000000e-01 : f32
    %38 = vector.broadcast %cst_20 : f32 to vector<24x128xf32>
    %39 = arith.mulf %38, %35 : vector<24x128xf32>
    %40 = arith.select %37, %35, %39 : vector<24x128xi1>, vector<24x128xf32>
    %41 = arith.truncf %40 : vector<24x128xf32> to vector<24x128xbf16>
    %c0_21 = arith.constant 0 : index
    %c0_22 = arith.constant 0 : index
    %c0_23 = arith.constant 0 : index
    %42 = vector.load %arg9[%c0_21, %c0_22, %c0_23] : memref<1x24x128xbf16, #tpu.memory_space<vmem>>, vector<1x24x128xbf16>
    %43 = vector.shape_cast %42 : vector<1x24x128xbf16> to vector<24x128xbf16>
    %44 = vector.shape_cast %41 : vector<24x128xbf16> to vector<1x24x128xbf16>
    tpu.vector_store %arg9[%c0_21, %c0_22, %c0_23], %44 {strides = array<i32>} : memref<1x24x128xbf16, #tpu.memory_space<vmem>>, vector<1x24x128xbf16>,
    return
  }
  func.func @transform_0(%arg0: i32, %arg1: i32) -> (i32, i32, i32) {
    %c0_i32 = arith.constant 0 : i32
    %c0_i32_0 = arith.constant 0 : i32
    return %arg0, %c0_i32, %arg1 : i32, i32, i32
  }
  func.func @transform_1(%arg0: i32, %arg1: i32) -> (i32, i32, i32) {
    %c1_i32 = arith.constant 1 : i32
    %0 = arith.addi %arg1, %c1_i32 : i32
    %c1_i32_0 = arith.constant 1 : i32
    %1 = arith.muli %0, %c1_i32_0 : i32
    %c0_i32 = arith.constant 0 : i32
    %c0_i32_1 = arith.constant 0 : i32
    return %arg0, %c0_i32, %1 : i32, i32, i32
  }
  func.func @transform_2(%arg0: i32, %arg1: i32) -> (i32, i32, i32) {
    %c0_i32 = arith.constant 0 : i32
    %c0_i32_0 = arith.constant 0 : i32
    return %arg0, %c0_i32, %arg1 : i32, i32, i32
  }
  func.func @transform_3(%arg0: i32, %arg1: i32) -> (i32, i32, i32) {
    %c1_i32 = arith.constant 1 : i32
    %0 = arith.addi %arg1, %c1_i32 : i32
    %c1_i32_0 = arith.constant 1 : i32
    %1 = arith.muli %0, %c1_i32_0 : i32
    %c0_i32 = arith.constant 0 : i32
    %c0_i32_1 = arith.constant 0 : i32
    return %arg0, %c0_i32, %1 : i32, i32, i32
  }
  func.func @transform_4(%arg0: i32, %arg1: i32) -> (i32, i32) {
    %c0_i32 = arith.constant 0 : i32
    %c0_i32_0 = arith.constant 0 : i32
    %c0_i32_1 = arith.constant 0 : i32
    return %c0_i32, %c0_i32_0 : i32, i32
  }
  func.func @transform_5(%arg0: i32, %arg1: i32) -> (i32, i32) {
    %c0_i32 = arith.constant 0 : i32
    %c0_i32_0 = arith.constant 0 : i32
    %c0_i32_1 = arith.constant 0 : i32
    return %c0_i32, %c0_i32_0 : i32, i32
  }
  func.func @transform_6(%arg0: i32, %arg1: i32) -> (i32, i32) {
    %c0_i32 = arith.constant 0 : i32
    %c0_i32_0 = arith.constant 0 : i32
    %c0_i32_1 = arith.constant 0 : i32
    return %c0_i32, %c0_i32_0 : i32, i32
  }
  func.func @transform_7(%arg0: i32, %arg1: i32) -> (i32, i32, i32) {
    %c0_i32 = arith.constant 0 : i32
    %c0_i32_0 = arith.constant 0 : i32
    return %arg0, %c0_i32, %arg1 : i32, i32, i32
  }
}

module attributes {stable_mosaic.version = 11 : i64} {
  func.func @_fused_conv_kernel(%arg0: i32, %arg1: i32, %arg2: memref<1x24x128xbf16, #tpu.memory_space<vmem>>, %arg3: memref<1x24x128xbf16, #tpu.memory_space<vmem>>, %arg4: memref<1x16x128xbf16, #tpu.memory_space<vmem>>, %arg5: memref<1x16x128xbf16, #tpu.memory_space<vmem>>, %arg6: memref<16x120xbf16, #tpu.memory_space<vmem>>, %arg7: memref<16x80xbf16, #tpu.memory_space<vmem>>, %arg8: memref<16x2xf32, #tpu.memory_space<vmem>>, %arg9: memref<1x16x128xbf16, #tpu.memory_space<vmem>>) attributes {dimension_semantics = [#tpu.dimension_semantics<parallel>, #tpu.dimension_semantics<parallel>], iteration_bounds = array<i64: 2, 1>, scalar_prefetch = 0 : i64, scratch_operands = 0 : i64, tpu.core_type = #tpu.core_type<tc>, window_params = [{transform_indices = @transform_0, window_bounds = array<i64: 1, 24, 128>}, {transform_indices = @transform_1, window_bounds = array<i64: 1, 24, 128>}, {transform_indices = @transform_2, window_bounds = array<i64: 1, 16, 128>}, {transform_indices = @transform_3, window_bounds = array<i64: 1, 16, 128>}, {pipeline_mode = #tpu.pipeline_mode<synchronous>, transform_indices = @transform_4, window_bounds = array<i64: 16, 120>}, {pipeline_mode = #tpu.pipeline_mode<synchronous>, transform_indices = @transform_5, window_bounds = array<i64: 16, 80>}, {pipeline_mode = #tpu.pipeline_mode<synchronous>, transform_indices = @transform_6, window_bounds = array<i64: 16, 2>}, {transform_indices = @transform_7, window_bounds = array<i64: 1, 16, 128>}]} {
    %cst = arith.constant 0.000000e+00 : f32
    %0 = vector.broadcast %cst : f32 to vector<16x128xf32>
    %c0 = arith.constant 0 : index
    %c0_0 = arith.constant 0 : index
    %c0_1 = arith.constant 0 : index
    %1 = vector.load %arg2[%c0, %c0_0, %c0_1] : memref<1x24x128xbf16, #tpu.memory_space<vmem>>, vector<1x24x128xbf16>
    %2 = vector.shape_cast %1 : vector<1x24x128xbf16> to vector<24x128xbf16>
    %c0_2 = arith.constant 0 : index
    %c0_3 = arith.constant 0 : index
    %c0_4 = arith.constant 0 : index
    %3 = vector.load %arg3[%c0_2, %c0_3, %c0_4] : memref<1x24x128xbf16, #tpu.memory_space<vmem>>, vector<1x24x128xbf16>
    %4 = vector.shape_cast %3 : vector<1x24x128xbf16> to vector<24x128xbf16>
    %5 = tpu.concatenate %2, %4 in 1 : vector<24x128xbf16>, vector<24x128xbf16> -> vector<24x256xbf16>
    %6 = vector.extract_strided_slice %5 {offsets = [0, 0], sizes = [24, 128], strides = [1, 1]} : vector<24x256xbf16> to vector<24x128xbf16>
    %7 = vector.extract_strided_slice %5 {offsets = [0, 1], sizes = [24, 128], strides = [1, 1]} : vector<24x256xbf16> to vector<24x128xbf16>
    %8 = vector.extract_strided_slice %5 {offsets = [0, 2], sizes = [24, 128], strides = [1, 1]} : vector<24x256xbf16> to vector<24x128xbf16>
    %9 = vector.extract_strided_slice %5 {offsets = [0, 3], sizes = [24, 128], strides = [1, 1]} : vector<24x256xbf16> to vector<24x128xbf16>
    %10 = vector.extract_strided_slice %5 {offsets = [0, 4], sizes = [24, 128], strides = [1, 1]} : vector<24x256xbf16> to vector<24x128xbf16>
    %11 = tpu.concatenate %6, %7, %8, %9, %10 in 0 : vector<24x128xbf16>, vector<24x128xbf16>, vector<24x128xbf16>, vector<24x128xbf16>, vector<24x128xbf16> -> vector<120x128xbf16>
    %c0_5 = arith.constant 0 : index
    %c0_6 = arith.constant 0 : index
    %12 = vector.load %arg6[%c0_5, %c0_6] : memref<16x120xbf16, #tpu.memory_space<vmem>>, vector<16x120xbf16>
    %cst_7 = arith.constant dense<0.000000e+00> : vector<16x128xf32>
    %13 = tpu.matmul %12, %11, %cst_7 {dimension_numbers = #tpu.dot_dimension_numbers<[1], [0], [0], [1], [0, 0, 1, 1], [], []>} : vector<16x120xbf16>, vector<120x128xbf16>, vector<16x128xf32> -> vector<16x128xf32>
    %14 = arith.addf %0, %13 : vector<16x128xf32>
    %c0_8 = arith.constant 0 : index
    %c0_9 = arith.constant 0 : index
    %c0_10 = arith.constant 0 : index
    %15 = vector.load %arg4[%c0_8, %c0_9, %c0_10] : memref<1x16x128xbf16, #tpu.memory_space<vmem>>, vector<1x16x128xbf16>
    %16 = vector.shape_cast %15 : vector<1x16x128xbf16> to vector<16x128xbf16>
    %c0_11 = arith.constant 0 : index
    %c0_12 = arith.constant 0 : index
    %c0_13 = arith.constant 0 : index
    %17 = vector.load %arg5[%c0_11, %c0_12, %c0_13] : memref<1x16x128xbf16, #tpu.memory_space<vmem>>, vector<1x16x128xbf16>
    %18 = vector.shape_cast %17 : vector<1x16x128xbf16> to vector<16x128xbf16>
    %19 = tpu.concatenate %16, %18 in 1 : vector<16x128xbf16>, vector<16x128xbf16> -> vector<16x256xbf16>
    %20 = vector.extract_strided_slice %19 {offsets = [0, 0], sizes = [16, 128], strides = [1, 1]} : vector<16x256xbf16> to vector<16x128xbf16>
    %21 = vector.extract_strided_slice %19 {offsets = [0, 1], sizes = [16, 128], strides = [1, 1]} : vector<16x256xbf16> to vector<16x128xbf16>
    %22 = vector.extract_strided_slice %19 {offsets = [0, 2], sizes = [16, 128], strides = [1, 1]} : vector<16x256xbf16> to vector<16x128xbf16>
    %23 = vector.extract_strided_slice %19 {offsets = [0, 3], sizes = [16, 128], strides = [1, 1]} : vector<16x256xbf16> to vector<16x128xbf16>
    %24 = vector.extract_strided_slice %19 {offsets = [0, 4], sizes = [16, 128], strides = [1, 1]} : vector<16x256xbf16> to vector<16x128xbf16>
    %25 = tpu.concatenate %20, %21, %22, %23, %24 in 0 : vector<16x128xbf16>, vector<16x128xbf16>, vector<16x128xbf16>, vector<16x128xbf16>, vector<16x128xbf16> -> vector<80x128xbf16>
    %c0_14 = arith.constant 0 : index
    %c0_15 = arith.constant 0 : index
    %26 = vector.load %arg7[%c0_14, %c0_15] : memref<16x80xbf16, #tpu.memory_space<vmem>>, vector<16x80xbf16>
    %cst_16 = arith.constant dense<0.000000e+00> : vector<16x128xf32>
    %27 = tpu.matmul %26, %25, %cst_16 {dimension_numbers = #tpu.dot_dimension_numbers<[1], [0], [0], [1], [0, 0, 1, 1], [], []>} : vector<16x80xbf16>, vector<80x128xbf16>, vector<16x128xf32> -> vector<16x128xf32>
    %28 = arith.addf %14, %27 : vector<16x128xf32>
    %c0_17 = arith.constant 0 : index
    %c0_18 = arith.constant 0 : index
    %29 = vector.load %arg8[%c0_17, %c0_18] : memref<16x2xf32, #tpu.memory_space<vmem>>, vector<16x2xf32>
    %30 = vector.extract_strided_slice %29 {offsets = [0, 0], sizes = [16, 1], strides = [1, 1]} : vector<16x2xf32> to vector<16x1xf32>
    %31 = vector.broadcast %30 : vector<16x1xf32> to vector<16x128xf32>
    %32 = arith.mulf %28, %31 : vector<16x128xf32>
    %33 = vector.extract_strided_slice %29 {offsets = [0, 1], sizes = [16, 1], strides = [1, 1]} : vector<16x2xf32> to vector<16x1xf32>
    %34 = vector.broadcast %33 : vector<16x1xf32> to vector<16x128xf32>
    %35 = arith.addf %32, %34 : vector<16x128xf32>
    %cst_19 = arith.constant 0.000000e+00 : f32
    %36 = vector.broadcast %cst_19 : f32 to vector<16x128xf32>
    %37 = arith.cmpf oge, %35, %36 : vector<16x128xf32>
    %cst_20 = arith.constant 1.000000e-01 : f32
    %38 = vector.broadcast %cst_20 : f32 to vector<16x128xf32>
    %39 = arith.mulf %38, %35 : vector<16x128xf32>
    %40 = arith.select %37, %35, %39 : vector<16x128xi1>, vector<16x128xf32>
    %41 = arith.truncf %40 : vector<16x128xf32> to vector<16x128xbf16>
    %c0_21 = arith.constant 0 : index
    %c0_22 = arith.constant 0 : index
    %c0_23 = arith.constant 0 : index
    %42 = vector.load %arg9[%c0_21, %c0_22, %c0_23] : memref<1x16x128xbf16, #tpu.memory_space<vmem>>, vector<1x16x128xbf16>
    %43 = vector.shape_cast %42 : vector<1x16x128xbf16> to vector<16x128xbf16>
    %44 = vector.shape_cast %41 : vector<16x128xbf16> to vector<1x16x128xbf16>
    tpu.vector_store %arg9[%c0_21, %c0_22, %c0_23], %44 {strides = array<i32>} : memref<1x16x128xbf16, #tpu.memory_space<vmem>>, vector<1x16x128xbf16>,
    return
  }
  func.func @transform_0(%arg0: i32, %arg1: i32) -> (i32, i32, i32) {
    %c0_i32 = arith.constant 0 : i32
    %c0_i32_0 = arith.constant 0 : i32
    return %arg0, %c0_i32, %arg1 : i32, i32, i32
  }
  func.func @transform_1(%arg0: i32, %arg1: i32) -> (i32, i32, i32) {
    %c1_i32 = arith.constant 1 : i32
    %0 = arith.addi %arg1, %c1_i32 : i32
    %c1_i32_0 = arith.constant 1 : i32
    %1 = arith.muli %0, %c1_i32_0 : i32
    %c0_i32 = arith.constant 0 : i32
    %c0_i32_1 = arith.constant 0 : i32
    return %arg0, %c0_i32, %1 : i32, i32, i32
  }
  func.func @transform_2(%arg0: i32, %arg1: i32) -> (i32, i32, i32) {
    %c0_i32 = arith.constant 0 : i32
    %c0_i32_0 = arith.constant 0 : i32
    return %arg0, %c0_i32, %arg1 : i32, i32, i32
  }
  func.func @transform_3(%arg0: i32, %arg1: i32) -> (i32, i32, i32) {
    %c1_i32 = arith.constant 1 : i32
    %0 = arith.addi %arg1, %c1_i32 : i32
    %c1_i32_0 = arith.constant 1 : i32
    %1 = arith.muli %0, %c1_i32_0 : i32
    %c0_i32 = arith.constant 0 : i32
    %c0_i32_1 = arith.constant 0 : i32
    return %arg0, %c0_i32, %1 : i32, i32, i32
  }
  func.func @transform_4(%arg0: i32, %arg1: i32) -> (i32, i32) {
    %c0_i32 = arith.constant 0 : i32
    %c0_i32_0 = arith.constant 0 : i32
    %c0_i32_1 = arith.constant 0 : i32
    return %c0_i32, %c0_i32_0 : i32, i32
  }
  func.func @transform_5(%arg0: i32, %arg1: i32) -> (i32, i32) {
    %c0_i32 = arith.constant 0 : i32
    %c0_i32_0 = arith.constant 0 : i32
    %c0_i32_1 = arith.constant 0 : i32
    return %c0_i32, %c0_i32_0 : i32, i32
  }
  func.func @transform_6(%arg0: i32, %arg1: i32) -> (i32, i32) {
    %c0_i32 = arith.constant 0 : i32
    %c0_i32_0 = arith.constant 0 : i32
    %c0_i32_1 = arith.constant 0 : i32
    return %c0_i32, %c0_i32_0 : i32, i32
  }
  func.func @transform_7(%arg0: i32, %arg1: i32) -> (i32, i32, i32) {
    %c0_i32 = arith.constant 0 : i32
    %c0_i32_0 = arith.constant 0 : i32
    return %arg0, %c0_i32, %arg1 : i32, i32, i32
  }
}

module attributes {stable_mosaic.version = 11 : i64} {
  func.func @_fused_conv_kernel(%arg0: i32, %arg1: i32, %arg2: memref<1x8x128xbf16, #tpu.memory_space<vmem>>, %arg3: memref<1x8x128xbf16, #tpu.memory_space<vmem>>, %arg4: memref<1x3x128xbf16, #tpu.memory_space<vmem>>, %arg5: memref<1x3x128xbf16, #tpu.memory_space<vmem>>, %arg6: memref<2x8xbf16, #tpu.memory_space<vmem>>, %arg7: memref<2x3xbf16, #tpu.memory_space<vmem>>, %arg8: memref<2x2xf32, #tpu.memory_space<vmem>>, %arg9: memref<1x2x128xf32, #tpu.memory_space<vmem>>) attributes {dimension_semantics = [#tpu.dimension_semantics<parallel>, #tpu.dimension_semantics<parallel>], iteration_bounds = array<i64: 2, 1>, scalar_prefetch = 0 : i64, scratch_operands = 0 : i64, tpu.core_type = #tpu.core_type<tc>, window_params = [{transform_indices = @transform_0, window_bounds = array<i64: 1, 8, 128>}, {transform_indices = @transform_1, window_bounds = array<i64: 1, 8, 128>}, {transform_indices = @transform_2, window_bounds = array<i64: 1, 3, 128>}, {transform_indices = @transform_3, window_bounds = array<i64: 1, 3, 128>}, {pipeline_mode = #tpu.pipeline_mode<synchronous>, transform_indices = @transform_4, window_bounds = array<i64: 2, 8>}, {pipeline_mode = #tpu.pipeline_mode<synchronous>, transform_indices = @transform_5, window_bounds = array<i64: 2, 3>}, {pipeline_mode = #tpu.pipeline_mode<synchronous>, transform_indices = @transform_6, window_bounds = array<i64: 2, 2>}, {transform_indices = @transform_7, window_bounds = array<i64: 1, 2, 128>}]} {
    %cst = arith.constant 0.000000e+00 : f32
    %0 = vector.broadcast %cst : f32 to vector<2x128xf32>
    %c0 = arith.constant 0 : index
    %c0_0 = arith.constant 0 : index
    %c0_1 = arith.constant 0 : index
    %1 = vector.load %arg2[%c0, %c0_0, %c0_1] : memref<1x8x128xbf16, #tpu.memory_space<vmem>>, vector<1x8x128xbf16>
    %2 = vector.shape_cast %1 : vector<1x8x128xbf16> to vector<8x128xbf16>
    %c0_2 = arith.constant 0 : index
    %c0_3 = arith.constant 0 : index
    %c0_4 = arith.constant 0 : index
    %3 = vector.load %arg3[%c0_2, %c0_3, %c0_4] : memref<1x8x128xbf16, #tpu.memory_space<vmem>>, vector<1x8x128xbf16>
    %4 = vector.shape_cast %3 : vector<1x8x128xbf16> to vector<8x128xbf16>
    %5 = tpu.concatenate %2, %4 in 1 : vector<8x128xbf16>, vector<8x128xbf16> -> vector<8x256xbf16>
    %6 = vector.extract_strided_slice %5 {offsets = [0, 0], sizes = [8, 128], strides = [1, 1]} : vector<8x256xbf16> to vector<8x128xbf16>
    %c0_5 = arith.constant 0 : index
    %c0_6 = arith.constant 0 : index
    %7 = vector.load %arg6[%c0_5, %c0_6] : memref<2x8xbf16, #tpu.memory_space<vmem>>, vector<2x8xbf16>
    %cst_7 = arith.constant dense<0.000000e+00> : vector<2x128xf32>
    %8 = tpu.matmul %7, %6, %cst_7 {dimension_numbers = #tpu.dot_dimension_numbers<[1], [0], [0], [1], [0, 0, 1, 1], [], []>} : vector<2x8xbf16>, vector<8x128xbf16>, vector<2x128xf32> -> vector<2x128xf32>
    %9 = arith.addf %0, %8 : vector<2x128xf32>
    %c0_8 = arith.constant 0 : index
    %c0_9 = arith.constant 0 : index
    %c0_10 = arith.constant 0 : index
    %10 = vector.load %arg4[%c0_8, %c0_9, %c0_10] : memref<1x3x128xbf16, #tpu.memory_space<vmem>>, vector<1x3x128xbf16>
    %11 = vector.shape_cast %10 : vector<1x3x128xbf16> to vector<3x128xbf16>
    %c0_11 = arith.constant 0 : index
    %c0_12 = arith.constant 0 : index
    %c0_13 = arith.constant 0 : index
    %12 = vector.load %arg5[%c0_11, %c0_12, %c0_13] : memref<1x3x128xbf16, #tpu.memory_space<vmem>>, vector<1x3x128xbf16>
    %13 = vector.shape_cast %12 : vector<1x3x128xbf16> to vector<3x128xbf16>
    %14 = tpu.concatenate %11, %13 in 1 : vector<3x128xbf16>, vector<3x128xbf16> -> vector<3x256xbf16>
    %15 = vector.extract_strided_slice %14 {offsets = [0, 0], sizes = [3, 128], strides = [1, 1]} : vector<3x256xbf16> to vector<3x128xbf16>
    %c0_14 = arith.constant 0 : index
    %c0_15 = arith.constant 0 : index
    %16 = vector.load %arg7[%c0_14, %c0_15] : memref<2x3xbf16, #tpu.memory_space<vmem>>, vector<2x3xbf16>
    %cst_16 = arith.constant dense<0.000000e+00> : vector<2x128xf32>
    %17 = tpu.matmul %16, %15, %cst_16 {dimension_numbers = #tpu.dot_dimension_numbers<[1], [0], [0], [1], [0, 0, 1, 1], [], []>} : vector<2x3xbf16>, vector<3x128xbf16>, vector<2x128xf32> -> vector<2x128xf32>
    %18 = arith.addf %9, %17 : vector<2x128xf32>
    %c0_17 = arith.constant 0 : index
    %c0_18 = arith.constant 0 : index
    %19 = vector.load %arg8[%c0_17, %c0_18] : memref<2x2xf32, #tpu.memory_space<vmem>>, vector<2x2xf32>
    %20 = vector.extract_strided_slice %19 {offsets = [0, 0], sizes = [2, 1], strides = [1, 1]} : vector<2x2xf32> to vector<2x1xf32>
    %21 = vector.broadcast %20 : vector<2x1xf32> to vector<2x128xf32>
    %22 = arith.mulf %18, %21 : vector<2x128xf32>
    %23 = vector.extract_strided_slice %19 {offsets = [0, 1], sizes = [2, 1], strides = [1, 1]} : vector<2x2xf32> to vector<2x1xf32>
    %24 = vector.broadcast %23 : vector<2x1xf32> to vector<2x128xf32>
    %25 = arith.addf %22, %24 : vector<2x128xf32>
    %26 = math.tanh %25 : vector<2x128xf32>
    %c0_19 = arith.constant 0 : index
    %c0_20 = arith.constant 0 : index
    %c0_21 = arith.constant 0 : index
    %27 = vector.load %arg9[%c0_19, %c0_20, %c0_21] : memref<1x2x128xf32, #tpu.memory_space<vmem>>, vector<1x2x128xf32>
    %28 = vector.shape_cast %27 : vector<1x2x128xf32> to vector<2x128xf32>
    %29 = vector.shape_cast %26 : vector<2x128xf32> to vector<1x2x128xf32>
    tpu.vector_store %arg9[%c0_19, %c0_20, %c0_21], %29 {strides = array<i32>} : memref<1x2x128xf32, #tpu.memory_space<vmem>>, vector<1x2x128xf32>,
    return
  }
  func.func @transform_0(%arg0: i32, %arg1: i32) -> (i32, i32, i32) {
    %c0_i32 = arith.constant 0 : i32
    %c0_i32_0 = arith.constant 0 : i32
    return %arg0, %c0_i32, %arg1 : i32, i32, i32
  }
  func.func @transform_1(%arg0: i32, %arg1: i32) -> (i32, i32, i32) {
    %c1_i32 = arith.constant 1 : i32
    %0 = arith.addi %arg1, %c1_i32 : i32
    %c1_i32_0 = arith.constant 1 : i32
    %1 = arith.muli %0, %c1_i32_0 : i32
    %c0_i32 = arith.constant 0 : i32
    %c0_i32_1 = arith.constant 0 : i32
    return %arg0, %c0_i32, %1 : i32, i32, i32
  }
  func.func @transform_2(%arg0: i32, %arg1: i32) -> (i32, i32, i32) {
    %c0_i32 = arith.constant 0 : i32
    %c0_i32_0 = arith.constant 0 : i32
    return %arg0, %c0_i32, %arg1 : i32, i32, i32
  }
  func.func @transform_3(%arg0: i32, %arg1: i32) -> (i32, i32, i32) {
    %c1_i32 = arith.constant 1 : i32
    %0 = arith.addi %arg1, %c1_i32 : i32
    %c1_i32_0 = arith.constant 1 : i32
    %1 = arith.muli %0, %c1_i32_0 : i32
    %c0_i32 = arith.constant 0 : i32
    %c0_i32_1 = arith.constant 0 : i32
    return %arg0, %c0_i32, %1 : i32, i32, i32
  }
  func.func @transform_4(%arg0: i32, %arg1: i32) -> (i32, i32) {
    %c0_i32 = arith.constant 0 : i32
    %c0_i32_0 = arith.constant 0 : i32
    %c0_i32_1 = arith.constant 0 : i32
    return %c0_i32, %c0_i32_0 : i32, i32
  }
  func.func @transform_5(%arg0: i32, %arg1: i32) -> (i32, i32) {
    %c0_i32 = arith.constant 0 : i32
    %c0_i32_0 = arith.constant 0 : i32
    %c0_i32_1 = arith.constant 0 : i32
    return %c0_i32, %c0_i32_0 : i32, i32
  }
  func.func @transform_6(%arg0: i32, %arg1: i32) -> (i32, i32) {
    %c0_i32 = arith.constant 0 : i32
    %c0_i32_0 = arith.constant 0 : i32
    %c0_i32_1 = arith.constant 0 : i32
    return %c0_i32, %c0_i32_0 : i32, i32
  }
  func.func @transform_7(%arg0: i32, %arg1: i32) -> (i32, i32, i32) {
    %c0_i32 = arith.constant 0 : i32
    %c0_i32_0 = arith.constant 0 : i32
    return %arg0, %c0_i32, %arg1 : i32, i32, i32
  }
}

module attributes {stable_mosaic.version = 11 : i64} {
  func.func @_fused_conv_kernel(%arg0: i32, %arg1: i32, %arg2: memref<1x16x128xbf16, #tpu.memory_space<vmem>>, %arg3: memref<1x16x128xbf16, #tpu.memory_space<vmem>>, %arg4: memref<1x8x128xbf16, #tpu.memory_space<vmem>>, %arg5: memref<1x8x128xbf16, #tpu.memory_space<vmem>>, %arg6: memref<8x80xbf16, #tpu.memory_space<vmem>>, %arg7: memref<8x40xbf16, #tpu.memory_space<vmem>>, %arg8: memref<8x2xf32, #tpu.memory_space<vmem>>, %arg9: memref<1x8x128xbf16, #tpu.memory_space<vmem>>) attributes {dimension_semantics = [#tpu.dimension_semantics<parallel>, #tpu.dimension_semantics<parallel>], iteration_bounds = array<i64: 2, 1>, scalar_prefetch = 0 : i64, scratch_operands = 0 : i64, tpu.core_type = #tpu.core_type<tc>, window_params = [{transform_indices = @transform_0, window_bounds = array<i64: 1, 16, 128>}, {transform_indices = @transform_1, window_bounds = array<i64: 1, 16, 128>}, {transform_indices = @transform_2, window_bounds = array<i64: 1, 8, 128>}, {transform_indices = @transform_3, window_bounds = array<i64: 1, 8, 128>}, {pipeline_mode = #tpu.pipeline_mode<synchronous>, transform_indices = @transform_4, window_bounds = array<i64: 8, 80>}, {pipeline_mode = #tpu.pipeline_mode<synchronous>, transform_indices = @transform_5, window_bounds = array<i64: 8, 40>}, {pipeline_mode = #tpu.pipeline_mode<synchronous>, transform_indices = @transform_6, window_bounds = array<i64: 8, 2>}, {transform_indices = @transform_7, window_bounds = array<i64: 1, 8, 128>}]} {
    %cst = arith.constant 0.000000e+00 : f32
    %0 = vector.broadcast %cst : f32 to vector<8x128xf32>
    %c0 = arith.constant 0 : index
    %c0_0 = arith.constant 0 : index
    %c0_1 = arith.constant 0 : index
    %1 = vector.load %arg2[%c0, %c0_0, %c0_1] : memref<1x16x128xbf16, #tpu.memory_space<vmem>>, vector<1x16x128xbf16>
    %2 = vector.shape_cast %1 : vector<1x16x128xbf16> to vector<16x128xbf16>
    %c0_2 = arith.constant 0 : index
    %c0_3 = arith.constant 0 : index
    %c0_4 = arith.constant 0 : index
    %3 = vector.load %arg3[%c0_2, %c0_3, %c0_4] : memref<1x16x128xbf16, #tpu.memory_space<vmem>>, vector<1x16x128xbf16>
    %4 = vector.shape_cast %3 : vector<1x16x128xbf16> to vector<16x128xbf16>
    %5 = tpu.concatenate %2, %4 in 1 : vector<16x128xbf16>, vector<16x128xbf16> -> vector<16x256xbf16>
    %6 = vector.extract_strided_slice %5 {offsets = [0, 0], sizes = [16, 128], strides = [1, 1]} : vector<16x256xbf16> to vector<16x128xbf16>
    %7 = vector.extract_strided_slice %5 {offsets = [0, 1], sizes = [16, 128], strides = [1, 1]} : vector<16x256xbf16> to vector<16x128xbf16>
    %8 = vector.extract_strided_slice %5 {offsets = [0, 2], sizes = [16, 128], strides = [1, 1]} : vector<16x256xbf16> to vector<16x128xbf16>
    %9 = vector.extract_strided_slice %5 {offsets = [0, 3], sizes = [16, 128], strides = [1, 1]} : vector<16x256xbf16> to vector<16x128xbf16>
    %10 = vector.extract_strided_slice %5 {offsets = [0, 4], sizes = [16, 128], strides = [1, 1]} : vector<16x256xbf16> to vector<16x128xbf16>
    %11 = tpu.concatenate %6, %7, %8, %9, %10 in 0 : vector<16x128xbf16>, vector<16x128xbf16>, vector<16x128xbf16>, vector<16x128xbf16>, vector<16x128xbf16> -> vector<80x128xbf16>
    %c0_5 = arith.constant 0 : index
    %c0_6 = arith.constant 0 : index
    %12 = vector.load %arg6[%c0_5, %c0_6] : memref<8x80xbf16, #tpu.memory_space<vmem>>, vector<8x80xbf16>
    %cst_7 = arith.constant dense<0.000000e+00> : vector<8x128xf32>
    %13 = tpu.matmul %12, %11, %cst_7 {dimension_numbers = #tpu.dot_dimension_numbers<[1], [0], [0], [1], [0, 0, 1, 1], [], []>} : vector<8x80xbf16>, vector<80x128xbf16>, vector<8x128xf32> -> vector<8x128xf32>
    %14 = arith.addf %0, %13 : vector<8x128xf32>
    %c0_8 = arith.constant 0 : index
    %c0_9 = arith.constant 0 : index
    %c0_10 = arith.constant 0 : index
    %15 = vector.load %arg4[%c0_8, %c0_9, %c0_10] : memref<1x8x128xbf16, #tpu.memory_space<vmem>>, vector<1x8x128xbf16>
    %16 = vector.shape_cast %15 : vector<1x8x128xbf16> to vector<8x128xbf16>
    %c0_11 = arith.constant 0 : index
    %c0_12 = arith.constant 0 : index
    %c0_13 = arith.constant 0 : index
    %17 = vector.load %arg5[%c0_11, %c0_12, %c0_13] : memref<1x8x128xbf16, #tpu.memory_space<vmem>>, vector<1x8x128xbf16>
    %18 = vector.shape_cast %17 : vector<1x8x128xbf16> to vector<8x128xbf16>
    %19 = tpu.concatenate %16, %18 in 1 : vector<8x128xbf16>, vector<8x128xbf16> -> vector<8x256xbf16>
    %20 = vector.extract_strided_slice %19 {offsets = [0, 0], sizes = [8, 128], strides = [1, 1]} : vector<8x256xbf16> to vector<8x128xbf16>
    %21 = vector.extract_strided_slice %19 {offsets = [0, 1], sizes = [8, 128], strides = [1, 1]} : vector<8x256xbf16> to vector<8x128xbf16>
    %22 = vector.extract_strided_slice %19 {offsets = [0, 2], sizes = [8, 128], strides = [1, 1]} : vector<8x256xbf16> to vector<8x128xbf16>
    %23 = vector.extract_strided_slice %19 {offsets = [0, 3], sizes = [8, 128], strides = [1, 1]} : vector<8x256xbf16> to vector<8x128xbf16>
    %24 = vector.extract_strided_slice %19 {offsets = [0, 4], sizes = [8, 128], strides = [1, 1]} : vector<8x256xbf16> to vector<8x128xbf16>
    %25 = tpu.concatenate %20, %21, %22, %23, %24 in 0 : vector<8x128xbf16>, vector<8x128xbf16>, vector<8x128xbf16>, vector<8x128xbf16>, vector<8x128xbf16> -> vector<40x128xbf16>
    %c0_14 = arith.constant 0 : index
    %c0_15 = arith.constant 0 : index
    %26 = vector.load %arg7[%c0_14, %c0_15] : memref<8x40xbf16, #tpu.memory_space<vmem>>, vector<8x40xbf16>
    %cst_16 = arith.constant dense<0.000000e+00> : vector<8x128xf32>
    %27 = tpu.matmul %26, %25, %cst_16 {dimension_numbers = #tpu.dot_dimension_numbers<[1], [0], [0], [1], [0, 0, 1, 1], [], []>} : vector<8x40xbf16>, vector<40x128xbf16>, vector<8x128xf32> -> vector<8x128xf32>
    %28 = arith.addf %14, %27 : vector<8x128xf32>
    %c0_17 = arith.constant 0 : index
    %c0_18 = arith.constant 0 : index
    %29 = vector.load %arg8[%c0_17, %c0_18] : memref<8x2xf32, #tpu.memory_space<vmem>>, vector<8x2xf32>
    %30 = vector.extract_strided_slice %29 {offsets = [0, 0], sizes = [8, 1], strides = [1, 1]} : vector<8x2xf32> to vector<8x1xf32>
    %31 = vector.broadcast %30 : vector<8x1xf32> to vector<8x128xf32>
    %32 = arith.mulf %28, %31 : vector<8x128xf32>
    %33 = vector.extract_strided_slice %29 {offsets = [0, 1], sizes = [8, 1], strides = [1, 1]} : vector<8x2xf32> to vector<8x1xf32>
    %34 = vector.broadcast %33 : vector<8x1xf32> to vector<8x128xf32>
    %35 = arith.addf %32, %34 : vector<8x128xf32>
    %cst_19 = arith.constant 0.000000e+00 : f32
    %36 = vector.broadcast %cst_19 : f32 to vector<8x128xf32>
    %37 = arith.cmpf oge, %35, %36 : vector<8x128xf32>
    %cst_20 = arith.constant 1.000000e-01 : f32
    %38 = vector.broadcast %cst_20 : f32 to vector<8x128xf32>
    %39 = arith.mulf %38, %35 : vector<8x128xf32>
    %40 = arith.select %37, %35, %39 : vector<8x128xi1>, vector<8x128xf32>
    %41 = arith.truncf %40 : vector<8x128xf32> to vector<8x128xbf16>
    %c0_21 = arith.constant 0 : index
    %c0_22 = arith.constant 0 : index
    %c0_23 = arith.constant 0 : index
    %42 = vector.load %arg9[%c0_21, %c0_22, %c0_23] : memref<1x8x128xbf16, #tpu.memory_space<vmem>>, vector<1x8x128xbf16>
    %43 = vector.shape_cast %42 : vector<1x8x128xbf16> to vector<8x128xbf16>
    %44 = vector.shape_cast %41 : vector<8x128xbf16> to vector<1x8x128xbf16>
    tpu.vector_store %arg9[%c0_21, %c0_22, %c0_23], %44 {strides = array<i32>} : memref<1x8x128xbf16, #tpu.memory_space<vmem>>, vector<1x8x128xbf16>,
    return
  }
  func.func @transform_0(%arg0: i32, %arg1: i32) -> (i32, i32, i32) {
    %c0_i32 = arith.constant 0 : i32
    %c0_i32_0 = arith.constant 0 : i32
    return %arg0, %c0_i32, %arg1 : i32, i32, i32
  }
  func.func @transform_1(%arg0: i32, %arg1: i32) -> (i32, i32, i32) {
    %c1_i32 = arith.constant 1 : i32
    %0 = arith.addi %arg1, %c1_i32 : i32
    %c1_i32_0 = arith.constant 1 : i32
    %1 = arith.muli %0, %c1_i32_0 : i32
    %c0_i32 = arith.constant 0 : i32
    %c0_i32_1 = arith.constant 0 : i32
    return %arg0, %c0_i32, %1 : i32, i32, i32
  }
  func.func @transform_2(%arg0: i32, %arg1: i32) -> (i32, i32, i32) {
    %c0_i32 = arith.constant 0 : i32
    %c0_i32_0 = arith.constant 0 : i32
    return %arg0, %c0_i32, %arg1 : i32, i32, i32
  }
  func.func @transform_3(%arg0: i32, %arg1: i32) -> (i32, i32, i32) {
    %c1_i32 = arith.constant 1 : i32
    %0 = arith.addi %arg1, %c1_i32 : i32
    %c1_i32_0 = arith.constant 1 : i32
    %1 = arith.muli %0, %c1_i32_0 : i32
    %c0_i32 = arith.constant 0 : i32
    %c0_i32_1 = arith.constant 0 : i32
    return %arg0, %c0_i32, %1 : i32, i32, i32
  }
  func.func @transform_4(%arg0: i32, %arg1: i32) -> (i32, i32) {
    %c0_i32 = arith.constant 0 : i32
    %c0_i32_0 = arith.constant 0 : i32
    %c0_i32_1 = arith.constant 0 : i32
    return %c0_i32, %c0_i32_0 : i32, i32
  }
  func.func @transform_5(%arg0: i32, %arg1: i32) -> (i32, i32) {
    %c0_i32 = arith.constant 0 : i32
    %c0_i32_0 = arith.constant 0 : i32
    %c0_i32_1 = arith.constant 0 : i32
    return %c0_i32, %c0_i32_0 : i32, i32
  }
  func.func @transform_6(%arg0: i32, %arg1: i32) -> (i32, i32) {
    %c0_i32 = arith.constant 0 : i32
    %c0_i32_0 = arith.constant 0 : i32
    %c0_i32_1 = arith.constant 0 : i32
    return %c0_i32, %c0_i32_0 : i32, i32
  }
  func.func @transform_7(%arg0: i32, %arg1: i32) -> (i32, i32, i32) {
    %c0_i32 = arith.constant 0 : i32
    %c0_i32_0 = arith.constant 0 : i32
    return %arg0, %c0_i32, %arg1 : i32, i32, i32
  }
}

</mosaic_0001>

<bundles_post_ra>
// kernel: _lambda_.10
= control target key start
LH: loop header
LB: loop body
LE: loop exit
PB: predicated region body
PF: predicated region fallthrough
CT: control target
= control target key end

     0   :  { %s756_s15 = smov 0   ;;  %s758_s16 = smov 0   ;;  %s902_s0 = inlined_call_operand.vmem [shape: bf16[2,3,256], index: 0, kind: input, shape index: {}, may-alias: {0,1}]   ;;  %s903_s1 = inlined_call_operand.vmem [shape: bf16[2,3,256], index: 1, kind: input, shape index: {}, may-alias: {0,1}]   ;;  %s904_s2 = inlined_call_operand.vmem [shape: bf16[8,45], index: 2, kind: input, shape index: {}]   ;;  %s905_s3 = inlined_call_operand.vmem [shape: f32[8,2], index: 3, kind: input, shape index: {}]   ;;  %s906_s4 = inlined_call_operand.vmem [shape: bf16[2,8,128], index: 4, kind: output, shape index: {}]  }
   0x1   :  { %s760_s17 = smov 0  }
   0x2 LB: > { %s26_s18 = sadd.s32 1, %s708_s16  ;;  %p629_p0 = scmp.ge.s32.totalorder %s712_s17, 1  ;;  %s712_s17 = sphi %s760_s17, %s14_s17   ;;  %s708_s16 = sphi %s758_s16, %s912_s16   ;;  %s704_s15 = sphi %s756_s15, %s911_s15  }
   0x3   : > { %p28_p1 = scmp.ge.s32.totalorder %s26_s18, 2  ;;  %p200_p2 = scmp.lt.s32.totalorder %s712_s17, 3 }
   0x5   : > { %s914_s18 = smov (%p28_p1, %s26_s18), 0  ;;  %p201_p3 = pnand %p629_p0, %p200_p2 }
   0x6   : > { %p240_p4 = scmp.lt.s32.totalorder (!%p201_p3), %s704_s15, 1  ;;  %s714_s27 = smov (!%p201_p3), 118  }
   0x7   : > { %204 = sbr.rel (%p201_p3) target bundleno = 352 (0x160), region = 36  ;;  %s715_s28 = smov (!%p201_p3), 116  }
   0x8   : > { %s716_s29 = smov (!%p201_p3), 117   ;;  %s717_s30 = smov (!%p201_p3), 115  }
   0x9   : > { %s718_s5 = smov (!%p201_p3), 114   ;;  %s719_s6 = smov (!%p201_p3), 123  }
   0xa   : > { %s720_s7 = smov (!%p201_p3), 122   ;;  %s721_s8 = smov (!%p201_p3), 121  }
   0xb   : > { %s722_s9 = smov (!%p201_p3), 120   ;;  %s723_s10 = smov (!%p201_p3), 119  }
   0xc   : > { %s916_s15 = smov (!%p240_p4, %s704_s15), 1  ;;  %s724_s11 = smov 127   ;;  %vm397_vm0 = vcmask 957440   ;;  %vm451_vm1 = vcmask 1040384   ;;  %vm475_vm2 = vsmask.f32 256 }
   0xd   : > { %s774_s19 = sshll.u32 %s916_s15, 2  ;;  %s725_s12 = smov 126   ;;  %vm386_vm3 = vcmask 965632   ;;  %vm406_vm4 = vcmask 949248   ;;  %vm854_vm5 = vmand %vm451_vm1, %vm475_vm2  ;;  %vm442_vm6 = vcmask 1045504   ;;  %vm418_vm7 = vcmask 941056  }
   0xe   : > { %s247_s22 = scalar_lea.vmem %s902_s0, %s774_s19  ;;  %s640_s23 = sadd.s32 2, %s774_s19  ;;  %vm460_vm8 = vcmask 1043456   ;;  %vm484_vm9 = vsmask.f32 3328  ;;  %vm429_vm10 = vcmask 1041408   ;;  %vm469_vm11 = vcmask 1046528  }
   0xf   : > { %v781_v0 = vld [vmem:[%s247_s22] sm:$0x3]  ;;  %s256_s26 = scalar_lea.vmem %s903_s1, %s640_s23  ;;  %s726_s13 = smov 125   ;;  %vm427_vm12 = vcmask 932864   ;;  %vm485_vm13 = vmand %vm460_vm8, %vm484_vm9  ;;  %vm438_vm14 = vcmask 1044480   ;;  %vm344_vm15 = vcmask 998400  }
  0x10   : > { %v380_v1 = vrot.slane %v781_v0, 1  ;;  %v788_v2 = vshrl.u32 %v781_v0, 16  ;;  %v791_v3 = vshll.u32 %v781_v0, 16  ;;  %v793_v4 = vld [vmem:[%s256_s26] sm:$0x3]  ;;  %v400_v5 = vrot.slane %v781_v0, 6  ;;  %s264_s25 = scalar_lea.vmem %s906_s4, %s774_s19 }
  0x11   : > { %v798_v7 = vshrl.u32 %v793_v4, 16  ;;  %v381_v9 = vrot.slane %v793_v4, 1  ;;  %v803_v10 = vshll.u32 %v793_v4, 16  ;;  %v401_v12 = vrot.slane %v793_v4, 6  ;;  %s727_s14 = smov 124  }
  0x12   : > { %382 = vrot.lane.b32.xlu0 %v380_v1, %s714_s27  ;;  %v389_v6 = vrot.slane %v788_v2, 7  ;;  %402 = vrot.lane.b32.xlu2 %v400_v5, %s715_s28  ;;  %v408_v14 = vrot.slane %v788_v2, 4  ;;  %v409_v15 = vrot.slane %v791_v3, 5  ;;  %v421_v19 = vrot.slane %v781_v0, 3 }
  0x13   : > { %v391_v11 = vrot.slane %v798_v7, 7  ;;  %v411_v17 = vrot.slane %v798_v7, 4  ;;  %v412_v18 = vrot.slane %v803_v10, 5  ;;  %v323_v21 = vrot.slane %v803_v10, 1 }
  0x14   : > { %v390_v8 = vor.u32 %v389_v6, %v791_v3  ;;  %v410_v16 = vor.u32 %v409_v15, %v408_v14  ;;  %v422_v22 = vrot.slane %v793_v4, 3  ;;  %v322_v23 = vrot.slane %v791_v3, 1 }
  0x15   : > { %v392_v13 = vor.u32 %v391_v11, %v803_v10  ;;  %v413_v20 = vor.u32 %v412_v18, %v411_v17  ;;  %v325_v24 = vor.u32 %v323_v21, %v798_v7  ;;  %v346_v26 = vrot.slane %v788_v2, 5 }
  0x16   : > { %393 = vrot.lane.b32.xlu1 %v390_v8, %s716_s29  ;;  %v324_v25 = vor.u32 %v322_v23, %v788_v2  ;;  %v347_v27 = vrot.slane %v791_v3, 6  ;;  %v338_v28 = vrot.slane %v781_v0, 7  ;;  %v339_v30 = vrot.slane %v793_v4, 7 }
  0x17   : > { %v349_v31 = vrot.slane %v798_v7, 5  ;;  %v350_v32 = vrot.slane %v803_v10, 6  ;;  %v360_v34 = vrot.slane %v793_v4, 4  ;;  %v359_v35 = vrot.slane %v781_v0, 4 }
  0x18   : > { %v348_v29 = vor.u32 %v347_v27, %v346_v26  ;;  %v367_v36 = vrot.slane %v788_v2, 2  ;;  %v368_v37 = vrot.slane %v791_v3, 3  ;;  %v271_v38 = vrot.slane %v788_v2, 6 }
  0x19   : > { %v351_v33 = vor.u32 %v350_v32, %v349_v31  ;;  %v274_v39 = vrot.slane %v791_v3, 7  ;;  %v370_v41 = vrot.slane %v798_v7, 2  ;;  %v371_v42 = vrot.slane %v803_v10, 3 }
  0x1a   : > { %384 = vrot.lane.b32.xlu0 %v381_v9, %s714_s27  ;;  %404 = vrot.lane.b32.xlu2 %v401_v12, %s715_s28  ;;  %v369_v40 = vor.u32 %v368_v37, %v367_v36  ;;  %v279_v45 = vrot.slane %v798_v7, 6  ;;  %v282_v46 = vrot.slane %v803_v10, 7  ;;  %v294_v48 = vrot.slane %v793_v4, 5  ;;  %v513_v36 = vld [vmem:[%s905_s3] sm:$0xff] }
  0x1b   : > { %v275_v43 = vor.u32 %v274_v39, %v271_v38  ;;  %v372_v44 = vor.u32 %v371_v42, %v370_v41  ;;  %v293_v49 = vrot.slane %v781_v0, 5  ;;  %v301_v50 = vrot.slane %v788_v2, 3 }
  0x1c   : > { %v283_v47 = vor.u32 %v282_v46, %v279_v45  ;;  %v302_v51 = vrot.slane %v791_v3, 4  ;;  %v304_v53 = vrot.slane %v798_v7, 3  ;;  %v305_v54 = vrot.slane %v803_v10, 4 }
  0x1d   : > { %v314_v55 = vrot.slane %v781_v0, 2  ;;  %v315_v57 = vrot.slane %v793_v4, 2  ;;  %v683_v58 = vpack.i.bf16 %v323_v21, %v322_v23  ;;  %v728_v10 = vmov 65535  }
  0x1e   : > { %395 = vrot.lane.b32.xlu1 %v392_v13, %s716_s29  ;;  %v303_v52 = vor.u32 %v302_v51, %v301_v50  ;;  %v306_v56 = vor.u32 %v305_v54, %v304_v53  ;;  %v496_v11 = vsel %vm442_vm6, 4294967295, %v728_v10  ;;  %vm433_vm2 = vcmask 1042432  }
  0x1f   : > { %v497_v15 = vsel %vm469_vm11, %v496_v11, 0  ;;  %v729_v39 = vmov 1  }
  0x20   : > { %689 = vset.pattern.permute.xlu0 %v729_v39 }
  0x22   : > { %414 = vrot.lane.b32.xlu0 %v410_v16, %s717_s30  ;;  %423 = vrot.lane.b32.xlu2 %v421_v19, %s718_s5 }
  0x26   : > { %416 = vrot.lane.b32.xlu1 %v413_v20, %s717_s30 }
  0x2a   : > { %425 = vrot.lane.b32.xlu0 %v422_v22, %s718_s5  ;;  %332 = vrot.lane.b32.xlu2 %v325_v24, %s719_s6 }
  0x2e   : > { %330 = vrot.lane.b32.xlu1 %v324_v25, %s719_s6 }
  0x32   : > { %340 = vrot.lane.b32.xlu0 %v338_v28, %s720_s7  ;;  %352 = vrot.lane.b32.xlu2 %v348_v29, %s721_s8 }
  0x36   : > { %342 = vrot.lane.b32.xlu1 %v339_v30, %s720_s7 }
  0x3a   : > { %354 = vrot.lane.b32.xlu0 %v351_v33, %s721_s8  ;;  %363 = vrot.lane.b32.xlu2 %v360_v34, %s722_s9 }
  0x3e   : > { %361 = vrot.lane.b32.xlu1 %v359_v35, %s722_s9 }
  0x42   : > { %373 = vrot.lane.b32.xlu0 %v369_v40, %s723_s10  ;;  %284 = vrot.lane.b32.xlu2 %v275_v43, %s724_s11  ;;  %v730_v40 = vmov 0  }
  0x43   : > { %688 = vset.pattern.permute.xlu2 %v730_v40 }
  0x46   : > { %375 = vrot.lane.b32.xlu1 %v372_v44, %s723_s10 }
  0x4a   : > { %286 = vrot.lane.b32.xlu0 %v283_v47, %s724_s11  ;;  %297 = vrot.lane.b32.xlu2 %v294_v48, %s725_s12 }
  0x4e   : > { %295 = vrot.lane.b32.xlu1 %v293_v49, %s725_s12 }
  0x52   : > { %307 = vrot.lane.b32.xlu0 %v303_v52, %s726_s13  ;;  %316 = vrot.lane.b32.xlu2 %v314_v55, %s727_s14 }
  0x56   : > { %309 = vrot.lane.b32.xlu1 %v306_v56, %s726_s13 }
  0x5a   : > { %318 = vrot.lane.b32.xlu0 %v315_v57, %s727_s14  ;;  %516 = vperm.xlu2 %688, %v513_v36  }
  0x5e   : > { %684 = vrot.lane.b32.xlu1 %v683_v58, %s719_s6 }
  0x62   : > { %521 = vperm.xlu0 %689, %v513_v36  }
  0x6c   : > { %v403_v59 = vpop.permute.xlu2 %402 }
  0x74   : > { %v405_v62 = vpop.permute.xlu2 %404 }
  0x75   : > { %v407_v8 = vsel %vm406_vm4, %v403_v59, %v405_v62  ;;  %vm334_vm4 = vcmask 1006592  }
  0x7c   : > { %v424_v2 = vpop.permute.xlu2 %423 }
  0x84   : > { %v383_v60 = vpop.permute.xlu0 %382  ;;  %v333_v17 = vpop.permute.xlu2 %332 }
  0x88   : > { %v394_v61 = vpop.permute.xlu1 %393 }
  0x8c   : > { %v385_v63 = vpop.permute.xlu0 %384  ;;  %v353_v23 = vpop.permute.xlu2 %352 }
  0x8d   : > { %v387_v6 = vsel %vm386_vm3, %v383_v60, %v385_v63  ;;  %vm457_vm3 = vsmask.f32 2304 }
  0x8e   : > { %vm458_vm9 = vmand %vm433_vm2, %vm457_vm3  ;;  %vm439_vm3 = vsmask.f32 4352 }
  0x90   : > { %v396_v1 = vpop.permute.xlu1 %395 }
  0x91   : > { %v398_v4 = vsel %vm397_vm0, %v394_v61, %v396_v1  ;;  %vm356_vm0 = vcmask 990208   ;;  %v491_v1 = vld [vmem:[%s904_s2] sm:$0xf] }
  0x92   : > { %v477_v9 = vsel %vm854_vm5, %v387_v6, %v398_v4  ;;  %vm365_vm5 = vcmask 982016  }
  0x93   : > { %v481_v14 = vsel %vm429_vm10, %v477_v9, %v407_v8 }
  0x94   : > { %v415_v5 = vpop.permute.xlu0 %414  ;;  %v364_v27 = vpop.permute.xlu2 %363 }
  0x98   : > { %v417_v7 = vpop.permute.xlu1 %416 }
  0x99   : > { %v419_v12 = vsel %vm418_vm7, %v415_v5, %v417_v7  ;;  %vm466_vm7 = vsmask.f32 5376 }
  0x9a   : > { %v486_v18 = vsel %vm485_vm13, %v481_v14, %v419_v12  ;;  %vm467_vm13 = vmand %vm442_vm6, %vm466_vm7  ;;  %vm320_vm7 = vcmask 1014784  }
  0x9c   : > { %v426_v13 = vpop.permute.xlu0 %425  ;;  %v285_v42 = vpop.permute.xlu2 %284 }
  0x9d   : > { %v428_v16 = vsel %vm427_vm12, %v424_v2, %v426_v13  ;;  %vm377_vm12 = vcmask 973824  }
  0x9e   : > { %v490_v19 = vsel %vm438_vm14, %v486_v18, %v428_v16 }
  0x9f   : > { %v498_v20 = vand.u32 %v497_v15, %v490_v19 }
  0xa0   : > { %v331_v21 = vpop.permute.xlu1 %330 }
  0xa1   : > { %505 = vmatpush.bf16.msra.mxu0 %v498_v20  ;;  %v336_v31 = vsel %vm334_vm4, %v331_v21, %v333_v17 }
  0xa4   : > { %v341_v22 = vpop.permute.xlu0 %340  ;;  %v298_v47 = vpop.permute.xlu2 %297 }
  0xa8   : > { %v343_v24 = vpop.permute.xlu1 %342 }
  0xa9   : > { %v345_v28 = vsel %vm344_vm15, %v341_v22, %v343_v24  ;;  %vm430_vm15 = vsmask.f32 1280 }
  0xaa   : > { %v454_v33 = vsel %vm451_vm1, %v336_v31, %v345_v28  ;;  %vm288_vm1 = vcmask 1039360  }
  0xac   : > { %v355_v25 = vpop.permute.xlu0 %354  ;;  %v317_v52 = vpop.permute.xlu2 %316 }
  0xad   : > { %v357_v30 = vsel %vm356_vm0, %v353_v23, %v355_v25  ;;  %vm299_vm0 = vcmask 1031168  }
  0xae   : > { %v459_v34 = vsel %vm458_vm9, %v454_v33, %v357_v30  ;;  %vm448_vm9 = vsmask.f32 7424 }
  0xb0   : > { %v362_v26 = vpop.permute.xlu1 %361 }
  0xb1   : > { %v366_v32 = vsel %vm365_vm5, %v362_v26, %v364_v27  ;;  %vm311_vm5 = vcmask 1022976  }
  0xb2   : > { %v463_v37 = vsel %vm460_vm8, %v459_v34, %v366_v32  ;;  %vm875_vm8 = vmand %vm429_vm10, %vm430_vm15 }
  0xb4   : > { %v374_v29 = vpop.permute.xlu0 %373  ;;  %v517_v2 = vpop.permute.xlu2 %516 }
  0xb8   : > { %v376_v35 = vpop.permute.xlu1 %375 }
  0xb9   : > { %v378_v38 = vsel %vm377_vm12, %v374_v29, %v376_v35  ;;  %vm440_vm12 = vmand %vm438_vm14, %vm439_vm3  ;;  %vm492_vm14 = vcmask 367616  }
  0xba   : > { %v468_v41 = vsel %vm467_vm13, %v463_v37, %v378_v38 }
  0xbb   : > { %v472_v43 = vsel %vm469_vm11, %v468_v41, %v387_v6  ;;  %vm447_vm11 = vcmask 1047552  }
  0xbc   : > { %v287_v44 = vpop.permute.xlu0 %286  ;;  %506 = vmatpush.bf16.msra.mxu0 %v472_v43  ;;  %vm449_vm10 = vmand %vm447_vm11, %vm448_vm9 }
  0xbd   : > { %v289_v50 = vsel %vm288_vm1, %v285_v42, %v287_v44 }
  0xbe   : > { %v432_v53 = vsel %vm875_vm8, %v781_v0, %v289_v50 }
  0xc0   : > { %v296_v45 = vpop.permute.xlu1 %295 }
  0xc1   : > { %v300_v54 = vsel %vm299_vm0, %v296_v45, %v298_v47 }
  0xc2   : > { %v436_v58 = vsel %vm433_vm2, %v432_v53, %v300_v54 }
  0xc4   : > { %v308_v46 = vpop.permute.xlu0 %307 }
  0xc8   : > { %v310_v48 = vpop.permute.xlu1 %309 }
  0xc9   : > { %v312_v55 = vsel %vm311_vm5, %v308_v46, %v310_v48 }
  0xca   : > { %v441_v61 = vsel %vm440_vm12, %v436_v58, %v312_v55 }
  0xcc   : > { %v319_v51 = vpop.permute.xlu0 %318 }
  0xcd   : > { %v321_v56 = vsel %vm320_vm7, %v317_v52, %v319_v51 }
  0xce   : > { %v445_v63 = vsel %vm442_vm6, %v441_v61, %v321_v56 }
  0xd0   : > { %v685_v57 = vpop.permute.xlu1 %684 }
  0xd1   : > { %v687_v59 = vunpack.i.h.bf16 %v685_v57  ;;  %v686_v60 = vunpack.i.l.bf16 %v685_v57 }
  0xd3   : > { %v335_v62 = vsel %vm334_vm4, %v686_v60, %v687_v59 }
  0xd4   : > { %v450_v0 = vsel %vm449_vm10, %v445_v63, %v335_v62  ;;  %v522_v3 = vpop.permute.xlu0 %521 }
  0xd5   : > { %507 = vmatpush.bf16.msra.mxu0 %v450_v0 }
  0xd8   : > { %635 = vmatmul.msk.bf16.vlgmr.msra.gmra.mxu0 %vm492_vm14, %v491_v1 }
 0x155   : > { %v509_v5 = vpop.f32.mrf.mxu0 }
 0x156   : > { %v519_v4 = vmul.f32 %v517_v2, %v509_v5 }
 0x158   : > { %v524_v6 = vadd.f32 %v522_v3, %v519_v4 }
 0x15a   : > { %vm525_vm2 = vcmp.ge.f32.partialorder %v524_v6, 0.0  ;;  %v526_v7 = vmul.f32 0.1, %v524_v6 }
 0x15c   : > { %v527_v8 = vsel %vm525_vm2, %v524_v6, %v526_v7 }
 0x15d   : > { %v528_v9 = vpack.c.bf16 %v527_v8, %v527_v8  ;;  %v511_v10 = vpop.f32.mrf.mxu0 }
 0x15f   : > { %529 = vst [vmem:[%s264_s25] sm:$0xf] %v528_v9 }
 0x160 PF: > { %s14_s17 = sadd.s32 1, %s712_s17   ;;  %s911_s15 = smov %s708_s16 }
 0x161   : > { %p11_p5 = scmp.ge.s32.totalorder %s14_s17, 4   ;;  %s912_s16 = smov %s914_s18 }
 0x163   :  { %13 = sbr.rel (!%p11_p5) target bundleno = 2 (0x2), region = 69 }

// kernel: _lambda_.11
= control target key start
LH: loop header
LB: loop body
LE: loop exit
PB: predicated region body
PF: predicated region fallthrough
CT: control target
= control target key end

     0   :  { %s687_s15 = smov 0   ;;  %s689_s16 = smov 0   ;;  %s758_s0 = inlined_call_operand.vmem [shape: bf16[2,8,256], index: 0, kind: input, shape index: {}, may-alias: {0,1}]   ;;  %s759_s1 = inlined_call_operand.vmem [shape: bf16[2,8,256], index: 1, kind: input, shape index: {}, may-alias: {0,1}]   ;;  %s760_s2 = inlined_call_operand.vmem [shape: bf16[16,120], index: 2, kind: input, shape index: {}]   ;;  %s761_s3 = inlined_call_operand.vmem [shape: f32[16,2], index: 3, kind: input, shape index: {}]   ;;  %s762_s4 = inlined_call_operand.vmem [shape: bf16[2,16,128], index: 4, kind: output, shape index: {}]  }
   0x1   :  { %s691_s17 = smov 0  }
   0x2 LB: > { %s26_s18 = sadd.s32 1, %s640_s16  ;;  %p553_p0 = scmp.ge.s32.totalorder %s644_s17, 1  ;;  %s644_s17 = sphi %s691_s17, %s14_s17   ;;  %s640_s16 = sphi %s689_s16, %s764_s16   ;;  %s636_s15 = sphi %s687_s15, %s763_s15  }
   0x3   : > { %p28_p1 = scmp.ge.s32.totalorder %s26_s18, 2  ;;  %p200_p2 = scmp.lt.s32.totalorder %s644_s17, 3 }
   0x5   : > { %s766_s18 = smov (%p28_p1, %s26_s18), 0  ;;  %p201_p3 = pnand %p553_p0, %p200_p2 }
   0x6   : > { %p241_p4 = scmp.lt.s32.totalorder (!%p201_p3), %s636_s15, 1  ;;  %s646_s24 = smov (!%p201_p3), 116  }
   0x7   : > { %204 = sbr.rel (%p201_p3) target bundleno = 352 (0x160), region = 36  ;;  %s647_s25 = smov (!%p201_p3), 114  }
   0x8   : > { %s648_s29 = smov (!%p201_p3), 115   ;;  %s649_s30 = smov (!%p201_p3), 118  }
   0x9   : > { %s650_s5 = smov (!%p201_p3), 117   ;;  %s651_s6 = smov (!%p201_p3), 120  }
   0xa   : > { %s652_s7 = smov (!%p201_p3), 119   ;;  %s653_s8 = smov (!%p201_p3), 122  }
   0xb   : > { %s654_s9 = smov (!%p201_p3), 121   ;;  %s655_s10 = smov (!%p201_p3), 124  }
   0xc   : > { %s768_s15 = smov (!%p241_p4, %s636_s15), 1  ;;  %s656_s11 = smov 123   ;;  %vm355_vm0 = vcmask 932864   ;;  %vm357_vm1 = vcmask 1043456   ;;  %vm343_vm2 = vcmask 949248   ;;  %vm349_vm3 = vcmask 941056  }
   0xd   : > { %s705_s19 = sshll.u32 %s768_s15, 3  ;;  %s657_s12 = smov 126   ;;  %vm331_vm4 = vcmask 965632   ;;  %vm337_vm5 = vcmask 957440   ;;  %vm319_vm6 = vcmask 982016   ;;  %vm325_vm7 = vcmask 973824  }
   0xe   : > { %s248_s22 = scalar_lea.vmem %s758_s0, %s705_s19  ;;  %s569_s23 = sadd.s32 4, %s705_s19  ;;  %vm307_vm8 = vcmask 998400   ;;  %vm313_vm9 = vcmask 990208   ;;  %v414_v36 = vld [vmem:[%s761_s3] sm:$0xff]  ;;  %v660_v37 = vmov 0   ;;  %v661_v38 = vmov 1  }
   0xf   : > { %v711_v0 = vld [vmem:[%s248_s22] sm:$0xf]  ;;  %s257_s28 = scalar_lea.vmem %s759_s1, %s569_s23  ;;  %s658_s13 = smov 125   ;;  %618 = vset.pattern.permute.xlu1 %v660_v37  ;;  %620 = vset.pattern.permute.xlu0 %v661_v38  ;;  %v415_v41 = vld [vmem:[%s761_s3 + $0x8] sm:$0xff]  ;;  %vm295_vm10 = vcmask 1014784   ;;  %vm301_vm11 = vcmask 1006592  }
  0x10   : > { %339 = vrot.lane.b32.xlu1 %v711_v0, %s646_s24  ;;  %351 = vrot.lane.b32.xlu0 %v711_v0, %s647_s25  ;;  %v271_v1 = vrot.slane %v711_v0, 4  ;;  %v268_v2 = vld [vmem:[%s257_s28] sm:$0xf]  ;;  %s659_s14 = smov 127   ;;  %vm283_vm12 = vcmask 1031168   ;;  %vm289_vm13 = vcmask 1022976   ;;  %s266_s27 = scalar_lea.vmem %s762_s4, %s705_s19 }
  0x11   : > { %v272_v3 = vrot.slane %v268_v2, 4  ;;  %619 = vset.pattern.permute.xlu2 %v660_v37  ;;  %vm277_vm14 = vcmask 1039360   ;;  %v571_v58 = vld [vmem:[%s760_s2] sm:$0xff] }
  0x12   : > { %345 = vrot.lane.b32.xlu2 %v271_v1, %s648_s29 }
  0x18   : > { %341 = vrot.lane.b32.xlu1 %v268_v2, %s646_s24  ;;  %353 = vrot.lane.b32.xlu0 %v268_v2, %s647_s25 }
  0x1a   : > { %347 = vrot.lane.b32.xlu2 %v272_v3, %s648_s29 }
  0x20   : > { %329 = vrot.lane.b32.xlu1 %v268_v2, %s649_s30  ;;  %327 = vrot.lane.b32.xlu0 %v711_v0, %s649_s30 }
  0x22   : > { %333 = vrot.lane.b32.xlu2 %v271_v1, %s650_s5 }
  0x28   : > { %315 = vrot.lane.b32.xlu1 %v711_v0, %s651_s6  ;;  %335 = vrot.lane.b32.xlu0 %v272_v3, %s650_s5 }
  0x2a   : > { %317 = vrot.lane.b32.xlu2 %v268_v2, %s651_s6 }
  0x30   : > { %323 = vrot.lane.b32.xlu1 %v272_v3, %s652_s7  ;;  %321 = vrot.lane.b32.xlu0 %v271_v1, %s652_s7 }
  0x32   : > { %303 = vrot.lane.b32.xlu2 %v711_v0, %s653_s8 }
  0x38   : > { %309 = vrot.lane.b32.xlu1 %v271_v1, %s654_s9  ;;  %305 = vrot.lane.b32.xlu0 %v268_v2, %s653_s8 }
  0x3a   : > { %311 = vrot.lane.b32.xlu2 %v272_v3, %s654_s9 }
  0x40   : > { %293 = vrot.lane.b32.xlu1 %v268_v2, %s655_s10  ;;  %291 = vrot.lane.b32.xlu0 %v711_v0, %s655_s10 }
  0x42   : > { %297 = vrot.lane.b32.xlu2 %v271_v1, %s656_s11 }
  0x48   : > { %279 = vrot.lane.b32.xlu1 %v711_v0, %s657_s12  ;;  %299 = vrot.lane.b32.xlu0 %v272_v3, %s656_s11 }
  0x4a   : > { %281 = vrot.lane.b32.xlu2 %v268_v2, %s657_s12 }
  0x50   : > { %287 = vrot.lane.b32.xlu1 %v272_v3, %s658_s13  ;;  %285 = vrot.lane.b32.xlu0 %v271_v1, %s658_s13 }
  0x52   : > { %273 = vrot.lane.b32.xlu2 %v271_v1, %s659_s14 }
  0x58   : > { %275 = vrot.lane.b32.xlu0 %v272_v3, %s659_s14  ;;  %418 = vperm.xlu1 %618, %v414_v36  }
  0x5a   : > { %423 = vperm.xlu2 %619, %v415_v41  }
  0x60   : > { %429 = vperm.xlu0 %620, %v414_v36   ;;  %621 = vset.pattern.permute.xlu1 %v661_v38 }
  0x61   : > { %433 = vperm.xlu1 %621, %v415_v41  }
  0x6c   : > { %v346_v4 = vpop.permute.xlu2 %345 }
  0x74   : > { %v348_v5 = vpop.permute.xlu2 %347 }
  0x75   : > { %v350_v14 = vsel %vm349_vm3, %v346_v4, %v348_v5 }
  0x7c   : > { %v334_v8 = vpop.permute.xlu2 %333 }
  0x82   : > { %v340_v6 = vpop.permute.xlu1 %339  ;;  %v352_v7 = vpop.permute.xlu0 %351 }
  0x84   : > { %v318_v18 = vpop.permute.xlu2 %317 }
  0x8a   : > { %v342_v9 = vpop.permute.xlu1 %341  ;;  %v354_v10 = vpop.permute.xlu0 %353 }
  0x8b   : > { %v356_v11 = vsel %vm355_vm0, %v352_v7, %v354_v10  ;;  %v344_v13 = vsel %vm343_vm2, %v340_v6, %v342_v9 }
  0x8c   : > { %v398_v12 = vsel %vm357_vm1, %v356_v11, 0  ;;  %v384_v15 = vsel %vm357_vm1, %v344_v13, %v350_v14  ;;  %v304_v24 = vpop.permute.xlu2 %303 }
  0x8d   : > { %400 = vmatpush.bf16.msra.mxu0 %v398_v12 }
  0x91   : > { %401 = vmatpush.bf16.msra.mxu0 %v384_v15 }
  0x92   : > { %v330_v16 = vpop.permute.xlu1 %329  ;;  %v328_v17 = vpop.permute.xlu0 %327 }
  0x93   : > { %v332_v21 = vsel %vm331_vm4, %v328_v17, %v330_v16 }
  0x94   : > { %v312_v30 = vpop.permute.xlu2 %311 }
  0x9a   : > { %v316_v19 = vpop.permute.xlu1 %315  ;;  %v336_v20 = vpop.permute.xlu0 %335 }
  0x9b   : > { %v338_v22 = vsel %vm337_vm5, %v334_v8, %v336_v20  ;;  %v320_v27 = vsel %vm319_vm6, %v316_v19, %v318_v18 }
  0x9c   : > { %v380_v23 = vsel %vm357_vm1, %v332_v21, %v338_v22  ;;  %v298_v42 = vpop.permute.xlu2 %297 }
  0x9d   : > { %402 = vmatpush.bf16.msra.mxu0 %v380_v23 }
  0xa2   : > { %v324_v25 = vpop.permute.xlu1 %323  ;;  %v322_v26 = vpop.permute.xlu0 %321 }
  0xa3   : > { %v326_v28 = vsel %vm325_vm7, %v322_v26, %v324_v25 }
  0xa4   : > { %v376_v29 = vsel %vm357_vm1, %v320_v27, %v326_v28  ;;  %v282_v48 = vpop.permute.xlu2 %281 }
  0xa5   : > { %403 = vmatpush.bf16.msra.mxu0 %v376_v29 }
  0xaa   : > { %v310_v31 = vpop.permute.xlu1 %309  ;;  %v306_v32 = vpop.permute.xlu0 %305 }
  0xab   : > { %v308_v33 = vsel %vm307_vm8, %v304_v24, %v306_v32  ;;  %v314_v34 = vsel %vm313_vm9, %v310_v31, %v312_v30 }
  0xac   : > { %v372_v35 = vsel %vm357_vm1, %v308_v33, %v314_v34  ;;  %v274_v54 = vpop.permute.xlu2 %273 }
  0xad   : > { %404 = vmatpush.bf16.msra.mxu0 %v372_v35 }
  0xb2   : > { %v294_v39 = vpop.permute.xlu1 %293  ;;  %v292_v40 = vpop.permute.xlu0 %291 }
  0xb3   : > { %v296_v45 = vsel %vm295_vm10, %v292_v40, %v294_v39 }
  0xb4   : > { %v424_v63 = vpop.permute.xlu2 %423 }
  0xba   : > { %v280_v43 = vpop.permute.xlu1 %279  ;;  %v300_v44 = vpop.permute.xlu0 %299 }
  0xbb   : > { %v302_v46 = vsel %vm301_vm11, %v298_v42, %v300_v44  ;;  %v284_v51 = vsel %vm283_vm12, %v280_v43, %v282_v48 }
  0xbc   : > { %v368_v47 = vsel %vm357_vm1, %v296_v45, %v302_v46 }
  0xbd   : > { %405 = vmatpush.bf16.msra.mxu0 %v368_v47 }
  0xc2   : > { %v288_v49 = vpop.permute.xlu1 %287  ;;  %v286_v50 = vpop.permute.xlu0 %285 }
  0xc3   : > { %v290_v52 = vsel %vm289_vm13, %v286_v50, %v288_v49 }
  0xc4   : > { %v364_v53 = vsel %vm357_vm1, %v284_v51, %v290_v52 }
  0xc5   : > { %406 = vmatpush.bf16.msra.mxu0 %v364_v53 }
  0xca   : > { %v276_v55 = vpop.permute.xlu0 %275  ;;  %v419_v59 = vpop.permute.xlu1 %418 }
  0xcb   : > { %v278_v56 = vsel %vm277_vm14, %v274_v54, %v276_v55 }
  0xcc   : > { %v360_v57 = vsel %vm357_vm1, %v711_v0, %v278_v56 }
  0xcd   : > { %407 = vmatpush.bf16.msra.mxu0 %v360_v57 }
  0xd0   : > { %564 = vmatmul.msk.bf16.vlgmr.msra.gmra.mxu0 %vm319_vm6, %v571_v58 }
  0xd2   : > { %v430_v62 = vpop.permute.xlu0 %429 }
  0xd3   : > { %v434_v3 = vpop.permute.xlu1 %433 }
 0x14d   : > { %v409_v60 = vpop.f32.mrf.mxu0 }
 0x14e   : > { %v426_v61 = vmul.f32 %v419_v59, %v409_v60 }
 0x150   : > { %v436_v1 = vadd.f32 %v430_v62, %v426_v61 }
 0x152   : > { %v440_v5 = vmul.f32 0.1, %v436_v1  ;;  %vm438_vm15 = vcmp.ge.f32.partialorder %v436_v1, 0.0 }
 0x154   : > { %v442_v7 = vsel %vm438_vm15, %v436_v1, %v440_v5 }
 0x155   : > { %v411_v2 = vpop.f32.mrf.mxu0 }
 0x156   : > { %v427_v4 = vmul.f32 %v424_v63, %v411_v2 }
 0x158   : > { %v437_v6 = vadd.f32 %v434_v3, %v427_v4 }
 0x15a   : > { %vm439_vm0 = vcmp.ge.f32.partialorder %v437_v6, 0.0  ;;  %v441_v0 = vmul.f32 0.1, %v437_v6 }
 0x15c   : > { %v443_v8 = vsel %vm439_vm0, %v437_v6, %v441_v0 }
 0x15d   : > { %v575_v9 = vpack.c.bf16 %v443_v8, %v442_v7 }
 0x15f   : > { %576 = vst [vmem:[%s266_s27] sm:$0xff] %v575_v9  }
 0x160 PF: > { %s14_s17 = sadd.s32 1, %s644_s17   ;;  %s763_s15 = smov %s640_s16 }
 0x161   : > { %p11_p5 = scmp.ge.s32.totalorder %s14_s17, 4   ;;  %s764_s16 = smov %s766_s18 }
 0x163   :  { %13 = sbr.rel (!%p11_p5) target bundleno = 2 (0x2), region = 69 }

// kernel: _lambda_.12
= control target key start
LH: loop header
LB: loop body
LE: loop exit
PB: predicated region body
PF: predicated region fallthrough
CT: control target
= control target key end

     0   :  { %s882_s15 = smov 0   ;;  %s884_s16 = smov 0   ;;  %s1003_s0 = inlined_call_operand.vmem [shape: bf16[2,16,256], index: 0, kind: input, shape index: {}, may-alias: {0,1}]   ;;  %s1004_s1 = inlined_call_operand.vmem [shape: bf16[2,16,256], index: 1, kind: input, shape index: {}, may-alias: {0,1}]   ;;  %s1005_s2 = inlined_call_operand.vmem [shape: bf16[24,240], index: 2, kind: input, shape index: {}]   ;;  %s1006_s3 = inlined_call_operand.vmem [shape: f32[24,2], index: 3, kind: input, shape index: {}]   ;;  %s1007_s4 = inlined_call_operand.vmem [shape: bf16[2,24,128], index: 4, kind: output, shape index: {}]  }
   0x1   :  { %s886_s17 = smov 0   ;;  %s888_s18 = smov 0  }
   0x2   :  { %s890_s19 = smov 0  }
   0x3 LB: > { %s26_s20 = sadd.s32 1, %s835_s18  ;;  %p42_p1 = scmp.ne.s32.totalorder %s827_s16, %s823_s15  ;;  %s839_s19 = sphi %s890_s19, %s14_s19   ;;  %s835_s18 = sphi %s888_s18, %s1012_s18   ;;  %s831_s17 = sphi %s886_s17, %s1011_s17   ;;  %s827_s16 = sphi %s884_s16, %s1010_s16   ;;  %s823_s15 = sphi %s882_s15, %s1009_s15  }
   0x4   : > { %p28_p0 = scmp.ge.s32.totalorder %s26_s20, 2  ;;  %p43_p2 = scmp.eq.s32.totalorder %s839_s19, 0 }
   0x5   : > { %s35_s23 = sadd.s32 1, %s827_s16  ;;  %p679_p5 = scmp.ge.s32.totalorder %s839_s19, 2 }
   0x6   : > { %s1014_s20 = smov (%p28_p0, %s26_s20), 0  ;;  %p913_p3 = por %p43_p2, %p42_p1 }
   0x7   : > { %s30_s22 = ssub.s32 %s835_s18, %s1014_s20  ;;  %174 = sbr.rel (%p679_p5) target bundleno = 24 (0x18), region = 24 }
   0x8   : > { %p33_p4 = scmp.eq.s32.totalorder %s30_s22, 0 }
   0xa   : > { %s921_s24 = scalar_select %p33_p4, %s827_s16, %s35_s23  }
   0xc   : > { %177 = sbr.rel (!%p913_p3) target bundleno = 18 (0x12), region = 28  ;;  %s179_s25 = sand.u32 (%p913_p3), 1, %s827_s16  }
   0xd   : > { %s712_s26 = sshll.u32 (%p913_p3), %s835_s18, 4  ;;  %s680_s27 = sshll.u32 (%p913_p3), %s179_s25, 3 }
   0xe   : > { %s185_s30 = scalar_lea.vmem (%p913_p3), %s1003_s0, %s712_s26  ;;  %s181_s5 = scalar_lea.vmem (%p913_p3), [#allocation2], %s680_s27 }
   0xf   : > { %v202_v0 = vld [vmem:[%s185_s30] sm:$0xf] (%p913_p3)  ;;  %v204_v1 = vld [vmem:[%s185_s30 + $0x8] sm:$0xf] (%p913_p3) }
  0x10   : > { %203 = vst [vmem:[%s181_s5] sm:$0xf] (%p913_p3), %v202_v0 }
  0x11   : > { %205 = vst [vmem:[%s181_s5 + $0x4] sm:$0xf] %v204_v1 }
  0x12 PF: > { %233 = sbr.rel (!%p913_p3) target bundleno = 24 (0x18), region = 69  ;;  %s235_s6 = sand.u32 (%p913_p3), 1, %s827_s16  }
  0x13   : > { %s713_s7 = sshll.u32 (%p913_p3), %s835_s18, 4  ;;  %s683_s8 = sshll.u32 (%p913_p3), %s235_s6, 3 }
  0x14   : > { %s608_s11 = scalar_lea.vmem (%p913_p3), %s1004_s1, %s713_s7  ;;  %s237_s12 = scalar_lea.vmem (%p913_p3), [#allocation3], %s683_s8 }
  0x15   : > { %v686_v2 = vld [vmem:[%s608_s11 + $0x4] sm:$0xf] (%p913_p3)  ;;  %v687_v3 = vld [vmem:[%s608_s11 + $0xc] sm:$0xf] (%p913_p3) }
  0x16   : > { %260 = vst [vmem:[%s237_s12] sm:$0xf] (%p913_p3), %v686_v2 }
  0x17   : > { %262 = vst [vmem:[%s237_s12 + $0x4] sm:$0xf] %v687_v3 }
  0x18 PF: > { %p688_p6 = scmp.ge.s32.totalorder %s839_s19, 1  ;;  %p289_p7 = scmp.lt.s32.totalorder %s839_s19, 3 }
  0x1a   : > { %p290_p8 = pnand %p688_p6, %p289_p7 }
  0x1b   : > { %s296_s13 = sand.u32 (!%p290_p8), 1, %s823_s15   ;;  %s841_s22 = smov (!%p290_p8), 122  }
  0x1c   : > { %293 = sbr.rel (%p290_p8) target bundleno = 371 (0x173), region = 110  ;;  %s689_s14 = sshll.u32 (!%p290_p8), %s296_s13, 3 }
  0x1d   : > { %s298_s21 = scalar_lea.vmem (!%p290_p8), [#allocation2], %s689_s14  ;;  %s842_s23 = smov (!%p290_p8), 121  }
  0x1e   : > { %s843_s25 = smov (!%p290_p8), 114   ;;  %s305_s26 = scalar_lea.vmem (!%p290_p8), [#allocation3], %s689_s14 }
  0x1f   : > { %s844_s27 = smov (!%p290_p8), 123   ;;  %s845_s15 = smov (!%p290_p8), 115  }
  0x20   : > { %s846_s28 = smov (!%p290_p8), 124   ;;  %s847_s29 = smov (!%p290_p8), 116  }
  0x21   : > { %v941_v4 = vld [vmem:[%s298_s21] sm:$0xff]  ;;  %v715_v5 = vld [vmem:[%s305_s26] sm:$0xff]  ;;  %s848_s30 = smov 125   ;;  %s849_s5 = smov 117   ;;  %vm455_vm0 = vcmask 932864   ;;  %vm406_vm1 = vcmask 990208  }
  0x22   : > { %395 = vrot.lane.b32.xlu1 %v941_v4, %s841_s22  ;;  %402 = vrot.lane.b32.xlu0 %v941_v4, %s842_s23  ;;  %s850_s6 = smov 126   ;;  %s851_s7 = smov 118   ;;  %vm399_vm2 = vcmask 998400   ;;  %vm392_vm3 = vcmask 1006592   ;;  %vm448_vm4 = vcmask 941056   ;;  %vm385_vm5 = vcmask 1014784  }
  0x23   : > { %451 = vrot.lane.b32.xlu2 %v941_v4, %s843_s25  ;;  %s852_s8 = smov 127   ;;  %s853_s9 = smov 119   ;;  %vm441_vm6 = vcmask 949248   ;;  %vm378_vm7 = vcmask 1022976   ;;  %vm434_vm8 = vcmask 957440   ;;  %v855_v33 = vmov 0  }
  0x24   : > { %s854_s10 = smov 120   ;;  %795 = vset.pattern.permute.xlu1 %v855_v33  ;;  %797 = vset.pattern.permute.xlu0 %v855_v33  ;;  %v519_v34 = vld [vmem:[%s1006_s3] sm:$0xff]  ;;  %v521_v36 = vld [vmem:[%s1006_s3 + $0x10] sm:$0xff]  ;;  %v520_v37 = vld [vmem:[%s1006_s3 + $0x8] sm:$0xff]  ;;  %vm371_vm9 = vcmask 1031168   ;;  %v856_v41 = vmov 1  }
  0x25   : > { %796 = vset.pattern.permute.xlu2 %v855_v33  ;;  %vm427_vm10 = vcmask 965632   ;;  %vm364_vm11 = vcmask 1039360   ;;  %v460_v45 = vld [vmem:[%s1005_s2 + $0x10] sm:$0xff]  ;;  %v702_v49 = vld [vmem:[%s1005_s2] sm:$0xf]  ;;  %vm420_vm12 = vcmask 973824  }
  0x26   : > { %v468_v48 = vunpack.c.l.b16 %v460_v45  ;;  %v717_v50 = vld [vmem:[%s1005_s2 + $0x4] sm:$0xf0]  ;;  %v469_v56 = vunpack.c.h.b16 %v460_v45  ;;  %vm413_vm13 = vcmask 982016   ;;  %v716_v58 = vld [vmem:[%s1005_s2 + $0x4] sm:$0xf]  ;;  %vm476_vm14 = vcmask 916480  }
  0x27   : > { %v703_v51 = vor.u32 %v717_v50, %v702_v49  ;;  %v704_v59 = vld [vmem:[%s1005_s2 + $0x8] sm:$0xf0]  ;;  %p336_p9 = scmp.lt.s32.totalorder %s831_s17, 1 }
  0x28   : > { %v472_v52 = vpack.c.b16 %v468_v48, %v468_v48  ;;  %v707_v62 = vor.u32 %v716_v58, %v704_v59  ;;  %v473_v63 = vpack.c.b16 %v469_v56, %v469_v56 }
  0x29   : > { %s1016_s17 = smov (!%p336_p9, %s831_s17), 1 }
  0x2a   : > { %397 = vrot.lane.b32.xlu1 %v715_v5, %s841_s22  ;;  %404 = vrot.lane.b32.xlu0 %v715_v5, %s842_s23 }
  0x2b   : > { %453 = vrot.lane.b32.xlu2 %v715_v5, %s843_s25 }
  0x32   : > { %390 = vrot.lane.b32.xlu1 %v715_v5, %s844_s27  ;;  %388 = vrot.lane.b32.xlu0 %v941_v4, %s844_s27 }
  0x33   : > { %444 = vrot.lane.b32.xlu2 %v941_v4, %s845_s15 }
  0x3a   : > { %381 = vrot.lane.b32.xlu1 %v941_v4, %s846_s28  ;;  %446 = vrot.lane.b32.xlu0 %v715_v5, %s845_s15 }
  0x3b   : > { %383 = vrot.lane.b32.xlu2 %v715_v5, %s846_s28 }
  0x42   : > { %439 = vrot.lane.b32.xlu1 %v715_v5, %s847_s29  ;;  %437 = vrot.lane.b32.xlu0 %v941_v4, %s847_s29 }
  0x43   : > { %374 = vrot.lane.b32.xlu2 %v941_v4, %s848_s30 }
  0x4a   : > { %430 = vrot.lane.b32.xlu1 %v941_v4, %s849_s5  ;;  %376 = vrot.lane.b32.xlu0 %v715_v5, %s848_s30 }
  0x4b   : > { %432 = vrot.lane.b32.xlu2 %v715_v5, %s849_s5 }
  0x52   : > { %369 = vrot.lane.b32.xlu1 %v715_v5, %s850_s6  ;;  %367 = vrot.lane.b32.xlu0 %v941_v4, %s850_s6 }
  0x53   : > { %423 = vrot.lane.b32.xlu2 %v941_v4, %s851_s7 }
  0x5a   : > { %360 = vrot.lane.b32.xlu1 %v941_v4, %s852_s8  ;;  %425 = vrot.lane.b32.xlu0 %v715_v5, %s851_s7  ;;  %s738_s7 = smul.u32 12, %s1016_s17 }
  0x5b   : > { %362 = vrot.lane.b32.xlu2 %v715_v5, %s852_s8 }
  0x62   : > { %418 = vrot.lane.b32.xlu1 %v715_v5, %s853_s9  ;;  %416 = vrot.lane.b32.xlu0 %v941_v4, %s853_s9 }
  0x63   : > { %409 = vrot.lane.b32.xlu2 %v941_v4, %s854_s10 }
  0x6a   : > { %411 = vrot.lane.b32.xlu0 %v715_v5, %s854_s10  ;;  %524 = vperm.xlu1 %795, %v519_v34   ;;  %s343_s10 = scalar_lea.vmem %s1007_s4, %s738_s7 }
  0x6b   : > { %529 = vperm.xlu2 %796, %v520_v37  }
  0x72   : > { %534 = vperm.xlu0 %797, %v521_v36   ;;  %798 = vset.pattern.permute.xlu1 %v856_v41 }
  0x73   : > { %541 = vperm.xlu1 %798, %v519_v34   ;;  %799 = vset.pattern.permute.xlu2 %v856_v41 }
  0x74   : > { %545 = vperm.xlu2 %799, %v520_v37  }
  0x7a   : > { %800 = vset.pattern.permute.xlu0 %v856_v41 }
  0x7b   : > { %549 = vperm.xlu1 %798, %v521_v36  }
  0x7d   : > { %v452_v6 = vpop.permute.xlu2 %451 }
  0x85   : > { %v454_v7 = vpop.permute.xlu2 %453 }
  0x86   : > { %v456_v8 = vsel %vm455_vm0, %v452_v6, %v454_v7 }
  0x87   : > { %502 = vmatpush.bf16.msra.mxu1 %v456_v8  ;;  %731 = vmatpush.bf16.msra.mxu3 %v456_v8 }
  0x8d   : > { %v445_v11 = vpop.permute.xlu2 %444 }
  0x94   : > { %v396_v9 = vpop.permute.xlu1 %395  ;;  %v403_v10 = vpop.permute.xlu0 %402 }
  0x95   : > { %v384_v16 = vpop.permute.xlu2 %383 }
  0x9c   : > { %v398_v12 = vpop.permute.xlu1 %397  ;;  %v405_v13 = vpop.permute.xlu0 %404 }
  0x9d   : > { %v407_v14 = vsel %vm406_vm1, %v403_v10, %v405_v13  ;;  %v400_v15 = vsel %vm399_vm2, %v396_v9, %v398_v12  ;;  %v375_v20 = vpop.permute.xlu2 %374 }
  0x9e   : > { %483 = vmatpush.bf16.msra.mxu0 %v407_v14  ;;  %723 = vmatpush.bf16.msra.mxu2 %v407_v14 }
  0xa2   : > { %484 = vmatpush.bf16.msra.mxu0 %v400_v15  ;;  %724 = vmatpush.bf16.msra.mxu2 %v400_v15 }
  0xa4   : > { %v391_v17 = vpop.permute.xlu1 %390  ;;  %v389_v18 = vpop.permute.xlu0 %388 }
  0xa5   : > { %v393_v19 = vsel %vm392_vm3, %v389_v18, %v391_v17  ;;  %v433_v28 = vpop.permute.xlu2 %432 }
  0xa6   : > { %485 = vmatpush.bf16.msra.mxu0 %v393_v19  ;;  %725 = vmatpush.bf16.msra.mxu2 %v393_v19 }
  0xac   : > { %v382_v21 = vpop.permute.xlu1 %381  ;;  %v447_v22 = vpop.permute.xlu0 %446 }
  0xad   : > { %v449_v23 = vsel %vm448_vm4, %v445_v11, %v447_v22  ;;  %v386_v24 = vsel %vm385_vm5, %v382_v21, %v384_v16  ;;  %v424_v35 = vpop.permute.xlu2 %423 }
  0xae   : > { %503 = vmatpush.bf16.msra.mxu1 %v449_v23  ;;  %732 = vmatpush.bf16.msra.mxu3 %v449_v23 }
  0xaf   : > { %486 = vmatpush.bf16.msra.mxu0 %v386_v24  ;;  %726 = vmatpush.bf16.msra.mxu2 %v386_v24 }
  0xb4   : > { %v440_v25 = vpop.permute.xlu1 %439  ;;  %v438_v26 = vpop.permute.xlu0 %437 }
  0xb5   : > { %v442_v27 = vsel %vm441_vm6, %v438_v26, %v440_v25  ;;  %v363_v42 = vpop.permute.xlu2 %362 }
  0xb6   : > { %504 = vmatpush.bf16.msra.mxu1 %v442_v27  ;;  %733 = vmatpush.bf16.msra.mxu3 %v442_v27 }
  0xbc   : > { %v431_v29 = vpop.permute.xlu1 %430  ;;  %v377_v30 = vpop.permute.xlu0 %376 }
  0xbd   : > { %v379_v31 = vsel %vm378_vm7, %v375_v20, %v377_v30  ;;  %v435_v32 = vsel %vm434_vm8, %v431_v29, %v433_v28  ;;  %v410_v57 = vpop.permute.xlu2 %409 }
  0xbe   : > { %487 = vmatpush.bf16.msra.mxu0 %v379_v31  ;;  %727 = vmatpush.bf16.msra.mxu2 %v379_v31 }
  0xbf   : > { %505 = vmatpush.bf16.msra.mxu1 %v435_v32  ;;  %734 = vmatpush.bf16.msra.mxu3 %v435_v32 }
  0xc4   : > { %v370_v38 = vpop.permute.xlu1 %369  ;;  %v368_v39 = vpop.permute.xlu0 %367 }
  0xc5   : > { %v372_v40 = vsel %vm371_vm9, %v368_v39, %v370_v38  ;;  %v530_v5 = vpop.permute.xlu2 %529 }
  0xc6   : > { %488 = vmatpush.bf16.msra.mxu0 %v372_v40  ;;  %728 = vmatpush.bf16.msra.mxu2 %v372_v40 }
  0xcc   : > { %v361_v43 = vpop.permute.xlu1 %360  ;;  %v426_v44 = vpop.permute.xlu0 %425 }
  0xcd   : > { %v428_v46 = vsel %vm427_vm10, %v424_v35, %v426_v44  ;;  %v365_v47 = vsel %vm364_vm11, %v361_v43, %v363_v42 }
  0xce   : > { %506 = vmatpush.bf16.msra.mxu1 %v428_v46  ;;  %735 = vmatpush.bf16.msra.mxu3 %v428_v46  ;;  %v546_v18 = vpop.permute.xlu2 %545 }
  0xcf   : > { %489 = vmatpush.bf16.msra.mxu0 %v365_v47  ;;  %729 = vmatpush.bf16.msra.mxu2 %v365_v47 }
  0xd3   : > { %490 = vmatpush.bf16.msra.mxu0 %v941_v4  ;;  %730 = vmatpush.bf16.msra.mxu2 %v941_v4 }
  0xd4   : > { %v419_v53 = vpop.permute.xlu1 %418  ;;  %v417_v54 = vpop.permute.xlu0 %416 }
  0xd5   : > { %v421_v55 = vsel %vm420_vm12, %v417_v54, %v419_v53 }
  0xd6   : > { %507 = vmatpush.bf16.msra.mxu1 %v421_v55  ;;  %736 = vmatpush.bf16.msra.mxu3 %v421_v55 }
  0xd7   : > { %491 = vmatmul.bf16.vlgmr.msra.gmra.mxu0 %v703_v51  ;;  %496 = vmatmul.bf16.vlgmr.msra.gmra.mxu2 %v472_v52 }
  0xdc   : > { %v412_v60 = vpop.permute.xlu0 %411  ;;  %v525_v0 = vpop.permute.xlu1 %524 }
  0xdd   : > { %v414_v61 = vsel %vm413_vm13, %v410_v57, %v412_v60 }
  0xde   : > { %508 = vmatpush.bf16.msra.mxu1 %v414_v61  ;;  %737 = vmatpush.bf16.msra.mxu3 %v414_v61 }
  0xe1   : > { %708 = vmatmul.msk.bf16.vlgmr.msra.gmra.mxu1 %vm476_vm14, %v707_v62  ;;  %709 = vmatmul.msk.bf16.vlgmr.msra.gmra.mxu3 %vm476_vm14, %v473_v63 }
  0xe4   : > { %v535_v10 = vpop.permute.xlu0 %534 }
  0xe5   : > { %v542_v3 = vpop.permute.xlu1 %541 }
  0xed   : > { %v550_v17 = vpop.permute.xlu1 %549 }
 0x154   : > { %v492_v2 = vpop.f32.mrf.mxu0 }
 0x15a   : > { %v497_v1 = vpop.f32.mrf.mxu2 }
 0x15c   : > { %v494_v12 = vpop.f32.mrf.mxu0 }
 0x15e   : > { %v510_v4 = vpop.f32.mrf.mxu1 }
 0x15f   : > { %v511_v6 = vadd.f32 %v510_v4, %v492_v2 }
 0x161   : > { %v537_v8 = vmul.f32 %v525_v0, %v511_v6 }
 0x162   : > { %v499_v7 = vpop.f32.mrf.mxu2 }
 0x163   : > { %v552_v14 = vadd.f32 %v542_v3, %v537_v8 }
 0x164   : > { %v515_v9 = vpop.f32.mrf.mxu3 }
 0x165   : > { %v516_v11 = vadd.f32 %v515_v9, %v497_v1  ;;  %v558_v21 = vmul.f32 0.1, %v552_v14  ;;  %vm555_vm0 = vcmp.ge.f32.partialorder %v552_v14, 0.0 }
 0x166   : > { %v512_v13 = vpop.f32.mrf.mxu1 }
 0x167   : > { %v513_v15 = vadd.f32 %v512_v13, %v494_v12  ;;  %v539_v16 = vmul.f32 %v535_v10, %v516_v11  ;;  %v561_v28 = vsel %vm555_vm0, %v552_v14, %v558_v21 }
 0x169   : > { %v554_v19 = vadd.f32 %v550_v17, %v539_v16  ;;  %v538_v20 = vmul.f32 %v530_v5, %v513_v15 }
 0x16b   : > { %vm557_vm15 = vcmp.ge.f32.partialorder %v554_v19, 0.0  ;;  %v560_v22 = vmul.f32 0.1, %v554_v19  ;;  %v553_v23 = vadd.f32 %v546_v18, %v538_v20 }
 0x16c   : > { %v517_v24 = vpop.f32.mrf.mxu3 }
 0x16d   : > { %v563_v25 = vsel %vm557_vm15, %v554_v19, %v560_v22  ;;  %vm556_vm1 = vcmp.ge.f32.partialorder %v553_v23, 0.0  ;;  %v559_v26 = vmul.f32 0.1, %v553_v23 }
 0x16e   : > { %v566_v27 = vpack.c.bf16 %v563_v25, %v563_v25 }
 0x16f   : > { %v562_v29 = vsel %vm556_vm1, %v553_v23, %v559_v26 }
 0x170   : > { %v721_v30 = vpack.c.bf16 %v562_v29, %v561_v28  ;;  %569 = vst [vmem:[%s343_s10 + $0x8] sm:$0xf] %v566_v27 }
 0x172   : > { %722 = vst [vmem:[%s343_s10] sm:$0xff] %v721_v30  }
 0x173 PF: > { %s14_s19 = sadd.s32 1, %s839_s19   ;;  %s1009_s15 = smov %s827_s16 }
 0x174   : > { %p11_p10 = scmp.ge.s32.totalorder %s14_s19, 4   ;;  %s1010_s16 = smov %s921_s24 }
 0x175   : > { %s1011_s17 = smov %s835_s18  ;;  %s1012_s18 = smov %s1014_s20 }
 0x176   :  { %13 = sbr.rel (!%p11_p10) target bundleno = 3 (0x3), region = 161 }

// kernel: _lambda_.13
= control target key start
LH: loop header
LB: loop body
LE: loop exit
PB: predicated region body
PF: predicated region fallthrough
CT: control target
= control target key end

     0   :  { %s1082_s15 = smov 0   ;;  %s1084_s16 = smov 0   ;;  %s1334_s0 = inlined_call_operand.vmem [shape: bf16[2,24,256], index: 0, kind: input, shape index: {}, may-alias: {0,1}]   ;;  %s1335_s1 = inlined_call_operand.vmem [shape: bf16[2,24,256], index: 1, kind: input, shape index: {}, may-alias: {0,1}]   ;;  %s1336_s2 = inlined_call_operand.vmem [shape: bf16[32,360], index: 2, kind: input, shape index: {}]   ;;  %s1337_s3 = inlined_call_operand.vmem [shape: f32[32,2], index: 3, kind: input, shape index: {}]   ;;  %s1338_s4 = inlined_call_operand.vmem [shape: bf16[2,32,128], index: 4, kind: output, shape index: {}]  }
   0x1   :  { %s1086_s17 = smov 0   ;;  %s1088_s18 = smov 0  }
   0x2   :  { %s1090_s19 = smov 0  }
   0x3 LB: > { %s26_s20 = sadd.s32 1, %s1035_s18  ;;  %p42_p1 = scmp.ne.s32.totalorder %s1027_s16, %s1023_s15  ;;  %s1039_s19 = sphi %s1090_s19, %s14_s19   ;;  %s1035_s18 = sphi %s1088_s18, %s1343_s18   ;;  %s1031_s17 = sphi %s1086_s17, %s1342_s17   ;;  %s1027_s16 = sphi %s1084_s16, %s1341_s16   ;;  %s1023_s15 = sphi %s1082_s15, %s1340_s15  }
   0x4   : > { %p28_p0 = scmp.ge.s32.totalorder %s26_s20, 2  ;;  %p43_p2 = scmp.eq.s32.totalorder %s1039_s19, 0 }
   0x5   : > { %s35_s23 = sadd.s32 1, %s1027_s16  ;;  %p862_p5 = scmp.ge.s32.totalorder %s1039_s19, 2 }
   0x6   : > { %s1345_s20 = smov (%p28_p0, %s26_s20), 0  ;;  %p1113_p3 = por %p43_p2, %p42_p1 }
   0x7   : > { %s30_s22 = ssub.s32 %s1035_s18, %s1345_s20  ;;  %174 = sbr.rel (%p862_p5) target bundleno = 28 (0x1c), region = 24 }
   0x8   : > { %p33_p4 = scmp.eq.s32.totalorder %s30_s22, 0 }
   0xa   : > { %s1121_s24 = scalar_select %p33_p4, %s1027_s16, %s35_s23  }
   0xc   : > { %177 = sbr.rel (!%p1113_p3) target bundleno = 20 (0x14), region = 28  ;;  %s179_s25 = sand.u32 (%p1113_p3), 1, %s1027_s16  }
   0xd   : > { %s936_s26 = smul.u32 (%p1113_p3), 24, %s1035_s18 }
   0xe   : > { %s935_s27 = smul.u32 (%p1113_p3), 12, %s179_s25 }
   0xf   : > { %s185_s30 = scalar_lea.vmem (%p1113_p3), %s1334_s0, %s936_s26 }
  0x10   : > { %v202_v0 = vld [vmem:[%s185_s30] sm:$0xf] (%p1113_p3)  ;;  %v204_v1 = vld [vmem:[%s185_s30 + $0x8] sm:$0xf] (%p1113_p3)  ;;  %s181_s5 = scalar_lea.vmem (%p1113_p3), [#allocation2], %s935_s27 }
  0x11   : > { %203 = vst [vmem:[%s181_s5] sm:$0xf] %v202_v0  ;;  %v206_v2 = vld [vmem:[%s185_s30 + $0x10] sm:$0xf] }
  0x12   : > { %205 = vst [vmem:[%s181_s5 + $0x4] sm:$0xf] %v204_v1 }
  0x13   : > { %207 = vst [vmem:[%s181_s5 + $0x8] sm:$0xf] %v206_v2 }
  0x14 PF: > { %237 = sbr.rel (!%p1113_p3) target bundleno = 28 (0x1c), region = 69  ;;  %s239_s6 = sand.u32 (%p1113_p3), 1, %s1027_s16  }
  0x15   : > { %s864_s7 = smul.u32 (%p1113_p3), 24, %s1035_s18 }
  0x16   : > { %s937_s8 = smul.u32 (%p1113_p3), 12, %s239_s6 }
  0x17   : > { %s791_s11 = scalar_lea.vmem (%p1113_p3), %s1335_s1, %s864_s7 }
  0x18   : > { %v865_v3 = vld [vmem:[%s791_s11 + $0x4] sm:$0xf] (%p1113_p3)  ;;  %v866_v4 = vld [vmem:[%s791_s11 + $0xc] sm:$0xf] (%p1113_p3)  ;;  %s241_s12 = scalar_lea.vmem (%p1113_p3), [#allocation3], %s937_s8 }
  0x19   : > { %264 = vst [vmem:[%s241_s12] sm:$0xf] %v865_v3  ;;  %v867_v5 = vld [vmem:[%s791_s11 + $0x14] sm:$0xf] }
  0x1a   : > { %266 = vst [vmem:[%s241_s12 + $0x4] sm:$0xf] %v866_v4 }
  0x1b   : > { %268 = vst [vmem:[%s241_s12 + $0x8] sm:$0xf] %v867_v5 }
  0x1c PF: > { %p868_p6 = scmp.ge.s32.totalorder %s1039_s19, 1  ;;  %p297_p7 = scmp.lt.s32.totalorder %s1039_s19, 3 }
  0x1e   : > { %p298_p8 = pnand %p868_p6, %p297_p7 }
  0x1f   : > { %s304_s13 = sand.u32 (!%p298_p8), 1, %s1023_s15   ;;  %s1041_s23 = smov (!%p298_p8), 118  }
  0x20   : > { %301 = sbr.rel (%p298_p8) target bundleno = 464 (0x1d0), region = 110  ;;  %s1042_s15 = smov (!%p298_p8), 114  }
  0x21   : > { %s938_s14 = smul.u32 (!%p298_p8), 12, %s304_s13  ;;  %s1043_s25 = smov (!%p298_p8), 119  }
  0x22   : > { %s1044_s26 = smov (!%p298_p8), 120   ;;  %s1045_s27 = smov (!%p298_p8), 115  }
  0x23   : > { %s306_s21 = scalar_lea.vmem (!%p298_p8), [#allocation2], %s938_s14  ;;  %s313_s22 = scalar_lea.vmem (!%p298_p8), [#allocation3], %s938_s14 }
  0x24   : > { %s1046_s28 = smov (!%p298_p8), 124   ;;  %s1047_s29 = smov (!%p298_p8), 123  }
  0x25   : > { %v1141_v6 = vld [vmem:[%s306_s21] sm:$0xff]  ;;  %v355_v7 = vld [vmem:[%s306_s21 + $0x8] sm:$0xf]  ;;  %vm376_vm0 = vcmask 1043456   ;;  %v1152_v14 = vld [vmem:[%s313_s22] sm:$0xff]  ;;  %s1048_s30 = smov 116  }
  0x26   : > { %v364_v8 = vunpack.c.l.b16 %v355_v7  ;;  %v358_v9 = vld [vmem:[%s313_s22 + $0x8] sm:$0xf]  ;;  %491 = vrot.lane.b32.xlu1 %v1141_v6, %s1041_s23  ;;  %v1148_v12 = vrot.slane %v1141_v6, 4  ;;  %v1160_v17 = vrot.slane %v1152_v14, 4  ;;  %s1049_s5 = smov 121   ;;  %s1050_s6 = smov 125  }
  0x27   : > { %v373_v11 = vunpack.c.l.b16 %v358_v9  ;;  %s1051_s7 = smov 122   ;;  %s1052_s8 = smov 117   ;;  %vm499_vm1 = vcmask 965632   ;;  %vm547_vm2 = vcmask 932864   ;;  %vm487_vm3 = vcmask 973824  }
  0x28   : > { %v1145_v10 = vpack.c.b16 %v364_v8, %v364_v8  ;;  %s1053_s9 = smov 126   ;;  %s1054_s10 = smov 127   ;;  %vm475_vm4 = vcmask 982016   ;;  %vm535_vm5 = vcmask 941056   ;;  %vm439_vm6 = vcmask 1006592  }
  0x29   : > { %v375_v15 = vpack.c.b16 %v373_v11, %v373_v11  ;;  %vm427_vm7 = vcmask 1014784   ;;  %vm523_vm8 = vcmask 949248   ;;  %vm463_vm9 = vcmask 990208   ;;  %p344_p9 = scmp.lt.s32.totalorder %s1031_s17, 1 }
  0x2a   : > { %543 = vrot.lane.b32.xlu0 %v1145_v10, %s1042_s15  ;;  %v379_v13 = vrot.slane %v1145_v10, 4  ;;  %vm415_vm10 = vcmask 1022976   ;;  %vm451_vm11 = vcmask 998400   ;;  %vm511_vm12 = vcmask 957440  }
  0x2b   : > { %v381_v18 = vrot.slane %v375_v15, 4  ;;  %vm403_vm13 = vcmask 1031168   ;;  %vm618_vm14 = vcmask 850944   ;;  %vm391_vm15 = vcmask 1039360   ;;  %s1347_s17 = smov (!%p344_p9, %s1031_s17), 1 }
  0x2c   : > { %v1156_v16 = vsel %vm376_vm0, %v1148_v12, %v379_v13 }
  0x2d   : > { %483 = vrot.lane.b32.xlu2 %v1156_v16, %s1043_s25  ;;  %v1166_v19 = vsel %vm376_vm0, %v1160_v17, %v381_v18 }
  0x2e   : > { %493 = vrot.lane.b32.xlu1 %v1152_v14, %s1041_s23 }
  0x32   : > { %545 = vrot.lane.b32.xlu0 %v375_v15, %s1042_s15 }
  0x35   : > { %485 = vrot.lane.b32.xlu2 %v1166_v19, %s1043_s25 }
  0x36   : > { %541 = vrot.lane.b32.xlu1 %v1152_v14, %s1042_s15 }
  0x3a   : > { %539 = vrot.lane.b32.xlu0 %v1141_v6, %s1042_s15 }
  0x3d   : > { %471 = vrot.lane.b32.xlu2 %v1145_v10, %s1044_s26 }
  0x3e   : > { %479 = vrot.lane.b32.xlu1 %v1148_v12, %s1043_s25 }
  0x42   : > { %473 = vrot.lane.b32.xlu0 %v375_v15, %s1044_s26 }
  0x45   : > { %481 = vrot.lane.b32.xlu2 %v1160_v17, %s1043_s25 }
  0x46   : > { %533 = vrot.lane.b32.xlu1 %v1166_v19, %s1045_s27 }
  0x4a   : > { %531 = vrot.lane.b32.xlu0 %v1156_v16, %s1045_s27 }
  0x4d   : > { %423 = vrot.lane.b32.xlu2 %v1145_v10, %s1046_s28 }
  0x4e   : > { %431 = vrot.lane.b32.xlu1 %v1148_v12, %s1047_s29 }
  0x52   : > { %425 = vrot.lane.b32.xlu0 %v375_v15, %s1046_s28 }
  0x55   : > { %433 = vrot.lane.b32.xlu2 %v1160_v17, %s1047_s29 }
  0x56   : > { %521 = vrot.lane.b32.xlu1 %v375_v15, %s1048_s30 }
  0x5a   : > { %519 = vrot.lane.b32.xlu0 %v1145_v10, %s1048_s30 }
  0x5d   : > { %527 = vrot.lane.b32.xlu2 %v1148_v12, %s1045_s27 }
  0x5e   : > { %467 = vrot.lane.b32.xlu1 %v1141_v6, %s1044_s26 }
  0x62   : > { %529 = vrot.lane.b32.xlu0 %v1160_v17, %s1045_s27 }
  0x65   : > { %469 = vrot.lane.b32.xlu2 %v1152_v14, %s1044_s26 }
  0x66   : > { %421 = vrot.lane.b32.xlu1 %v1152_v14, %s1046_s28 }
  0x6a   : > { %419 = vrot.lane.b32.xlu0 %v1141_v6, %s1046_s28 }
  0x6d   : > { %459 = vrot.lane.b32.xlu2 %v1156_v16, %s1049_s5 }
  0x6e   : > { %515 = vrot.lane.b32.xlu1 %v1141_v6, %s1048_s30 }
  0x72   : > { %461 = vrot.lane.b32.xlu0 %v1166_v19, %s1049_s5 }
  0x75   : > { %517 = vrot.lane.b32.xlu2 %v1152_v14, %s1048_s30 }
  0x76   : > { %413 = vrot.lane.b32.xlu1 %v1166_v19, %s1050_s6 }
  0x7a   : > { %411 = vrot.lane.b32.xlu0 %v1156_v16, %s1050_s6 }
  0x7d   : > { %447 = vrot.lane.b32.xlu2 %v1145_v10, %s1051_s7 }
  0x7e   : > { %455 = vrot.lane.b32.xlu1 %v1148_v12, %s1049_s5 }
  0x82   : > { %449 = vrot.lane.b32.xlu0 %v375_v15, %s1051_s7 }
  0x85   : > { %457 = vrot.lane.b32.xlu2 %v1160_v17, %s1049_s5 }
  0x86   : > { %509 = vrot.lane.b32.xlu1 %v1166_v19, %s1052_s8 }
  0x87   : > { %v484_v20 = vpop.permute.xlu2 %483 }
  0x8a   : > { %507 = vrot.lane.b32.xlu0 %v1156_v16, %s1052_s8 }
  0x8d   : > { %399 = vrot.lane.b32.xlu2 %v1145_v10, %s1053_s9 }
  0x8e   : > { %407 = vrot.lane.b32.xlu1 %v1148_v12, %s1050_s6 }
  0x8f   : > { %v486_v21 = vpop.permute.xlu2 %485 }
  0x90   : > { %v489_v31 = vsel %vm487_vm3, %v484_v20, %v486_v21 }
  0x92   : > { %401 = vrot.lane.b32.xlu0 %v375_v15, %s1053_s9 }
  0x95   : > { %409 = vrot.lane.b32.xlu2 %v1160_v17, %s1050_s6 }
  0x96   : > { %497 = vrot.lane.b32.xlu1 %v375_v15, %s1041_s23 }
  0x97   : > { %v472_v22 = vpop.permute.xlu2 %471 }
  0x98   : > { %v492_v23 = vpop.permute.xlu1 %491 }
  0x9a   : > { %495 = vrot.lane.b32.xlu0 %v1145_v10, %s1041_s23 }
  0x9c   : > { %v544_v24 = vpop.permute.xlu0 %543 }
  0x9d   : > { %503 = vrot.lane.b32.xlu2 %v1148_v12, %s1052_s8 }
  0x9e   : > { %443 = vrot.lane.b32.xlu1 %v1141_v6, %s1051_s7 }
  0x9f   : > { %v482_v25 = vpop.permute.xlu2 %481 }
  0xa0   : > { %v494_v26 = vpop.permute.xlu1 %493 }
  0xa1   : > { %v500_v27 = vsel %vm499_vm1, %v492_v23, %v494_v26 }
  0xa2   : > { %505 = vrot.lane.b32.xlu0 %v1160_v17, %s1052_s8  ;;  %647 = vmatpush.bf16.msra.mxu1 %v500_v27 }
  0xa4   : > { %v546_v28 = vpop.permute.xlu0 %545 }
  0xa5   : > { %v549_v29 = vsel %vm547_vm2, %v544_v24, %v546_v28  ;;  %445 = vrot.lane.b32.xlu2 %v1152_v14, %s1051_s7 }
  0xa6   : > { %v626_v30 = vsel %vm376_vm0, %v549_v29, 0  ;;  %648 = vmatpush.bf16.msra.mxu1 %v489_v31  ;;  %397 = vrot.lane.b32.xlu1 %v1152_v14, %s1053_s9 }
  0xa7   : > { %667 = vmatpush.bf16.msra.mxu2 %v626_v30  ;;  %v424_v32 = vpop.permute.xlu2 %423 }
  0xa8   : > { %v542_v33 = vpop.permute.xlu1 %541 }
  0xaa   : > { %395 = vrot.lane.b32.xlu0 %v1141_v6, %s1053_s9 }
  0xac   : > { %v540_v34 = vpop.permute.xlu0 %539 }
  0xad   : > { %v548_v35 = vsel %vm547_vm2, %v540_v34, %v542_v33  ;;  %435 = vrot.lane.b32.xlu2 %v1156_v16, %s1047_s29  ;;  %v889_v33 = vld [vmem:[%s1336_s2 + $0x8] sm:$0xf]  ;;  %v912_v34 = vld [vmem:[%s1336_s2 + $0x10] sm:$0xf0] }
  0xae   : > { %668 = vmatpush.bf16.msra.mxu2 %v548_v35  ;;  %387 = vrot.lane.b32.xlu1 %v1156_v16, %s1054_s10 }
  0xaf   : > { %v434_v36 = vpop.permute.xlu2 %433 }
  0xb0   : > { %v480_v37 = vpop.permute.xlu1 %479 }
  0xb1   : > { %v488_v38 = vsel %vm487_vm3, %v480_v37, %v482_v25 }
  0xb2   : > { %437 = vrot.lane.b32.xlu0 %v1166_v19, %s1047_s29  ;;  %s907_s29 = sshll.u32 %s1347_s17, 4 }
  0xb3   : > { %s351_s6 = scalar_lea.vmem %s1338_s4, %s907_s29 }
  0xb4   : > { %v474_v39 = vpop.permute.xlu0 %473 }
  0xb5   : > { %v477_v40 = vsel %vm475_vm4, %v472_v22, %v474_v39  ;;  %389 = vrot.lane.b32.xlu2 %v1166_v19, %s1054_s10 }
  0xb6   : > { %v570_v41 = vsel %vm376_vm0, %v477_v40, %v488_v38  ;;  %385 = vrot.lane.b32.xlu1 %v1160_v17, %s1054_s10  ;;  %v890_v40 = vor.u32 %v912_v34, %v889_v33 }
  0xb7   : > { %649 = vmatpush.bf16.msra.mxu1 %v570_v41  ;;  %v528_v42 = vpop.permute.xlu2 %527  ;;  %v687_v41 = vld [vmem:[%s1337_s3 + $0x10] sm:$0xff] }
  0xb8   : > { %v534_v43 = vpop.permute.xlu1 %533 }
  0xba   : > { %383 = vrot.lane.b32.xlu0 %v1148_v12, %s1054_s10 }
  0xbc   : > { %v532_v44 = vpop.permute.xlu0 %531 }
  0xbd   : > { %v537_v45 = vsel %vm535_vm5, %v532_v44, %v534_v43  ;;  %v1055_v44 = vmov 0  }
  0xbe   : > { %669 = vmatpush.bf16.msra.mxu2 %v537_v45  ;;  %997 = vset.pattern.permute.xlu1 %v1055_v44 }
  0xbf   : > { %v470_v46 = vpop.permute.xlu2 %469  ;;  %701 = vperm.xlu1 %997, %v687_v41   ;;  %996 = vset.pattern.permute.xlu0 %v1055_v44 }
  0xc0   : > { %v432_v47 = vpop.permute.xlu1 %431  ;;  %995 = vset.pattern.permute.xlu2 %v1055_v44 }
  0xc1   : > { %v440_v48 = vsel %vm439_vm6, %v432_v47, %v434_v36 }
  0xc4   : > { %v426_v49 = vpop.permute.xlu0 %425 }
  0xc5   : > { %v429_v50 = vsel %vm427_vm7, %v424_v32, %v426_v49 }
  0xc6   : > { %v562_v51 = vsel %vm376_vm0, %v429_v50, %v440_v48  ;;  %v910_v50 = vld [vmem:[%s1336_s2 + $0x4] sm:$0xf] }
  0xc7   : > { %628 = vmatpush.bf16.msra.mxu0 %v562_v51  ;;  %927 = vmatpush.bf16.msra.mxu3 %v562_v51  ;;  %v460_v52 = vpop.permute.xlu2 %459  ;;  %v883_v51 = vld [vmem:[%s1336_s2 + $0xc] sm:$0xf0] }
  0xc8   : > { %v522_v53 = vpop.permute.xlu1 %521 }
  0xcc   : > { %v520_v54 = vpop.permute.xlu0 %519 }
  0xcd   : > { %v525_v59 = vsel %vm523_vm8, %v520_v54, %v522_v53  ;;  %v901_v53 = vld [vmem:[%s1336_s2 + $0x20] sm:$0xf]  ;;  %v915_v54 = vld [vmem:[%s1336_s2 + $0x28] sm:$0xf0] }
  0xcf   : > { %v518_v55 = vpop.permute.xlu2 %517 }
  0xd0   : > { %v468_v56 = vpop.permute.xlu1 %467 }
  0xd1   : > { %v476_v57 = vsel %vm475_vm4, %v468_v56, %v470_v46  ;;  %v685_v46 = vld [vmem:[%s1337_s3] sm:$0xff] }
  0xd2   : > { %650 = vmatpush.bf16.msra.mxu1 %v476_v57  ;;  %691 = vperm.xlu2 %995, %v685_v46  }
  0xd4   : > { %v530_v58 = vpop.permute.xlu0 %529 }
  0xd5   : > { %v536_v60 = vsel %vm535_vm5, %v528_v42, %v530_v58  ;;  %v686_v42 = vld [vmem:[%s1337_s3 + $0x8] sm:$0xff]  ;;  %v886_v58 = vor.u32 %v910_v50, %v883_v51 }
  0xd6   : > { %v578_v61 = vsel %vm376_vm0, %v525_v59, %v536_v60  ;;  %696 = vperm.xlu0 %996, %v686_v42   ;;  %v902_v59 = vor.u32 %v915_v54, %v901_v53  ;;  %v688_v60 = vld [vmem:[%s1337_s3 + $0x18] sm:$0xff] }
  0xd7   : > { %670 = vmatpush.bf16.msra.mxu2 %v578_v61  ;;  %v448_v63 = vpop.permute.xlu2 %447 }
  0xd8   : > { %v422_v62 = vpop.permute.xlu1 %421 }
  0xda   : > { %706 = vperm.xlu2 %995, %v688_v60  }
  0xdc   : > { %v420_v0 = vpop.permute.xlu0 %419 }
  0xdd   : > { %v428_v1 = vsel %vm427_vm7, %v420_v0, %v422_v62 }
  0xde   : > { %629 = vmatpush.bf16.msra.mxu0 %v428_v1  ;;  %928 = vmatpush.bf16.msra.mxu3 %v428_v1  ;;  %v881_v1 = vld [vmem:[%s1336_s2] sm:$0xf] }
  0xdf   : > { %v458_v5 = vpop.permute.xlu2 %457 }
  0xe0   : > { %v516_v2 = vpop.permute.xlu1 %515 }
  0xe1   : > { %v524_v3 = vsel %vm523_vm8, %v516_v2, %v518_v55  ;;  %v1056_v55 = vmov 1   ;;  %v911_v2 = vld [vmem:[%s1336_s2 + $0x8] sm:$0xf0] }
  0xe2   : > { %671 = vmatpush.bf16.msra.mxu2 %v524_v3  ;;  %998 = vset.pattern.permute.xlu1 %v1056_v55  ;;  %v893_v3 = vld [vmem:[%s1336_s2 + $0x18] sm:$0xf] }
  0xe3   : > { %714 = vperm.xlu1 %998, %v685_v46   ;;  %1000 = vset.pattern.permute.xlu0 %v1056_v55 }
  0xe4   : > { %v462_v4 = vpop.permute.xlu0 %461  ;;  %722 = vperm.xlu0 %1000, %v687_v41   ;;  %999 = vset.pattern.permute.xlu2 %v1056_v55 }
  0xe5   : > { %v465_v7 = vsel %vm463_vm9, %v460_v52, %v462_v4  ;;  %v914_v4 = vld [vmem:[%s1336_s2 + $0x20] sm:$0xf0]  ;;  %718 = vperm.xlu2 %999, %v686_v42  }
  0xe6   : > { %651 = vmatpush.bf16.msra.mxu1 %v465_v7  ;;  %v913_v7 = vld [vmem:[%s1336_s2 + $0x1c] sm:$0xf] }
  0xe7   : > { %v400_v12 = vpop.permute.xlu2 %399 }
  0xe8   : > { %v414_v8 = vpop.permute.xlu1 %413 }
  0xeb   : > { %726 = vperm.xlu1 %998, %v688_v60  }
  0xec   : > { %v412_v9 = vpop.permute.xlu0 %411 }
  0xed   : > { %v417_v11 = vsel %vm415_vm10, %v412_v9, %v414_v8  ;;  %v895_v8 = vld [vmem:[%s1336_s2 + $0x24] sm:$0xf0] }
  0xee   : > { %630 = vmatpush.bf16.msra.mxu0 %v417_v11  ;;  %929 = vmatpush.bf16.msra.mxu3 %v417_v11  ;;  %v898_v9 = vor.u32 %v913_v7, %v895_v8 }
  0xef   : > { %v410_v18 = vpop.permute.xlu2 %409 }
  0xf0   : > { %v456_v13 = vpop.permute.xlu1 %455 }
  0xf1   : > { %v464_v14 = vsel %vm463_vm9, %v456_v13, %v458_v5  ;;  %v894_v5 = vor.u32 %v914_v4, %v893_v3 }
  0xf4   : > { %v450_v15 = vpop.permute.xlu0 %449 }
  0xf5   : > { %v453_v16 = vsel %vm451_vm11, %v448_v63, %v450_v15 }
  0xf6   : > { %v566_v17 = vsel %vm376_vm0, %v453_v16, %v464_v14 }
  0xf7   : > { %652 = vmatpush.bf16.msra.mxu1 %v566_v17  ;;  %v504_v23 = vpop.permute.xlu2 %503 }
  0xf8   : > { %v510_v19 = vpop.permute.xlu1 %509 }
  0xfc   : > { %v508_v20 = vpop.permute.xlu0 %507 }
  0xfd   : > { %v513_v21 = vsel %vm511_vm12, %v508_v20, %v510_v19 }
  0xfe   : > { %672 = vmatpush.bf16.msra.mxu2 %v513_v21 }
  0xff   : > { %v446_v30 = vpop.permute.xlu2 %445 }
 0x100   : > { %v408_v22 = vpop.permute.xlu1 %407 }
 0x101   : > { %v416_v24 = vsel %vm415_vm10, %v408_v22, %v410_v18 }
 0x104   : > { %v402_v25 = vpop.permute.xlu0 %401 }
 0x105   : > { %v405_v26 = vsel %vm403_vm13, %v400_v12, %v402_v25 }
 0x106   : > { %v558_v27 = vsel %vm376_vm0, %v405_v26, %v416_v24 }
 0x107   : > { %631 = vmatpush.bf16.msra.mxu0 %v558_v27  ;;  %930 = vmatpush.bf16.msra.mxu3 %v558_v27  ;;  %v436_v39 = vpop.permute.xlu2 %435 }
 0x108   : > { %v498_v28 = vpop.permute.xlu1 %497 }
 0x10c   : > { %v496_v29 = vpop.permute.xlu0 %495 }
 0x10d   : > { %v501_v36 = vsel %vm499_vm1, %v496_v29, %v498_v28 }
 0x10f   : > { %v390_v48 = vpop.permute.xlu2 %389 }
 0x110   : > { %v444_v31 = vpop.permute.xlu1 %443 }
 0x111   : > { %v452_v32 = vsel %vm451_vm11, %v444_v31, %v446_v30 }
 0x112   : > { %653 = vmatpush.bf16.msra.mxu1 %v452_v32 }
 0x114   : > { %v506_v35 = vpop.permute.xlu0 %505 }
 0x115   : > { %v512_v37 = vsel %vm511_vm12, %v504_v23, %v506_v35 }
 0x116   : > { %v574_v38 = vsel %vm376_vm0, %v501_v36, %v512_v37 }
 0x117   : > { %673 = vmatpush.bf16.msra.mxu2 %v574_v38 }
 0x118   : > { %v398_v43 = vpop.permute.xlu1 %397 }
 0x11a   : > { %903 = vmatmul.msk.bf16.vlgmr.msra.gmra.mxu2 %vm618_vm14, %v890_v40 }
 0x11c   : > { %v396_v45 = vpop.permute.xlu0 %395 }
 0x11d   : > { %v404_v47 = vsel %vm403_vm13, %v396_v45, %v398_v43 }
 0x11e   : > { %632 = vmatpush.bf16.msra.mxu0 %v404_v47  ;;  %931 = vmatpush.bf16.msra.mxu3 %v404_v47 }
 0x120   : > { %v388_v49 = vpop.permute.xlu1 %387 }
 0x121   : > { %v393_v52 = vsel %vm391_vm15, %v388_v49, %v390_v48 }
 0x122   : > { %633 = vmatpush.bf16.msra.mxu0 %v393_v52  ;;  %932 = vmatpush.bf16.msra.mxu3 %v393_v52 }
 0x124   : > { %v438_v56 = vpop.permute.xlu0 %437 }
 0x125   : > { %v441_v57 = vsel %vm439_vm6, %v436_v39, %v438_v56 }
 0x126   : > { %654 = vmatpush.bf16.msra.mxu1 %v441_v57 }
 0x128   : > { %v386_v61 = vpop.permute.xlu1 %385 }
 0x129   : > { %655 = vmatmul.bf16.vlgmr.msra.gmra.mxu1 %v886_v58 }
 0x12a   : > { %904 = vmatmul.msk.bf16.gmra.mxu2 %vm618_vm14, %v902_v59 }
 0x12c   : > { %v384_v62 = vpop.permute.xlu0 %383  ;;  %v692_v13 = vpop.permute.xlu2 %691 }
 0x12d   : > { %v392_v63 = vsel %vm391_vm15, %v384_v62, %v386_v61 }
 0x12e   : > { %v554_v0 = vsel %vm376_vm0, %v1145_v10, %v392_v63  ;;  %v882_v10 = vor.u32 %v911_v2, %v881_v1 }
 0x12f   : > { %634 = vmatpush.bf16.msra.mxu0 %v554_v0  ;;  %933 = vmatpush.bf16.msra.mxu3 %v554_v0 }
 0x131   : > { %v702_v16 = vpop.permute.xlu1 %701 }
 0x133   : > { %635 = vmatpush.bf16.msra.mxu0 %v1141_v6  ;;  %934 = vmatpush.bf16.msra.mxu3 %v1141_v6 }
 0x134   : > { %v707_v22 = vpop.permute.xlu2 %706 }
 0x136   : > { %636 = vmatmul.bf16.vlgmr.msra.gmra.mxu0 %v882_v10  ;;  %641 = vmatmul.bf16.vlgmr.msra.gmra.mxu3 %v894_v5 }
 0x139   : > { %660 = vmatmul.bf16.gmra.mxu1 %v898_v9 }
 0x13f   : > { %v719_v32 = vpop.permute.xlu2 %718 }
 0x148   : > { %v697_v20 = vpop.permute.xlu0 %696 }
 0x155   : > { %v715_v29 = vpop.permute.xlu1 %714 }
 0x156   : > { %v723_v33 = vpop.permute.xlu0 %722 }
 0x15d   : > { %v727_v48 = vpop.permute.xlu1 %726 }
 0x19d   : > { %v675_v11 = vpop.f32.mrf.mxu2 }
 0x1a5   : > { %v677_v15 = vpop.f32.mrf.mxu2 }
 0x1a6   : > { %v656_v12 = vpop.f32.mrf.mxu1 }
 0x1ad   : > { %v680_v23 = vpop.f32.mrf.mxu2 }
 0x1ae   : > { %v658_v14 = vpop.f32.mrf.mxu1 }
 0x1b3   : > { %v637_v17 = vpop.f32.mrf.mxu0 }
 0x1b4   : > { %v657_v18 = vadd.f32 %v656_v12, %v637_v17 }
 0x1b5   : > { %v682_v41 = vpop.f32.mrf.mxu2 }
 0x1b6   : > { %v676_v19 = vadd.f32 %v675_v11, %v657_v18  ;;  %v661_v21 = vpop.f32.mrf.mxu1 }
 0x1b8   : > { %v709_v24 = vmul.f32 %v692_v13, %v676_v19 }
 0x1b9   : > { %v642_v6 = vpop.f32.mrf.mxu3 }
 0x1ba   : > { %v662_v25 = vadd.f32 %v661_v21, %v642_v6  ;;  %v729_v30 = vadd.f32 %v715_v29, %v709_v24 }
 0x1bb   : > { %v639_v26 = vpop.f32.mrf.mxu0 }
 0x1bc   : > { %v681_v27 = vadd.f32 %v680_v23, %v662_v25  ;;  %v659_v28 = vadd.f32 %v658_v14, %v639_v26  ;;  %v737_v38 = vmul.f32 0.1, %v729_v30  ;;  %vm733_vm0 = vcmp.ge.f32.partialorder %v729_v30, 0.0 }
 0x1be   : > { %v678_v31 = vadd.f32 %v677_v15, %v659_v28  ;;  %v711_v34 = vmul.f32 %v702_v16, %v681_v27  ;;  %v663_v36 = vpop.f32.mrf.mxu1  ;;  %v741_v45 = vsel %vm733_vm0, %v729_v30, %v737_v38 }
 0x1c0   : > { %v710_v35 = vmul.f32 %v697_v20, %v678_v31  ;;  %v731_v42 = vadd.f32 %v723_v33, %v711_v34 }
 0x1c1   : > { %v644_v37 = vpop.f32.mrf.mxu3 }
 0x1c2   : > { %v664_v39 = vadd.f32 %v663_v36, %v644_v37  ;;  %v730_v40 = vadd.f32 %v719_v32, %v710_v35  ;;  %v739_v50 = vmul.f32 0.1, %v731_v42  ;;  %vm735_vm2 = vcmp.ge.f32.partialorder %v731_v42, 0.0 }
 0x1c4   : > { %v683_v43 = vadd.f32 %v682_v41, %v664_v39  ;;  %vm734_vm1 = vcmp.ge.f32.partialorder %v730_v40, 0.0  ;;  %v738_v44 = vmul.f32 0.1, %v730_v40  ;;  %v743_v53 = vsel %vm735_vm2, %v731_v42, %v739_v50 }
 0x1c6   : > { %v712_v46 = vmul.f32 %v707_v22, %v683_v43  ;;  %v742_v47 = vsel %vm734_vm1, %v730_v40, %v738_v44 }
 0x1c7   : > { %v919_v49 = vpack.c.bf16 %v742_v47, %v741_v45 }
 0x1c8   : > { %v732_v51 = vadd.f32 %v727_v48, %v712_v46 }
 0x1c9   : > { %920 = vst [vmem:[%s351_s6] sm:$0xff] %v919_v49  }
 0x1ca   : > { %vm736_vm3 = vcmp.ge.f32.partialorder %v732_v51, 0.0  ;;  %v740_v52 = vmul.f32 0.1, %v732_v51 }
 0x1cc   : > { %v744_v54 = vsel %vm736_vm3, %v732_v51, %v740_v52 }
 0x1cd   : > { %v924_v55 = vpack.c.bf16 %v744_v54, %v743_v53 }
 0x1cf   : > { %926 = vst [vmem:[%s351_s6 + $0x8] sm:$0xff] %v924_v55  }
 0x1d0 PF: > { %s14_s19 = sadd.s32 1, %s1039_s19   ;;  %s1340_s15 = smov %s1027_s16 }
 0x1d1   : > { %p11_p10 = scmp.ge.s32.totalorder %s14_s19, 4   ;;  %s1341_s16 = smov %s1121_s24 }
 0x1d2   : > { %s1342_s17 = smov %s1035_s18  ;;  %s1343_s18 = smov %s1345_s20 }
 0x1d3   :  { %13 = sbr.rel (!%p11_p10) target bundleno = 3 (0x3), region = 161 }

// kernel: _lambda_.14
= control target key start
LH: loop header
LB: loop body
LE: loop exit
PB: predicated region body
PF: predicated region fallthrough
CT: control target
= control target key end

     0   :  { %s1116_s15 = smov 0   ;;  %s1118_s16 = smov 0   ;;  %s1349_s0 = inlined_call_operand.vmem [shape: bf16[2,32,256], index: 0, kind: input, shape index: {}, may-alias: {0,1}]   ;;  %s1350_s1 = inlined_call_operand.vmem [shape: bf16[2,32,256], index: 1, kind: input, shape index: {}, may-alias: {0,1}]   ;;  %s1351_s2 = inlined_call_operand.vmem [shape: bf16[32,480], index: 2, kind: input, shape index: {}]   ;;  %s1352_s3 = inlined_call_operand.vmem [shape: f32[32,2], index: 3, kind: input, shape index: {}]   ;;  %s1353_s4 = inlined_call_operand.vmem [shape: bf16[2,32,128], index: 4, kind: output, shape index: {}]  }
   0x1   :  { %s1120_s17 = smov 0   ;;  %s1122_s18 = smov 0  }
   0x2   :  { %s1124_s19 = smov 0  }
   0x3 LB: > { %s26_s20 = sadd.s32 1, %s1069_s18  ;;  %p42_p1 = scmp.ne.s32.totalorder %s1061_s16, %s1057_s15  ;;  %s1073_s19 = sphi %s1124_s19, %s14_s19   ;;  %s1069_s18 = sphi %s1122_s18, %s1358_s18   ;;  %s1065_s17 = sphi %s1120_s17, %s1357_s17   ;;  %s1061_s16 = sphi %s1118_s16, %s1356_s16   ;;  %s1057_s15 = sphi %s1116_s15, %s1355_s15  }
   0x4   : > { %p28_p0 = scmp.ge.s32.totalorder %s26_s20, 2  ;;  %p43_p2 = scmp.eq.s32.totalorder %s1073_s19, 0 }
   0x5   : > { %s35_s23 = sadd.s32 1, %s1061_s16  ;;  %p879_p5 = scmp.ge.s32.totalorder %s1073_s19, 2 }
   0x6   : > { %s1360_s20 = smov (%p28_p0, %s26_s20), 0  ;;  %p1147_p3 = por %p43_p2, %p42_p1 }
   0x7   : > { %s30_s22 = ssub.s32 %s1069_s18, %s1360_s20  ;;  %174 = sbr.rel (%p879_p5) target bundleno = 28 (0x1c), region = 24 }
   0x8   : > { %p33_p4 = scmp.eq.s32.totalorder %s30_s22, 0 }
   0xa   : > { %s1155_s24 = scalar_select %p33_p4, %s1061_s16, %s35_s23  }
   0xc   : > { %177 = sbr.rel (!%p1147_p3) target bundleno = 20 (0x14), region = 28  ;;  %s179_s25 = sand.u32 (%p1147_p3), 1, %s1061_s16  }
   0xd   : > { %s947_s26 = sshll.u32 (%p1147_p3), %s1069_s18, 5  ;;  %s880_s27 = sshll.u32 (%p1147_p3), %s179_s25, 4 }
   0xe   : > { %s185_s30 = scalar_lea.vmem (%p1147_p3), %s1349_s0, %s947_s26  ;;  %s181_s5 = scalar_lea.vmem (%p1147_p3), [#allocation2], %s880_s27 }
   0xf   : > { %v202_v0 = vld [vmem:[%s185_s30] sm:$0xf] (%p1147_p3)  ;;  %v204_v1 = vld [vmem:[%s185_s30 + $0x8] sm:$0xf] (%p1147_p3)  ;;  %v206_v2 = vld [vmem:[%s185_s30 + $0x10] sm:$0xf] (%p1147_p3) }
  0x10   : > { %203 = vst [vmem:[%s181_s5] sm:$0xf] (%p1147_p3), %v202_v0  ;;  %v208_v3 = vld [vmem:[%s185_s30 + $0x18] sm:$0xf] (%p1147_p3) }
  0x11   : > { %205 = vst [vmem:[%s181_s5 + $0x4] sm:$0xf] %v204_v1 }
  0x12   : > { %207 = vst [vmem:[%s181_s5 + $0x8] sm:$0xf] %v206_v2 }
  0x13   : > { %209 = vst [vmem:[%s181_s5 + $0xc] sm:$0xf] %v208_v3 }
  0x14 PF: > { %241 = sbr.rel (!%p1147_p3) target bundleno = 28 (0x1c), region = 69  ;;  %s243_s6 = sand.u32 (%p1147_p3), 1, %s1061_s16  }
  0x15   : > { %s948_s7 = sshll.u32 (%p1147_p3), %s1069_s18, 5  ;;  %s883_s8 = sshll.u32 (%p1147_p3), %s243_s6, 4 }
  0x16   : > { %s808_s11 = scalar_lea.vmem (%p1147_p3), %s1350_s1, %s948_s7  ;;  %s245_s12 = scalar_lea.vmem (%p1147_p3), [#allocation3], %s883_s8 }
  0x17   : > { %v886_v4 = vld [vmem:[%s808_s11 + $0x4] sm:$0xf] (%p1147_p3)  ;;  %v887_v5 = vld [vmem:[%s808_s11 + $0xc] sm:$0xf] (%p1147_p3)  ;;  %v888_v6 = vld [vmem:[%s808_s11 + $0x14] sm:$0xf] (%p1147_p3) }
  0x18   : > { %268 = vst [vmem:[%s245_s12] sm:$0xf] (%p1147_p3), %v886_v4  ;;  %v889_v7 = vld [vmem:[%s808_s11 + $0x1c] sm:$0xf] (%p1147_p3) }
  0x19   : > { %270 = vst [vmem:[%s245_s12 + $0x4] sm:$0xf] %v887_v5 }
  0x1a   : > { %272 = vst [vmem:[%s245_s12 + $0x8] sm:$0xf] %v888_v6 }
  0x1b   : > { %274 = vst [vmem:[%s245_s12 + $0xc] sm:$0xf] %v889_v7 }
  0x1c PF: > { %p890_p6 = scmp.ge.s32.totalorder %s1073_s19, 1  ;;  %p305_p7 = scmp.lt.s32.totalorder %s1073_s19, 3 }
  0x1e   : > { %p306_p8 = pnand %p890_p6, %p305_p7 }
  0x1f   : > { %s312_s13 = sand.u32 (!%p306_p8), 1, %s1057_s15   ;;  %s1075_s22 = smov (!%p306_p8), 125  }
  0x20   : > { %309 = sbr.rel (%p306_p8) target bundleno = 467 (0x1d3), region = 110  ;;  %s891_s14 = sshll.u32 (!%p306_p8), %s312_s13, 4 }
  0x21   : > { %s314_s21 = scalar_lea.vmem (!%p306_p8), [#allocation2], %s891_s14  ;;  %s1076_s23 = smov (!%p306_p8), 117  }
  0x22   : > { %s1077_s25 = smov (!%p306_p8), 121   ;;  %s321_s26 = scalar_lea.vmem (!%p306_p8), [#allocation3], %s891_s14 }
  0x23   : > { %s1078_s15 = smov (!%p306_p8), 118   ;;  %s1079_s27 = smov (!%p306_p8), 114  }
  0x24   : > { %s1080_s28 = smov (!%p306_p8), 126   ;;  %s1081_s29 = smov (!%p306_p8), 122  }
  0x25   : > { %v1175_v8 = vld [vmem:[%s314_s21 + $0x8] sm:$0xff]  ;;  %v1185_v10 = vld [vmem:[%s321_s26] sm:$0xff]  ;;  %s1082_s30 = smov 119   ;;  %s1083_s5 = smov 115   ;;  %vm477_vm0 = vcmask 990208   ;;  %vm425_vm1 = vcmask 1022976  }
  0x26   : > { %421 = vrot.lane.b32.xlu1 %v1175_v8, %s1075_s22  ;;  %525 = vrot.lane.b32.xlu0 %v1175_v8, %s1076_s23  ;;  %v1180_v9 = vld [vmem:[%s321_s26 + $0x8] sm:$0xff]  ;;  %v1187_v11 = vld [vmem:[%s314_s21] sm:$0xff]  ;;  %s1084_s6 = smov 127   ;;  %s1085_s7 = smov 123   ;;  %vm529_vm2 = vcmask 957440   ;;  %vm516_vm3 = vcmask 965632  }
  0x27   : > { %473 = vrot.lane.b32.xlu2 %v1175_v8, %s1077_s25  ;;  %s1086_s8 = smov 120   ;;  %s1087_s9 = smov 116   ;;  %vm412_vm4 = vcmask 1031168   ;;  %vm568_vm5 = vcmask 932864   ;;  %vm464_vm6 = vcmask 998400   ;;  %vm503_vm7 = vcmask 973824  }
  0x28   : > { %s1088_s10 = smov 124   ;;  %vm555_vm8 = vcmask 941056   ;;  %vm399_vm9 = vcmask 1039360   ;;  %vm451_vm10 = vcmask 1006592   ;;  %vm490_vm11 = vcmask 982016   ;;  %p352_p9 = scmp.lt.s32.totalorder %s1065_s17, 1 }
  0x29   : > { %vm542_vm12 = vcmask 949248   ;;  %vm438_vm13 = vcmask 1014784   ;;  %vm619_vm14 = vcmask 785408  }
  0x2a   : > { %s1362_s17 = smov (!%p352_p9, %s1065_s17), 1 }
  0x2b   : > { %s949_s11 = sshll.u32 %s1362_s17, 4 }
  0x2c   : > { %s359_s14 = scalar_lea.vmem %s1353_s4, %s949_s11 }
  0x2e   : > { %423 = vrot.lane.b32.xlu1 %v1180_v9, %s1075_s22  ;;  %527 = vrot.lane.b32.xlu0 %v1180_v9, %s1076_s23 }
  0x2f   : > { %475 = vrot.lane.b32.xlu2 %v1180_v9, %s1077_s25 }
  0x36   : > { %523 = vrot.lane.b32.xlu1 %v1185_v10, %s1076_s23  ;;  %521 = vrot.lane.b32.xlu0 %v1187_v11, %s1076_s23 }
  0x37   : > { %417 = vrot.lane.b32.xlu2 %v1187_v11, %s1075_s22 }
  0x3e   : > { %469 = vrot.lane.b32.xlu1 %v1187_v11, %s1077_s25  ;;  %419 = vrot.lane.b32.xlu0 %v1185_v10, %s1075_s22 }
  0x3f   : > { %471 = vrot.lane.b32.xlu2 %v1185_v10, %s1077_s25 }
  0x46   : > { %514 = vrot.lane.b32.xlu1 %v1180_v9, %s1078_s15  ;;  %512 = vrot.lane.b32.xlu0 %v1175_v8, %s1078_s15 }
  0x47   : > { %564 = vrot.lane.b32.xlu2 %v1175_v8, %s1079_s27 }
  0x4e   : > { %408 = vrot.lane.b32.xlu1 %v1175_v8, %s1080_s28  ;;  %566 = vrot.lane.b32.xlu0 %v1180_v9, %s1079_s27 }
  0x4f   : > { %410 = vrot.lane.b32.xlu2 %v1180_v9, %s1080_s28 }
  0x56   : > { %462 = vrot.lane.b32.xlu1 %v1180_v9, %s1081_s29  ;;  %460 = vrot.lane.b32.xlu0 %v1175_v8, %s1081_s29 }
  0x57   : > { %508 = vrot.lane.b32.xlu2 %v1187_v11, %s1078_s15 }
  0x5e   : > { %560 = vrot.lane.b32.xlu1 %v1187_v11, %s1079_s27  ;;  %510 = vrot.lane.b32.xlu0 %v1185_v10, %s1078_s15 }
  0x5f   : > { %562 = vrot.lane.b32.xlu2 %v1185_v10, %s1079_s27 }
  0x66   : > { %406 = vrot.lane.b32.xlu1 %v1185_v10, %s1080_s28  ;;  %404 = vrot.lane.b32.xlu0 %v1187_v11, %s1080_s28 }
  0x67   : > { %456 = vrot.lane.b32.xlu2 %v1187_v11, %s1081_s29 }
  0x6e   : > { %499 = vrot.lane.b32.xlu1 %v1175_v8, %s1082_s30  ;;  %458 = vrot.lane.b32.xlu0 %v1185_v10, %s1081_s29 }
  0x6f   : > { %501 = vrot.lane.b32.xlu2 %v1180_v9, %s1082_s30 }
  0x76   : > { %553 = vrot.lane.b32.xlu1 %v1180_v9, %s1083_s5  ;;  %551 = vrot.lane.b32.xlu0 %v1175_v8, %s1083_s5 }
  0x77   : > { %395 = vrot.lane.b32.xlu2 %v1175_v8, %s1084_s6 }
  0x7e   : > { %447 = vrot.lane.b32.xlu1 %v1175_v8, %s1085_s7  ;;  %397 = vrot.lane.b32.xlu0 %v1180_v9, %s1084_s6 }
  0x7f   : > { %449 = vrot.lane.b32.xlu2 %v1180_v9, %s1085_s7 }
  0x81   : > { %v474_v12 = vpop.permute.xlu2 %473 }
  0x86   : > { %497 = vrot.lane.b32.xlu1 %v1185_v10, %s1082_s30  ;;  %495 = vrot.lane.b32.xlu0 %v1187_v11, %s1082_s30 }
  0x87   : > { %547 = vrot.lane.b32.xlu2 %v1187_v11, %s1083_s5 }
  0x89   : > { %v476_v13 = vpop.permute.xlu2 %475 }
  0x8a   : > { %v479_v14 = vsel %vm477_vm0, %v474_v12, %v476_v13 }
  0x8b   : > { %645 = vmatpush.bf16.msra.mxu1 %v479_v14  ;;  %v913_v14 = vld [vmem:[%s1351_s2] sm:$0xf] }
  0x8e   : > { %391 = vrot.lane.b32.xlu1 %v1187_v11, %s1084_s6  ;;  %549 = vrot.lane.b32.xlu0 %v1185_v10, %s1083_s5 }
  0x8f   : > { %393 = vrot.lane.b32.xlu2 %v1185_v10, %s1084_s6 }
  0x91   : > { %v418_v15 = vpop.permute.xlu2 %417 }
  0x96   : > { %445 = vrot.lane.b32.xlu1 %v1185_v10, %s1085_s7  ;;  %443 = vrot.lane.b32.xlu0 %v1187_v11, %s1085_s7 }
  0x97   : > { %486 = vrot.lane.b32.xlu2 %v1175_v8, %s1086_s8 }
  0x98   : > { %v422_v16 = vpop.permute.xlu1 %421  ;;  %v526_v17 = vpop.permute.xlu0 %525 }
  0x99   : > { %v472_v18 = vpop.permute.xlu2 %471 }
  0x9e   : > { %538 = vrot.lane.b32.xlu1 %v1175_v8, %s1087_s9  ;;  %488 = vrot.lane.b32.xlu0 %v1180_v9, %s1086_s8 }
  0x9f   : > { %540 = vrot.lane.b32.xlu2 %v1180_v9, %s1087_s9 }
  0xa0   : > { %v424_v19 = vpop.permute.xlu1 %423  ;;  %v528_v20 = vpop.permute.xlu0 %527 }
  0xa1   : > { %v427_v21 = vsel %vm425_vm1, %v422_v16, %v424_v19  ;;  %v531_v22 = vsel %vm529_vm2, %v526_v17, %v528_v20  ;;  %v565_v23 = vpop.permute.xlu2 %564 }
  0xa2   : > { %626 = vmatpush.bf16.msra.mxu0 %v427_v21  ;;  %664 = vmatpush.bf16.msra.mxu2 %v531_v22 }
  0xa6   : > { %436 = vrot.lane.b32.xlu1 %v1180_v9, %s1088_s10  ;;  %434 = vrot.lane.b32.xlu0 %v1175_v8, %s1088_s10 }
  0xa7   : > { %482 = vrot.lane.b32.xlu2 %v1187_v11, %s1086_s8 }
  0xa8   : > { %v524_v24 = vpop.permute.xlu1 %523  ;;  %v522_v25 = vpop.permute.xlu0 %521 }
  0xa9   : > { %v530_v26 = vsel %vm529_vm2, %v522_v25, %v524_v24  ;;  %v411_v27 = vpop.permute.xlu2 %410  ;;  %v704_v25 = vld [vmem:[%s1352_s3 + $0x10] sm:$0xff] }
  0xaa   : > { %665 = vmatpush.bf16.msra.mxu2 %v530_v26  ;;  %v960_v26 = vld [vmem:[%s1351_s2 + $0x2c] sm:$0xf0] }
  0xae   : > { %534 = vrot.lane.b32.xlu1 %v1187_v11, %s1087_s9  ;;  %484 = vrot.lane.b32.xlu0 %v1185_v10, %s1086_s8 }
  0xaf   : > { %536 = vrot.lane.b32.xlu2 %v1185_v10, %s1087_s9 }
  0xb0   : > { %v470_v28 = vpop.permute.xlu1 %469  ;;  %v420_v29 = vpop.permute.xlu0 %419 }
  0xb1   : > { %v426_v30 = vsel %vm425_vm1, %v418_v15, %v420_v29  ;;  %v478_v31 = vsel %vm477_vm0, %v470_v28, %v472_v18  ;;  %v509_v32 = vpop.permute.xlu2 %508  ;;  %v956_v15 = vld [vmem:[%s1351_s2 + $0xc] sm:$0xf0] }
  0xb2   : > { %627 = vmatpush.bf16.msra.mxu0 %v426_v30  ;;  %646 = vmatpush.bf16.msra.mxu1 %v478_v31  ;;  %v914_v19 = vor.u32 %v956_v15, %v913_v14 }
  0xb6   : > { %432 = vrot.lane.b32.xlu1 %v1185_v10, %s1088_s10  ;;  %430 = vrot.lane.b32.xlu0 %v1187_v11, %s1088_s10 }
  0xb8   : > { %v515_v33 = vpop.permute.xlu1 %514  ;;  %v513_v34 = vpop.permute.xlu0 %512 }
  0xb9   : > { %v518_v35 = vsel %vm516_vm3, %v513_v34, %v515_v33  ;;  %v563_v36 = vpop.permute.xlu2 %562  ;;  %v702_v33 = vld [vmem:[%s1352_s3] sm:$0xff]  ;;  %v703_v34 = vld [vmem:[%s1352_s3 + $0x8] sm:$0xff] }
  0xba   : > { %666 = vmatpush.bf16.msra.mxu2 %v518_v35 }
  0xc0   : > { %v409_v37 = vpop.permute.xlu1 %408  ;;  %v567_v38 = vpop.permute.xlu0 %566 }
  0xc1   : > { %v414_v39 = vsel %vm412_vm4, %v409_v37, %v411_v27  ;;  %v570_v40 = vsel %vm568_vm5, %v565_v23, %v567_v38  ;;  %v457_v41 = vpop.permute.xlu2 %456  ;;  %v1089_v27 = vmov 0   ;;  %v955_v37 = vld [vmem:[%s1351_s2 + $0xc] sm:$0xf]  ;;  %v923_v38 = vld [vmem:[%s1351_s2 + $0x18] sm:$0xf0] }
  0xc2   : > { %628 = vmatpush.bf16.msra.mxu0 %v414_v39  ;;  %685 = vmatpush.bf16.msra.mxu3 %v570_v40  ;;  %v1090_v39 = vmov 1  }
  0xc3   : > { %1031 = vset.pattern.permute.xlu1 %v1089_v27  ;;  %1030 = vset.pattern.permute.xlu0 %v1089_v27 }
  0xc4   : > { %718 = vperm.xlu1 %1031, %v704_v25   ;;  %1029 = vset.pattern.permute.xlu2 %v1089_v27 }
  0xc5   : > { %713 = vperm.xlu0 %1030, %v703_v34   ;;  %708 = vperm.xlu2 %1029, %v702_v33  }
  0xc8   : > { %v463_v42 = vpop.permute.xlu1 %462  ;;  %v461_v43 = vpop.permute.xlu0 %460 }
  0xc9   : > { %v466_v44 = vsel %vm464_vm6, %v461_v43, %v463_v42  ;;  %v502_v45 = vpop.permute.xlu2 %501 }
  0xca   : > { %647 = vmatpush.bf16.msra.mxu1 %v466_v44 }
  0xcc   : > { %1032 = vset.pattern.permute.xlu1 %v1090_v39 }
  0xcd   : > { %731 = vperm.xlu1 %1032, %v702_v33   ;;  %1034 = vset.pattern.permute.xlu0 %v1090_v39 }
  0xce   : > { %739 = vperm.xlu0 %1034, %v704_v25  }
  0xd0   : > { %v561_v46 = vpop.permute.xlu1 %560  ;;  %v511_v47 = vpop.permute.xlu0 %510 }
  0xd1   : > { %v517_v48 = vsel %vm516_vm3, %v509_v32, %v511_v47  ;;  %v569_v49 = vsel %vm568_vm5, %v561_v46, %v563_v36  ;;  %v396_v50 = vpop.permute.xlu2 %395  ;;  %v921_v32 = vld [vmem:[%s1351_s2 + $0x8] sm:$0xf]  ;;  %v957_v36 = vld [vmem:[%s1351_s2 + $0x14] sm:$0xf0]  ;;  %v954_v47 = vld [vmem:[%s1351_s2 + $0x4] sm:$0xf] }
  0xd2   : > { %667 = vmatpush.bf16.msra.mxu2 %v517_v48  ;;  %686 = vmatpush.bf16.msra.mxu3 %v569_v49  ;;  %v922_v44 = vor.u32 %v957_v36, %v921_v32  ;;  %v705_v46 = vld [vmem:[%s1352_s3 + $0x18] sm:$0xff]  ;;  %v915_v48 = vld [vmem:[%s1351_s2 + $0x10] sm:$0xf0] }
  0xd3   : > { %723 = vperm.xlu2 %1029, %v705_v46  }
  0xd5   : > { %743 = vperm.xlu1 %1032, %v705_v46  }
  0xd8   : > { %v407_v51 = vpop.permute.xlu1 %406  ;;  %v405_v52 = vpop.permute.xlu0 %404 }
  0xd9   : > { %v413_v53 = vsel %vm412_vm4, %v405_v52, %v407_v51  ;;  %v450_v58 = vpop.permute.xlu2 %449  ;;  %v918_v52 = vor.u32 %v954_v47, %v915_v48 }
  0xda   : > { %629 = vmatpush.bf16.msra.mxu0 %v413_v53  ;;  %v937_v53 = vld [vmem:[%s1351_s2 + $0x28] sm:$0xf] }
  0xdb   : > { %1033 = vset.pattern.permute.xlu2 %v1090_v39 }
  0xdc   : > { %735 = vperm.xlu2 %1033, %v703_v34  }
  0xe0   : > { %v500_v54 = vpop.permute.xlu1 %499  ;;  %v459_v55 = vpop.permute.xlu0 %458 }
  0xe1   : > { %v465_v56 = vsel %vm464_vm6, %v457_v41, %v459_v55  ;;  %v505_v57 = vsel %vm503_vm7, %v500_v54, %v502_v45  ;;  %v548_v62 = vpop.permute.xlu2 %547  ;;  %v926_v45 = vor.u32 %v955_v37, %v923_v38  ;;  %v961_v54 = vld [vmem:[%s1351_s2 + $0x34] sm:$0xf0]  ;;  %v959_v55 = vld [vmem:[%s1351_s2 + $0x2c] sm:$0xf] }
  0xe2   : > { %648 = vmatpush.bf16.msra.mxu1 %v465_v56  ;;  %668 = vmatpush.bf16.msra.mxu2 %v505_v57  ;;  %v939_v56 = vld [vmem:[%s1351_s2 + $0x38] sm:$0xf0]  ;;  %v938_v57 = vor.u32 %v961_v54, %v937_v53 }
  0xe8   : > { %v554_v59 = vpop.permute.xlu1 %553  ;;  %v552_v60 = vpop.permute.xlu0 %551 }
  0xe9   : > { %v557_v61 = vsel %vm555_vm8, %v552_v60, %v554_v59  ;;  %v394_v3 = vpop.permute.xlu2 %393  ;;  %v958_v59 = vld [vmem:[%s1351_s2 + $0x24] sm:$0xf]  ;;  %v931_v60 = vld [vmem:[%s1351_s2 + $0x30] sm:$0xf0] }
  0xea   : > { %687 = vmatpush.bf16.msra.mxu3 %v557_v61  ;;  %v934_v61 = vor.u32 %v958_v59, %v931_v60 }
  0xf0   : > { %v448_v63 = vpop.permute.xlu1 %447  ;;  %v398_v0 = vpop.permute.xlu0 %397 }
  0xf1   : > { %v401_v1 = vsel %vm399_vm9, %v396_v50, %v398_v0  ;;  %v453_v2 = vsel %vm451_vm10, %v448_v63, %v450_v58  ;;  %v487_v7 = vpop.permute.xlu2 %486  ;;  %v942_v58 = vor.u32 %v959_v55, %v939_v56 }
  0xf2   : > { %630 = vmatpush.bf16.msra.mxu0 %v401_v1  ;;  %649 = vmatpush.bf16.msra.mxu1 %v453_v2 }
  0xf8   : > { %v498_v4 = vpop.permute.xlu1 %497  ;;  %v496_v5 = vpop.permute.xlu0 %495 }
  0xf9   : > { %v504_v6 = vsel %vm503_vm7, %v496_v5, %v498_v4  ;;  %v541_v20 = vpop.permute.xlu2 %540 }
  0xfa   : > { %669 = vmatpush.bf16.msra.mxu2 %v504_v6 }
 0x100   : > { %v392_v9 = vpop.permute.xlu1 %391  ;;  %v550_v10 = vpop.permute.xlu0 %549 }
 0x101   : > { %v400_v12 = vsel %vm399_vm9, %v392_v9, %v394_v3  ;;  %v556_v13 = vsel %vm555_vm8, %v548_v62, %v550_v10  ;;  %v483_v24 = vpop.permute.xlu2 %482 }
 0x102   : > { %631 = vmatpush.bf16.msra.mxu0 %v400_v12  ;;  %688 = vmatpush.bf16.msra.mxu3 %v556_v13 }
 0x106   : > { %632 = vmatpush.bf16.msra.mxu0 %v1175_v8 }
 0x108   : > { %v446_v16 = vpop.permute.xlu1 %445  ;;  %v444_v17 = vpop.permute.xlu0 %443 }
 0x109   : > { %v452_v18 = vsel %vm451_vm10, %v444_v17, %v446_v16  ;;  %v537_v35 = vpop.permute.xlu2 %536 }
 0x10a   : > { %650 = vmatpush.bf16.msra.mxu1 %v452_v18  ;;  %633 = vmatpush.bf16.msra.mxu0 %v1187_v11  ;;  %v929_v11 = vld [vmem:[%s1351_s2 + $0x20] sm:$0xf] }
 0x10b   : > { %v930_v31 = vor.u32 %v960_v26, %v929_v11 }
 0x10d   : > { %634 = vmatmul.bf16.vlgmr.msra.gmra.mxu0 %v914_v19 }
 0x110   : > { %v539_v8 = vpop.permute.xlu1 %538  ;;  %v489_v21 = vpop.permute.xlu0 %488 }
 0x111   : > { %v492_v22 = vsel %vm490_vm11, %v487_v7, %v489_v21  ;;  %v544_v23 = vsel %vm542_vm12, %v539_v8, %v541_v20 }
 0x112   : > { %670 = vmatpush.bf16.msra.mxu2 %v492_v22  ;;  %689 = vmatpush.bf16.msra.mxu3 %v544_v23 }
 0x118   : > { %v437_v28 = vpop.permute.xlu1 %436  ;;  %v435_v29 = vpop.permute.xlu0 %434 }
 0x119   : > { %v440_v30 = vsel %vm438_vm13, %v435_v29, %v437_v28 }
 0x11a   : > { %651 = vmatpush.bf16.msra.mxu1 %v440_v30 }
 0x11d   : > { %639 = vmatmul.bf16.gmra.mxu0 %v930_v31 }
 0x11f   : > { %v709_v63 = vpop.permute.xlu2 %708 }
 0x120   : > { %v535_v40 = vpop.permute.xlu1 %534  ;;  %v485_v41 = vpop.permute.xlu0 %484 }
 0x121   : > { %v491_v42 = vsel %vm490_vm11, %v483_v24, %v485_v41  ;;  %v543_v43 = vsel %vm542_vm12, %v535_v40, %v537_v35 }
 0x122   : > { %671 = vmatpush.bf16.msra.mxu2 %v491_v42  ;;  %690 = vmatpush.bf16.msra.mxu3 %v543_v43 }
 0x125   : > { %672 = vmatmul.bf16.vlgmr.msra.gmra.mxu2 %v922_v44  ;;  %943 = vmatmul.msk.bf16.vlgmr.msra.gmra.mxu3 %vm619_vm14, %v926_v45 }
 0x128   : > { %v433_v49 = vpop.permute.xlu1 %432  ;;  %v431_v50 = vpop.permute.xlu0 %430 }
 0x129   : > { %v439_v51 = vsel %vm438_vm13, %v431_v50, %v433_v49 }
 0x12a   : > { %652 = vmatpush.bf16.msra.mxu1 %v439_v51 }
 0x12d   : > { %653 = vmatmul.bf16.vlgmr.msra.gmra.mxu1 %v918_v52  ;;  %v724_v7 = vpop.permute.xlu2 %723 }
 0x135   : > { %677 = vmatmul.bf16.gmra.mxu2 %v938_v57  ;;  %944 = vmatmul.msk.bf16.gmra.mxu3 %vm619_vm14, %v942_v58 }
 0x136   : > { %v719_v2 = vpop.permute.xlu1 %718  ;;  %v736_v21 = vpop.permute.xlu2 %735 }
 0x137   : > { %v714_v18 = vpop.permute.xlu0 %713 }
 0x13d   : > { %658 = vmatmul.bf16.gmra.mxu1 %v934_v61 }
 0x13f   : > { %v732_v16 = vpop.permute.xlu1 %731 }
 0x140   : > { %v740_v39 = vpop.permute.xlu0 %739 }
 0x147   : > { %v744_v45 = vpop.permute.xlu1 %743 }
 0x18a   : > { %v635_v62 = vpop.f32.mrf.mxu0 }
 0x192   : > { %v637_v6 = vpop.f32.mrf.mxu0 }
 0x19a   : > { %v640_v8 = vpop.f32.mrf.mxu0 }
 0x1a2   : > { %v642_v34 = vpop.f32.mrf.mxu0 }
 0x1a8   : > { %v673_v0 = vpop.f32.mrf.mxu2  ;;  %v692_v1 = vpop.f32.mrf.mxu3 }
 0x1aa   : > { %v654_v3 = vpop.f32.mrf.mxu1 }
 0x1ab   : > { %v655_v4 = vadd.f32 %v654_v3, %v635_v62 }
 0x1ad   : > { %v674_v5 = vadd.f32 %v673_v0, %v655_v4 }
 0x1af   : > { %v693_v9 = vadd.f32 %v692_v1, %v674_v5 }
 0x1b0   : > { %v675_v10 = vpop.f32.mrf.mxu2  ;;  %v694_v12 = vpop.f32.mrf.mxu3 }
 0x1b1   : > { %v726_v14 = vmul.f32 %v709_v63, %v693_v9 }
 0x1b2   : > { %v656_v13 = vpop.f32.mrf.mxu1 }
 0x1b3   : > { %v657_v15 = vadd.f32 %v656_v13, %v637_v6  ;;  %v746_v19 = vadd.f32 %v732_v16, %v726_v14 }
 0x1b5   : > { %v676_v17 = vadd.f32 %v675_v10, %v657_v15  ;;  %v754_v25 = vmul.f32 0.1, %v746_v19  ;;  %vm750_vm15 = vcmp.ge.f32.partialorder %v746_v19, 0.0 }
 0x1b7   : > { %v695_v20 = vadd.f32 %v694_v12, %v676_v17  ;;  %v758_v30 = vsel %vm750_vm15, %v746_v19, %v754_v25 }
 0x1b8   : > { %v678_v23 = vpop.f32.mrf.mxu2  ;;  %v697_v27 = vpop.f32.mrf.mxu3 }
 0x1b9   : > { %v727_v22 = vmul.f32 %v714_v18, %v695_v20 }
 0x1ba   : > { %v659_v24 = vpop.f32.mrf.mxu1 }
 0x1bb   : > { %v747_v11 = vadd.f32 %v736_v21, %v727_v22  ;;  %v660_v26 = vadd.f32 %v659_v24, %v640_v8 }
 0x1bd   : > { %vm751_vm0 = vcmp.ge.f32.partialorder %v747_v11, 0.0  ;;  %v755_v28 = vmul.f32 0.1, %v747_v11  ;;  %v679_v29 = vadd.f32 %v678_v23, %v660_v26 }
 0x1bf   : > { %v759_v31 = vsel %vm751_vm0, %v747_v11, %v755_v28  ;;  %v698_v32 = vadd.f32 %v697_v27, %v679_v29 }
 0x1c0   : > { %v965_v33 = vpack.c.bf16 %v759_v31, %v758_v30  ;;  %v680_v38 = vpop.f32.mrf.mxu2  ;;  %v699_v41 = vpop.f32.mrf.mxu3 }
 0x1c1   : > { %v728_v37 = vmul.f32 %v719_v2, %v698_v32 }
 0x1c2   : > { %966 = vst [vmem:[%s359_s14] sm:$0xff] %v965_v33   ;;  %v661_v35 = vpop.f32.mrf.mxu1 }
 0x1c3   : > { %v662_v36 = vadd.f32 %v661_v35, %v642_v34  ;;  %v748_v43 = vadd.f32 %v740_v39, %v728_v37 }
 0x1c5   : > { %v681_v40 = vadd.f32 %v680_v38, %v662_v36  ;;  %v756_v47 = vmul.f32 0.1, %v748_v43  ;;  %vm752_vm1 = vcmp.ge.f32.partialorder %v748_v43, 0.0 }
 0x1c7   : > { %v700_v42 = vadd.f32 %v699_v41, %v681_v40  ;;  %v760_v50 = vsel %vm752_vm1, %v748_v43, %v756_v47 }
 0x1c9   : > { %v729_v44 = vmul.f32 %v724_v7, %v700_v42 }
 0x1cb   : > { %v749_v46 = vadd.f32 %v744_v45, %v729_v44 }
 0x1cd   : > { %vm753_vm2 = vcmp.ge.f32.partialorder %v749_v46, 0.0  ;;  %v757_v48 = vmul.f32 0.1, %v749_v46 }
 0x1cf   : > { %v761_v49 = vsel %vm753_vm2, %v749_v46, %v757_v48 }
 0x1d0   : > { %v970_v51 = vpack.c.bf16 %v761_v49, %v760_v50 }
 0x1d2   : > { %972 = vst [vmem:[%s359_s14 + $0x8] sm:$0xff] %v970_v51  }
 0x1d3 PF: > { %s14_s19 = sadd.s32 1, %s1073_s19   ;;  %s1355_s15 = smov %s1061_s16 }
 0x1d4   : > { %p11_p10 = scmp.ge.s32.totalorder %s14_s19, 4   ;;  %s1356_s16 = smov %s1155_s24 }
 0x1d5   : > { %s1357_s17 = smov %s1069_s18  ;;  %s1358_s18 = smov %s1360_s20 }
 0x1d6   :  { %13 = sbr.rel (!%p11_p10) target bundleno = 3 (0x3), region = 161 }

// kernel: _lambda_.15
= control target key start
LH: loop header
LB: loop body
LE: loop exit
PB: predicated region body
PF: predicated region fallthrough
CT: control target
= control target key end

     0   :  { %s1383_s24 = smov 0   ;;  %s1385_s25 = smov 0   ;;  %s1584_s0 = inlined_call_operand.vmem [shape: bf16[2,32,256], index: 0, kind: input, shape index: {}, may-alias: {0,1}]   ;;  %s1585_s1 = inlined_call_operand.vmem [shape: bf16[2,32,256], index: 1, kind: input, shape index: {}, may-alias: {0,1}]   ;;  %s1586_s2 = inlined_call_operand.vmem [shape: bf16[2,32,256], index: 2, kind: input, shape index: {}, may-alias: {2,3}]   ;;  %s1587_s3 = inlined_call_operand.vmem [shape: bf16[2,32,256], index: 3, kind: input, shape index: {}, may-alias: {2,3}]   ;;  %s1588_s4 = inlined_call_operand.vmem [shape: bf16[32,160], index: 4, kind: input, shape index: {}]   ;;  %s1589_s5 = inlined_call_operand.vmem [shape: bf16[32,160], index: 5, kind: input, shape index: {}]   ;;  %s1590_s6 = inlined_call_operand.vmem [shape: f32[32,2], index: 6, kind: input, shape index: {}]   ;;  %s1591_s7 = inlined_call_operand.vmem [shape: bf16[2,32,128], index: 7, kind: output, shape index: {}]  }
   0x1   :  { %s1387_s26 = smov 0   ;;  %s1389_s27 = smov 0  }
   0x2   :  { %s1391_s28 = smov 0  }
   0x3 LB: > { %s29_s29 = sadd.s32 1, %s1331_s27  ;;  %p45_p1 = scmp.ne.s32.totalorder %s1323_s25, %s1319_s24  ;;  %s1335_s28 = sphi %s1391_s28, %s17_s28   ;;  %s1331_s27 = sphi %s1389_s27, %s1596_s27   ;;  %s1327_s26 = sphi %s1387_s26, %s1595_s26   ;;  %s1323_s25 = sphi %s1385_s25, %s1594_s25   ;;  %s1319_s24 = sphi %s1383_s24, %s1593_s24  }
   0x4   : > { %p31_p0 = scmp.ge.s32.totalorder %s29_s29, 2  ;;  %p46_p2 = scmp.eq.s32.totalorder %s1335_s28, 0 }
   0x5   : > { %s38_s9 = sadd.s32 1, %s1323_s25  ;;  %p1115_p5 = scmp.ge.s32.totalorder %s1335_s28, 2 }
   0x6   : > { %s1598_s29 = smov (%p31_p0, %s29_s29), 0  ;;  %p1414_p3 = por %p46_p2, %p45_p1 }
   0x7   : > { %s33_s8 = ssub.s32 %s1331_s27, %s1598_s29  ;;  %259 = sbr.rel (%p1115_p5) target bundleno = 44 (0x2c), region = 28 }
   0x8   : > { %p36_p4 = scmp.eq.s32.totalorder %s33_s8, 0 }
   0xa   : > { %s1422_s10 = scalar_select %p36_p4, %s1323_s25, %s38_s9  }
   0xc   : > { %262 = sbr.rel (!%p1414_p3) target bundleno = 20 (0x14), region = 32  ;;  %s264_s11 = sand.u32 (%p1414_p3), 1, %s1323_s25  }
   0xd   : > { %s1213_s12 = sshll.u32 (%p1414_p3), %s1331_s27, 5  ;;  %s1116_s13 = sshll.u32 (%p1414_p3), %s264_s11, 4 }
   0xe   : > { %s270_s16 = scalar_lea.vmem (%p1414_p3), %s1584_s0, %s1213_s12  ;;  %s266_s17 = scalar_lea.vmem (%p1414_p3), [#allocation2], %s1116_s13 }
   0xf   : > { %v287_v0 = vld [vmem:[%s270_s16] sm:$0xf] (%p1414_p3)  ;;  %v289_v1 = vld [vmem:[%s270_s16 + $0x8] sm:$0xf] (%p1414_p3)  ;;  %v291_v2 = vld [vmem:[%s270_s16 + $0x10] sm:$0xf] (%p1414_p3) }
  0x10   : > { %288 = vst [vmem:[%s266_s17] sm:$0xf] (%p1414_p3), %v287_v0  ;;  %v293_v3 = vld [vmem:[%s270_s16 + $0x18] sm:$0xf] (%p1414_p3) }
  0x11   : > { %290 = vst [vmem:[%s266_s17 + $0x4] sm:$0xf] %v289_v1 }
  0x12   : > { %292 = vst [vmem:[%s266_s17 + $0x8] sm:$0xf] %v291_v2 }
  0x13   : > { %294 = vst [vmem:[%s266_s17 + $0xc] sm:$0xf] %v293_v3 }
  0x14 PF: > { %326 = sbr.rel (!%p1414_p3) target bundleno = 28 (0x1c), region = 73  ;;  %s328_s18 = sand.u32 (%p1414_p3), 1, %s1323_s25  }
  0x15   : > { %s1214_s19 = sshll.u32 (%p1414_p3), %s1331_s27, 5  ;;  %s1119_s20 = sshll.u32 (%p1414_p3), %s328_s18, 4 }
  0x16   : > { %s1003_s23 = scalar_lea.vmem (%p1414_p3), %s1585_s1, %s1214_s19  ;;  %s330_s8 = scalar_lea.vmem (%p1414_p3), [#allocation3], %s1119_s20 }
  0x17   : > { %v1122_v4 = vld [vmem:[%s1003_s23 + $0x4] sm:$0xf] (%p1414_p3)  ;;  %v1123_v5 = vld [vmem:[%s1003_s23 + $0xc] sm:$0xf] (%p1414_p3)  ;;  %v1124_v6 = vld [vmem:[%s1003_s23 + $0x14] sm:$0xf] (%p1414_p3) }
  0x18   : > { %353 = vst [vmem:[%s330_s8] sm:$0xf] (%p1414_p3), %v1122_v4  ;;  %v1125_v7 = vld [vmem:[%s1003_s23 + $0x1c] sm:$0xf] (%p1414_p3) }
  0x19   : > { %355 = vst [vmem:[%s330_s8 + $0x4] sm:$0xf] %v1123_v5 }
  0x1a   : > { %357 = vst [vmem:[%s330_s8 + $0x8] sm:$0xf] %v1124_v6 }
  0x1b   : > { %359 = vst [vmem:[%s330_s8 + $0xc] sm:$0xf] %v1125_v7 }
  0x1c PF: > { %391 = sbr.rel (!%p1414_p3) target bundleno = 36 (0x24), region = 114  ;;  %s393_s9 = sand.u32 (%p1414_p3), 1, %s1323_s25  }
  0x1d   : > { %s1215_s11 = sshll.u32 (%p1414_p3), %s1331_s27, 5  ;;  %s1126_s12 = sshll.u32 (%p1414_p3), %s393_s9, 4 }
  0x1e   : > { %s399_s15 = scalar_lea.vmem (%p1414_p3), %s1586_s2, %s1215_s11  ;;  %s395_s16 = scalar_lea.vmem (%p1414_p3), [#allocation4], %s1126_s12 }
  0x1f   : > { %v416_v8 = vld [vmem:[%s399_s15] sm:$0xf] (%p1414_p3)  ;;  %v418_v9 = vld [vmem:[%s399_s15 + $0x8] sm:$0xf] (%p1414_p3)  ;;  %v420_v10 = vld [vmem:[%s399_s15 + $0x10] sm:$0xf] (%p1414_p3) }
  0x20   : > { %417 = vst [vmem:[%s395_s16] sm:$0xf] (%p1414_p3), %v416_v8  ;;  %v422_v11 = vld [vmem:[%s399_s15 + $0x18] sm:$0xf] (%p1414_p3) }
  0x21   : > { %419 = vst [vmem:[%s395_s16 + $0x4] sm:$0xf] %v418_v9 }
  0x22   : > { %421 = vst [vmem:[%s395_s16 + $0x8] sm:$0xf] %v420_v10 }
  0x23   : > { %423 = vst [vmem:[%s395_s16 + $0xc] sm:$0xf] %v422_v11 }
  0x24 PF: > { %455 = sbr.rel (!%p1414_p3) target bundleno = 44 (0x2c), region = 155  ;;  %s457_s17 = sand.u32 (%p1414_p3), 1, %s1323_s25  }
  0x25   : > { %s1216_s18 = sshll.u32 (%p1414_p3), %s1331_s27, 5  ;;  %s1129_s19 = sshll.u32 (%p1414_p3), %s457_s17, 4 }
  0x26   : > { %s1016_s22 = scalar_lea.vmem (%p1414_p3), %s1587_s3, %s1216_s18  ;;  %s459_s23 = scalar_lea.vmem (%p1414_p3), [#allocation5], %s1129_s19 }
  0x27   : > { %v1132_v12 = vld [vmem:[%s1016_s22 + $0x4] sm:$0xf] (%p1414_p3)  ;;  %v1133_v13 = vld [vmem:[%s1016_s22 + $0xc] sm:$0xf] (%p1414_p3)  ;;  %v1134_v14 = vld [vmem:[%s1016_s22 + $0x14] sm:$0xf] (%p1414_p3) }
  0x28   : > { %482 = vst [vmem:[%s459_s23] sm:$0xf] (%p1414_p3), %v1132_v12  ;;  %v1135_v15 = vld [vmem:[%s1016_s22 + $0x1c] sm:$0xf] (%p1414_p3) }
  0x29   : > { %484 = vst [vmem:[%s459_s23 + $0x4] sm:$0xf] %v1133_v13 }
  0x2a   : > { %486 = vst [vmem:[%s459_s23 + $0x8] sm:$0xf] %v1134_v14 }
  0x2b   : > { %488 = vst [vmem:[%s459_s23 + $0xc] sm:$0xf] %v1135_v15 }
  0x2c PF: > { %p1136_p6 = scmp.ge.s32.totalorder %s1335_s28, 1  ;;  %p519_p7 = scmp.lt.s32.totalorder %s1335_s28, 3 }
  0x2e   : > { %p520_p8 = pnand %p1136_p6, %p519_p7 }
  0x2f   : > { %s526_s30 = sand.u32 (!%p520_p8), 1, %s1319_s24   ;;  %s1337_s12 = smov (!%p520_p8), 125  }
  0x30   : > { %523 = sbr.rel (%p520_p8) target bundleno = 419 (0x1a3), region = 196  ;;  %s1137_s8 = sshll.u32 (!%p520_p8), %s526_s30, 4 }
  0x31   : > { %s528_s9 = scalar_lea.vmem (!%p520_p8), [#allocation2], %s1137_s8  ;;  %s542_s11 = scalar_lea.vmem (!%p520_p8), [#allocation4], %s1137_s8 }
  0x32   : > { %s535_s13 = scalar_lea.vmem (!%p520_p8), [#allocation3], %s1137_s8  ;;  %s549_s24 = scalar_lea.vmem (!%p520_p8), [#allocation5], %s1137_s8 }
  0x33   : > { %s1338_s14 = smov (!%p520_p8), 126   ;;  %s1339_s15 = smov (!%p520_p8), 127  }
  0x34   : > { %s1340_s16 = smov (!%p520_p8), 124   ;;  %p595_p9 = scmp.lt.s32.totalorder (!%p520_p8), %s1327_s26, 1 }
  0x35   : > { %v1456_v16 = vld [vmem:[%s528_s9 + $0x8] sm:$0xff]  ;;  %v1458_v17 = vld [vmem:[%s528_s9] sm:$0xff]  ;;  %vm668_vm0 = vcmask 1022976   ;;  %vm655_vm1 = vcmask 1031168   ;;  %vm642_vm2 = vcmask 1039360   ;;  %vm681_vm3 = vcmask 1014784  }
  0x36   : > { %v1460_v18 = vld [vmem:[%s542_s11 + $0x8] sm:$0xff]  ;;  %664 = vrot.lane.b32.xlu0 %v1456_v16, %s1337_s12  ;;  %660 = vrot.lane.b32.xlu1 %v1458_v17, %s1337_s12  ;;  %v1220_v20 = vld [vmem:[%s535_s13] sm:$0xff]  ;;  %v1341_v1 = vmov 0   ;;  %v1342_v15 = vmov 1   ;;  %vm790_vm4 = vcmask 261120   ;;  %s1600_s26 = smov (!%p595_p9, %s1327_s26), 1 }
  0x37   : > { %748 = vrot.lane.b32.xlu2 %v1460_v18, %s1337_s12  ;;  %v1221_v19 = vld [vmem:[%s535_s13 + $0x8] sm:$0xff]  ;;  %v1465_v22 = vld [vmem:[%s542_s11] sm:$0xff]  ;;  %1293 = vset.pattern.permute.xlu1 %v1341_v1  ;;  %s1217_s23 = sshll.u32 %s1600_s26, 4 }
  0x38   : > { %v1229_v21 = vld [vmem:[%s549_s24 + $0x8] sm:$0xff]  ;;  %v1228_v23 = vld [vmem:[%s549_s24] sm:$0xff]  ;;  %1292 = vset.pattern.permute.xlu0 %v1341_v1  ;;  %1291 = vset.pattern.permute.xlu2 %v1341_v1  ;;  %s602_s9 = scalar_lea.vmem %s1591_s7, %s1217_s23 }
  0x39   : > { %v1195_v56 = vld [vmem:[%s1588_s4] sm:$0xf]  ;;  %v1223_v57 = vld [vmem:[%s1588_s4 + $0x4] sm:$0xf0]  ;;  %v899_v0 = vld [vmem:[%s1590_s6 + $0x10] sm:$0xff] }
  0x3a   : > { %v1196_v61 = vor.u32 %v1223_v57, %v1195_v56  ;;  %v1177_v5 = vld [vmem:[%s1589_s5] sm:$0xf]  ;;  %v1231_v6 = vld [vmem:[%s1589_s5 + $0x4] sm:$0xf0]  ;;  %v1222_v8 = vld [vmem:[%s1588_s4 + $0x4] sm:$0xf] }
  0x3b   : > { %v1178_v7 = vor.u32 %v1231_v6, %v1177_v5  ;;  %v897_v9 = vld [vmem:[%s1590_s6] sm:$0xff]  ;;  %v898_v10 = vld [vmem:[%s1590_s6 + $0x8] sm:$0xff]  ;;  %v1203_v13 = vld [vmem:[%s1588_s4 + $0x10] sm:$0xf] }
  0x3c   : > { %v1197_v12 = vld [vmem:[%s1588_s4 + $0x8] sm:$0xf0]  ;;  %v1225_v14 = vld [vmem:[%s1588_s4 + $0x14] sm:$0xf0] }
  0x3e   : > { %666 = vrot.lane.b32.xlu0 %v1221_v19, %s1337_s12  ;;  %662 = vrot.lane.b32.xlu1 %v1220_v20, %s1337_s12 }
  0x3f   : > { %750 = vrot.lane.b32.xlu2 %v1229_v21, %s1337_s12 }
  0x46   : > { %651 = vrot.lane.b32.xlu0 %v1456_v16, %s1338_s14  ;;  %653 = vrot.lane.b32.xlu1 %v1221_v19, %s1338_s14 }
  0x47   : > { %744 = vrot.lane.b32.xlu2 %v1465_v22, %s1337_s12 }
  0x4e   : > { %746 = vrot.lane.b32.xlu0 %v1228_v23, %s1337_s12  ;;  %647 = vrot.lane.b32.xlu1 %v1458_v17, %s1338_s14 }
  0x4f   : > { %649 = vrot.lane.b32.xlu2 %v1220_v20, %s1338_s14 }
  0x56   : > { %736 = vrot.lane.b32.xlu0 %v1460_v18, %s1338_s14  ;;  %738 = vrot.lane.b32.xlu1 %v1229_v21, %s1338_s14 }
  0x57   : > { %638 = vrot.lane.b32.xlu2 %v1456_v16, %s1339_s15 }
  0x5e   : > { %640 = vrot.lane.b32.xlu0 %v1221_v19, %s1339_s15  ;;  %732 = vrot.lane.b32.xlu1 %v1465_v22, %s1338_s14 }
  0x5f   : > { %734 = vrot.lane.b32.xlu2 %v1228_v23, %s1338_s14 }
  0x66   : > { %634 = vrot.lane.b32.xlu0 %v1458_v17, %s1339_s15  ;;  %636 = vrot.lane.b32.xlu1 %v1220_v20, %s1339_s15 }
  0x67   : > { %724 = vrot.lane.b32.xlu2 %v1460_v18, %s1339_s15 }
  0x6e   : > { %726 = vrot.lane.b32.xlu0 %v1229_v21, %s1339_s15  ;;  %720 = vrot.lane.b32.xlu1 %v1465_v22, %s1339_s15 }
  0x6f   : > { %722 = vrot.lane.b32.xlu2 %v1228_v23, %s1339_s15 }
  0x76   : > { %677 = vrot.lane.b32.xlu0 %v1456_v16, %s1340_s16  ;;  %679 = vrot.lane.b32.xlu1 %v1221_v19, %s1340_s16 }
  0x77   : > { %760 = vrot.lane.b32.xlu2 %v1460_v18, %s1340_s16 }
  0x7e   : > { %762 = vrot.lane.b32.xlu0 %v1229_v21, %s1340_s16  ;;  %673 = vrot.lane.b32.xlu1 %v1458_v17, %s1340_s16  ;;  %v1204_v21 = vor.u32 %v1225_v14, %v1203_v13 }
  0x7f   : > { %675 = vrot.lane.b32.xlu2 %v1220_v20, %s1340_s16  ;;  %v1200_v20 = vor.u32 %v1222_v8, %v1197_v12 }
  0x86   : > { %756 = vrot.lane.b32.xlu0 %v1465_v22, %s1340_s16  ;;  %758 = vrot.lane.b32.xlu1 %v1228_v23, %s1340_s16  ;;  %v1230_v23 = vld [vmem:[%s1589_s5 + $0x4] sm:$0xf] }
  0x87   : > { %903 = vperm.xlu2 %1291, %v897_v9  }
  0x8e   : > { %913 = vperm.xlu1 %1293, %v899_v0   ;;  %908 = vperm.xlu0 %1292, %v898_v10  }
  0x91   : > { %v749_v24 = vpop.permute.xlu2 %748 }
  0x96   : > { %1294 = vset.pattern.permute.xlu1 %v1342_v15  ;;  %1296 = vset.pattern.permute.xlu0 %v1342_v15 }
  0x97   : > { %926 = vperm.xlu1 %1294, %v897_v9   ;;  %934 = vperm.xlu0 %1296, %v899_v0  }
  0x99   : > { %v751_v25 = vpop.permute.xlu2 %750 }
  0x9a   : > { %v753_v26 = vsel %vm668_vm0, %v749_v24, %v751_v25  ;;  %v1179_v24 = vld [vmem:[%s1589_s5 + $0x8] sm:$0xf0] }
  0x9b   : > { %797 = vmatpush.bf16.msra.mxu0 %v753_v26 }
  0xa1   : > { %v745_v27 = vpop.permute.xlu2 %744 }
  0xa8   : > { %v665_v28 = vpop.permute.xlu0 %664  ;;  %v661_v29 = vpop.permute.xlu1 %660 }
  0xa9   : > { %v650_v33 = vpop.permute.xlu2 %649 }
  0xb0   : > { %v667_v30 = vpop.permute.xlu0 %666  ;;  %v663_v31 = vpop.permute.xlu1 %662 }
  0xb1   : > { %v670_v32 = vsel %vm668_vm0, %v665_v28, %v667_v30  ;;  %v669_v34 = vsel %vm668_vm0, %v661_v29, %v663_v31  ;;  %v639_v38 = vpop.permute.xlu2 %638  ;;  %v1182_v28 = vor.u32 %v1230_v23, %v1179_v24  ;;  %v1185_v29 = vld [vmem:[%s1589_s5 + $0x10] sm:$0xf]  ;;  %v1233_v30 = vld [vmem:[%s1589_s5 + $0x14] sm:$0xf0] }
  0xb2   : > { %859 = vmatpush.bf16.msra.mxu2 %v670_v32  ;;  %v1186_v31 = vor.u32 %v1233_v30, %v1185_v29  ;;  %v1224_v32 = vld [vmem:[%s1588_s4 + $0x14] sm:$0xf] }
  0xb6   : > { %860 = vmatpush.bf16.msra.mxu2 %v669_v34 }
  0xb8   : > { %v652_v35 = vpop.permute.xlu0 %651  ;;  %v654_v36 = vpop.permute.xlu1 %653 }
  0xb9   : > { %v657_v37 = vsel %vm655_vm1, %v652_v35, %v654_v36  ;;  %v735_v43 = vpop.permute.xlu2 %734  ;;  %v1232_v35 = vld [vmem:[%s1589_s5 + $0x14] sm:$0xf]  ;;  %v1187_v36 = vld [vmem:[%s1589_s5 + $0x18] sm:$0xf0] }
  0xba   : > { %861 = vmatpush.bf16.msra.mxu2 %v657_v37  ;;  %v1190_v37 = vor.u32 %v1232_v35, %v1187_v36 }
  0xc0   : > { %v747_v39 = vpop.permute.xlu0 %746  ;;  %v648_v40 = vpop.permute.xlu1 %647 }
  0xc1   : > { %v752_v41 = vsel %vm668_vm0, %v745_v27, %v747_v39  ;;  %v656_v42 = vsel %vm655_vm1, %v648_v40, %v650_v33  ;;  %v725_v47 = vpop.permute.xlu2 %724  ;;  %v1205_v33 = vld [vmem:[%s1588_s4 + $0x18] sm:$0xf0] }
  0xc2   : > { %798 = vmatpush.bf16.msra.mxu0 %v752_v41  ;;  %862 = vmatpush.bf16.msra.mxu2 %v656_v42  ;;  %v1208_v34 = vor.u32 %v1224_v32, %v1205_v33 }
  0xc8   : > { %v737_v44 = vpop.permute.xlu0 %736  ;;  %v739_v45 = vpop.permute.xlu1 %738 }
  0xc9   : > { %v741_v46 = vsel %vm655_vm1, %v737_v44, %v739_v45  ;;  %v723_v55 = vpop.permute.xlu2 %722 }
  0xca   : > { %799 = vmatpush.bf16.msra.mxu0 %v741_v46 }
  0xd0   : > { %v641_v48 = vpop.permute.xlu0 %640  ;;  %v733_v49 = vpop.permute.xlu1 %732 }
  0xd1   : > { %v740_v50 = vsel %vm655_vm1, %v733_v49, %v735_v43  ;;  %v644_v51 = vsel %vm642_vm2, %v639_v38, %v641_v48  ;;  %v761_v62 = vpop.permute.xlu2 %760 }
  0xd2   : > { %800 = vmatpush.bf16.msra.mxu0 %v740_v50  ;;  %863 = vmatpush.bf16.msra.mxu2 %v644_v51 }
  0xd8   : > { %v635_v52 = vpop.permute.xlu0 %634  ;;  %v637_v53 = vpop.permute.xlu1 %636 }
  0xd9   : > { %v643_v54 = vsel %vm642_vm2, %v635_v52, %v637_v53  ;;  %v676_v11 = vpop.permute.xlu2 %675 }
  0xda   : > { %864 = vmatpush.bf16.msra.mxu2 %v643_v54 }
  0xde   : > { %865 = vmatpush.bf16.msra.mxu2 %v1456_v16 }
  0xe0   : > { %v727_v58 = vpop.permute.xlu0 %726  ;;  %v721_v59 = vpop.permute.xlu1 %720 }
  0xe1   : > { %v729_v60 = vsel %vm642_vm2, %v725_v47, %v727_v58  ;;  %v728_v63 = vsel %vm642_vm2, %v721_v59, %v723_v55  ;;  %v904_v39 = vpop.permute.xlu2 %903 }
  0xe2   : > { %801 = vmatpush.bf16.msra.mxu0 %v729_v60  ;;  %866 = vmatpush.bf16.msra.mxu2 %v1458_v17 }
  0xe5   : > { %867 = vmatmul.bf16.vlgmr.msra.gmra.mxu2 %v1196_v61 }
  0xe6   : > { %802 = vmatpush.bf16.msra.mxu0 %v728_v63 }
  0xe8   : > { %v678_v2 = vpop.permute.xlu0 %677  ;;  %v680_v3 = vpop.permute.xlu1 %679 }
  0xe9   : > { %v683_v4 = vsel %vm681_vm3, %v678_v2, %v680_v3 }
  0xea   : > { %884 = vmatpush.bf16.msra.mxu3 %v683_v4  ;;  %803 = vmatpush.bf16.msra.mxu0 %v1460_v18 }
  0xee   : > { %804 = vmatpush.bf16.msra.mxu0 %v1465_v22  ;;  %v900_v22 = vld [vmem:[%s1590_s6 + $0x18] sm:$0xff] }
  0xef   : > { %918 = vperm.xlu2 %1291, %v900_v22   ;;  %938 = vperm.xlu1 %1294, %v900_v22  }
  0xf0   : > { %v763_v16 = vpop.permute.xlu0 %762  ;;  %v674_v17 = vpop.permute.xlu1 %673 }
  0xf1   : > { %v765_v18 = vsel %vm681_vm3, %v761_v62, %v763_v16  ;;  %v682_v19 = vsel %vm681_vm3, %v674_v17, %v676_v11  ;;  %805 = vmatmul.bf16.vlgmr.msra.gmra.mxu0 %v1178_v7 }
  0xf2   : > { %822 = vmatpush.bf16.msra.mxu1 %v765_v18  ;;  %885 = vmatpush.bf16.msra.mxu3 %v682_v19 }
  0xf5   : > { %1209 = vmatmul.msk.bf16.vlgmr.msra.gmra.mxu3 %vm790_vm4, %v1200_v20  ;;  %872 = vmatmul.bf16.gmra.mxu2 %v1204_v21 }
  0xf7   : > { %1295 = vset.pattern.permute.xlu2 %v1342_v15 }
  0xf8   : > { %v757_v25 = vpop.permute.xlu0 %756  ;;  %v759_v26 = vpop.permute.xlu1 %758  ;;  %930 = vperm.xlu2 %1295, %v898_v10  }
  0xf9   : > { %v764_v27 = vsel %vm681_vm3, %v757_v25, %v759_v26 }
  0xfa   : > { %823 = vmatpush.bf16.msra.mxu1 %v764_v27 }
  0xfd   : > { %1191 = vmatmul.msk.bf16.vlgmr.msra.gmra.mxu1 %vm790_vm4, %v1182_v28 }
 0x100   : > { %v914_v43 = vpop.permute.xlu1 %913  ;;  %v909_v56 = vpop.permute.xlu0 %908 }
 0x101   : > { %810 = vmatmul.bf16.gmra.mxu0 %v1186_v31 }
 0x105   : > { %1210 = vmatmul.msk.bf16.gmra.mxu3 %vm790_vm4, %v1208_v34 }
 0x109   : > { %v927_v54 = vpop.permute.xlu1 %926  ;;  %v935_v15 = vpop.permute.xlu0 %934 }
 0x10d   : > { %1192 = vmatmul.msk.bf16.gmra.mxu1 %vm790_vm4, %v1190_v37 }
 0x149   : > { %v919_v47 = vpop.permute.xlu2 %918 }
 0x152   : > { %v931_v60 = vpop.permute.xlu2 %930 }
 0x161   : > { %v939_v21 = vpop.permute.xlu1 %938 }
 0x168   : > { %v868_v40 = vpop.f32.mrf.mxu2 }
 0x16e   : > { %v806_v38 = vpop.f32.mrf.mxu0 }
 0x170   : > { %v870_v49 = vpop.f32.mrf.mxu2 }
 0x176   : > { %v808_v46 = vpop.f32.mrf.mxu0 }
 0x178   : > { %v887_v41 = vpop.f32.mrf.mxu3  ;;  %v873_v62 = vpop.f32.mrf.mxu2 }
 0x17a   : > { %v825_v42 = vpop.f32.mrf.mxu1 }
 0x17b   : > { %v826_v44 = vadd.f32 %v825_v42, %v806_v38 }
 0x17d   : > { %v869_v45 = vadd.f32 %v868_v40, %v826_v44 }
 0x17e   : > { %v811_v59 = vpop.f32.mrf.mxu0 }
 0x17f   : > { %v888_v48 = vadd.f32 %v887_v41, %v869_v45 }
 0x180   : > { %v889_v50 = vpop.f32.mrf.mxu3  ;;  %v875_v14 = vpop.f32.mrf.mxu2 }
 0x181   : > { %v921_v53 = vmul.f32 %v904_v39, %v888_v48 }
 0x182   : > { %v827_v51 = vpop.f32.mrf.mxu1 }
 0x183   : > { %v828_v52 = vadd.f32 %v827_v51, %v808_v46  ;;  %v941_v57 = vadd.f32 %v927_v54, %v921_v53 }
 0x185   : > { %v871_v55 = vadd.f32 %v870_v49, %v828_v52  ;;  %v949_v0 = vmul.f32 0.1, %v941_v57  ;;  %vm945_vm5 = vcmp.ge.f32.partialorder %v941_v57, 0.0 }
 0x186   : > { %v813_v10 = vpop.f32.mrf.mxu0 }
 0x187   : > { %v890_v58 = vadd.f32 %v889_v50, %v871_v55  ;;  %v953_v6 = vsel %vm945_vm5, %v941_v57, %v949_v0 }
 0x188   : > { %v892_v3 = vpop.f32.mrf.mxu3 }
 0x189   : > { %v922_v61 = vmul.f32 %v909_v56, %v890_v58 }
 0x18a   : > { %v830_v63 = vpop.f32.mrf.mxu1 }
 0x18b   : > { %v942_v1 = vadd.f32 %v931_v60, %v922_v61  ;;  %v831_v2 = vadd.f32 %v830_v63, %v811_v59 }
 0x18d   : > { %vm946_vm6 = vcmp.ge.f32.partialorder %v942_v1, 0.0  ;;  %v950_v4 = vmul.f32 0.1, %v942_v1  ;;  %v874_v5 = vadd.f32 %v873_v62, %v831_v2 }
 0x18f   : > { %v954_v7 = vsel %vm946_vm6, %v942_v1, %v950_v4  ;;  %v893_v8 = vadd.f32 %v892_v3, %v874_v5 }
 0x190   : > { %v1237_v9 = vpack.c.bf16 %v954_v7, %v953_v6  ;;  %v894_v17 = vpop.f32.mrf.mxu3 }
 0x191   : > { %v923_v12 = vmul.f32 %v914_v43, %v893_v8 }
 0x192   : > { %1238 = vst [vmem:[%s602_s9] sm:$0xff] %v1237_v9   ;;  %v832_v11 = vpop.f32.mrf.mxu1 }
 0x193   : > { %v833_v13 = vadd.f32 %v832_v11, %v813_v10  ;;  %v943_v18 = vadd.f32 %v935_v15, %v923_v12 }
 0x195   : > { %v876_v16 = vadd.f32 %v875_v14, %v833_v13  ;;  %v951_v22 = vmul.f32 0.1, %v943_v18  ;;  %vm947_vm7 = vcmp.ge.f32.partialorder %v943_v18, 0.0 }
 0x197   : > { %v895_v19 = vadd.f32 %v894_v17, %v876_v16  ;;  %v955_v25 = vsel %vm947_vm7, %v943_v18, %v951_v22 }
 0x199   : > { %v924_v20 = vmul.f32 %v919_v47, %v895_v19 }
 0x19b   : > { %v944_v23 = vadd.f32 %v939_v21, %v924_v20 }
 0x19d   : > { %vm948_vm8 = vcmp.ge.f32.partialorder %v944_v23, 0.0  ;;  %v952_v24 = vmul.f32 0.1, %v944_v23 }
 0x19f   : > { %v956_v26 = vsel %vm948_vm8, %v944_v23, %v952_v24 }
 0x1a0   : > { %v1242_v27 = vpack.c.bf16 %v956_v26, %v955_v25 }
 0x1a2   : > { %1244 = vst [vmem:[%s602_s9 + $0x8] sm:$0xff] %v1242_v27  }
 0x1a3 PF: > { %s17_s28 = sadd.s32 1, %s1335_s28   ;;  %s1593_s24 = smov %s1323_s25 }
 0x1a4   : > { %p14_p10 = scmp.ge.s32.totalorder %s17_s28, 4   ;;  %s1594_s25 = smov %s1422_s10 }
 0x1a5   : > { %s1595_s26 = smov %s1331_s27  ;;  %s1596_s27 = smov %s1598_s29 }
 0x1a6   :  { %16 = sbr.rel (!%p14_p10) target bundleno = 3 (0x3), region = 271 }

// kernel: _lambda_.16
= control target key start
LH: loop header
LB: loop body
LE: loop exit
PB: predicated region body
PF: predicated region fallthrough
CT: control target
= control target key end

     0   :  { %s1291_s24 = smov 0   ;;  %s1293_s25 = smov 0   ;;  %s1488_s0 = inlined_call_operand.vmem [shape: bf16[2,32,256], index: 0, kind: input, shape index: {}, may-alias: {0,1}]   ;;  %s1489_s1 = inlined_call_operand.vmem [shape: bf16[2,32,256], index: 1, kind: input, shape index: {}, may-alias: {0,1}]   ;;  %s1490_s2 = inlined_call_operand.vmem [shape: bf16[2,24,256], index: 2, kind: input, shape index: {}, may-alias: {2,3}]   ;;  %s1491_s3 = inlined_call_operand.vmem [shape: bf16[2,24,256], index: 3, kind: input, shape index: {}, may-alias: {2,3}]   ;;  %s1492_s4 = inlined_call_operand.vmem [shape: bf16[24,160], index: 4, kind: input, shape index: {}]   ;;  %s1493_s5 = inlined_call_operand.vmem [shape: bf16[24,120], index: 5, kind: input, shape index: {}]   ;;  %s1494_s6 = inlined_call_operand.vmem [shape: f32[24,2], index: 6, kind: input, shape index: {}]   ;;  %s1495_s7 = inlined_call_operand.vmem [shape: bf16[2,24,128], index: 7, kind: output, shape index: {}]  }
   0x1   :  { %s1295_s26 = smov 0   ;;  %s1297_s27 = smov 0  }
   0x2   :  { %s1299_s28 = smov 0  }
   0x3 LB: > { %s29_s29 = sadd.s32 1, %s1239_s27  ;;  %p45_p1 = scmp.ne.s32.totalorder %s1231_s25, %s1227_s24  ;;  %s1243_s28 = sphi %s1299_s28, %s17_s28   ;;  %s1239_s27 = sphi %s1297_s27, %s1500_s27   ;;  %s1235_s26 = sphi %s1295_s26, %s1499_s26   ;;  %s1231_s25 = sphi %s1293_s25, %s1498_s25   ;;  %s1227_s24 = sphi %s1291_s24, %s1497_s24  }
   0x4   : > { %p31_p0 = scmp.ge.s32.totalorder %s29_s29, 2  ;;  %p46_p2 = scmp.eq.s32.totalorder %s1243_s28, 0 }
   0x5   : > { %s38_s9 = sadd.s32 1, %s1231_s25  ;;  %p1062_p5 = scmp.ge.s32.totalorder %s1243_s28, 2 }
   0x6   : > { %s1502_s29 = smov (%p31_p0, %s29_s29), 0  ;;  %p1322_p3 = por %p46_p2, %p45_p1 }
   0x7   : > { %s33_s8 = ssub.s32 %s1239_s27, %s1502_s29  ;;  %259 = sbr.rel (%p1062_p5) target bundleno = 44 (0x2c), region = 28 }
   0x8   : > { %p36_p4 = scmp.eq.s32.totalorder %s33_s8, 0 }
   0xa   : > { %s1330_s10 = scalar_select %p36_p4, %s1231_s25, %s38_s9  }
   0xc   : > { %262 = sbr.rel (!%p1322_p3) target bundleno = 20 (0x14), region = 32  ;;  %s264_s11 = sand.u32 (%p1322_p3), 1, %s1231_s25  }
   0xd   : > { %s1124_s12 = sshll.u32 (%p1322_p3), %s1239_s27, 5  ;;  %s1063_s13 = sshll.u32 (%p1322_p3), %s264_s11, 4 }
   0xe   : > { %s270_s16 = scalar_lea.vmem (%p1322_p3), %s1488_s0, %s1124_s12  ;;  %s266_s17 = scalar_lea.vmem (%p1322_p3), [#allocation2], %s1063_s13 }
   0xf   : > { %v287_v0 = vld [vmem:[%s270_s16] sm:$0xf] (%p1322_p3)  ;;  %v289_v1 = vld [vmem:[%s270_s16 + $0x8] sm:$0xf] (%p1322_p3)  ;;  %v291_v2 = vld [vmem:[%s270_s16 + $0x10] sm:$0xf] (%p1322_p3) }
  0x10   : > { %288 = vst [vmem:[%s266_s17] sm:$0xf] (%p1322_p3), %v287_v0  ;;  %v293_v3 = vld [vmem:[%s270_s16 + $0x18] sm:$0xf] (%p1322_p3) }
  0x11   : > { %290 = vst [vmem:[%s266_s17 + $0x4] sm:$0xf] %v289_v1 }
  0x12   : > { %292 = vst [vmem:[%s266_s17 + $0x8] sm:$0xf] %v291_v2 }
  0x13   : > { %294 = vst [vmem:[%s266_s17 + $0xc] sm:$0xf] %v293_v3 }
  0x14 PF: > { %326 = sbr.rel (!%p1322_p3) target bundleno = 28 (0x1c), region = 73  ;;  %s328_s18 = sand.u32 (%p1322_p3), 1, %s1231_s25  }
  0x15   : > { %s1125_s19 = sshll.u32 (%p1322_p3), %s1239_s27, 5  ;;  %s1066_s20 = sshll.u32 (%p1322_p3), %s328_s18, 4 }
  0x16   : > { %s950_s23 = scalar_lea.vmem (%p1322_p3), %s1489_s1, %s1125_s19  ;;  %s330_s8 = scalar_lea.vmem (%p1322_p3), [#allocation3], %s1066_s20 }
  0x17   : > { %v1069_v4 = vld [vmem:[%s950_s23 + $0x4] sm:$0xf] (%p1322_p3)  ;;  %v1070_v5 = vld [vmem:[%s950_s23 + $0xc] sm:$0xf] (%p1322_p3)  ;;  %v1071_v6 = vld [vmem:[%s950_s23 + $0x14] sm:$0xf] (%p1322_p3) }
  0x18   : > { %353 = vst [vmem:[%s330_s8] sm:$0xf] (%p1322_p3), %v1069_v4  ;;  %v1072_v7 = vld [vmem:[%s950_s23 + $0x1c] sm:$0xf] (%p1322_p3) }
  0x19   : > { %355 = vst [vmem:[%s330_s8 + $0x4] sm:$0xf] %v1070_v5 }
  0x1a   : > { %357 = vst [vmem:[%s330_s8 + $0x8] sm:$0xf] %v1071_v6 }
  0x1b   : > { %359 = vst [vmem:[%s330_s8 + $0xc] sm:$0xf] %v1072_v7 }
  0x1c PF: > { %391 = sbr.rel (!%p1322_p3) target bundleno = 36 (0x24), region = 114  ;;  %s393_s9 = sand.u32 (%p1322_p3), 1, %s1231_s25  }
  0x1d   : > { %s1149_s11 = smul.u32 (%p1322_p3), 24, %s1239_s27 }
  0x1e   : > { %s1148_s12 = smul.u32 (%p1322_p3), 12, %s393_s9 }
  0x1f   : > { %s399_s15 = scalar_lea.vmem (%p1322_p3), %s1490_s2, %s1149_s11 }
  0x20   : > { %v416_v8 = vld [vmem:[%s399_s15] sm:$0xf] (%p1322_p3)  ;;  %v418_v9 = vld [vmem:[%s399_s15 + $0x8] sm:$0xf] (%p1322_p3)  ;;  %s395_s16 = scalar_lea.vmem (%p1322_p3), [#allocation4], %s1148_s12 }
  0x21   : > { %417 = vst [vmem:[%s395_s16] sm:$0xf] %v416_v8  ;;  %v420_v10 = vld [vmem:[%s399_s15 + $0x10] sm:$0xf] }
  0x22   : > { %419 = vst [vmem:[%s395_s16 + $0x4] sm:$0xf] %v418_v9 }
  0x23   : > { %421 = vst [vmem:[%s395_s16 + $0x8] sm:$0xf] %v420_v10 }
  0x24 PF: > { %451 = sbr.rel (!%p1322_p3) target bundleno = 44 (0x2c), region = 155  ;;  %s453_s17 = sand.u32 (%p1322_p3), 1, %s1231_s25  }
  0x25   : > { %s1074_s18 = smul.u32 (%p1322_p3), 24, %s1239_s27 }
  0x26   : > { %s1150_s19 = smul.u32 (%p1322_p3), 12, %s453_s17 }
  0x27   : > { %s963_s22 = scalar_lea.vmem (%p1322_p3), %s1491_s3, %s1074_s18 }
  0x28   : > { %v1075_v11 = vld [vmem:[%s963_s22 + $0x4] sm:$0xf] (%p1322_p3)  ;;  %v1076_v12 = vld [vmem:[%s963_s22 + $0xc] sm:$0xf] (%p1322_p3)  ;;  %s455_s23 = scalar_lea.vmem (%p1322_p3), [#allocation5], %s1150_s19 }
  0x29   : > { %478 = vst [vmem:[%s455_s23] sm:$0xf] %v1075_v11  ;;  %v1077_v13 = vld [vmem:[%s963_s22 + $0x14] sm:$0xf] }
  0x2a   : > { %480 = vst [vmem:[%s455_s23 + $0x4] sm:$0xf] %v1076_v12 }
  0x2b   : > { %482 = vst [vmem:[%s455_s23 + $0x8] sm:$0xf] %v1077_v13 }
  0x2c PF: > { %p1078_p6 = scmp.ge.s32.totalorder %s1243_s28, 1  ;;  %p511_p7 = scmp.lt.s32.totalorder %s1243_s28, 3 }
  0x2e   : > { %p512_p8 = pnand %p1078_p6, %p511_p7 }
  0x2f   : > { %s518_s30 = sand.u32 (!%p512_p8), 1, %s1227_s24   ;;  %s1245_s12 = smov (!%p512_p8), 125  }
  0x30   : > { %515 = sbr.rel (%p512_p8) target bundleno = 406 (0x196), region = 196  ;;  %s1079_s8 = sshll.u32 (!%p512_p8), %s518_s30, 4 }
  0x31   : > { %s520_s9 = scalar_lea.vmem (!%p512_p8), [#allocation2], %s1079_s8  ;;  %s1151_s11 = smul.u32 (!%p512_p8), 12, %s518_s30 }
  0x32   : > { %s527_s24 = scalar_lea.vmem (!%p512_p8), [#allocation3], %s1079_s8  ;;  %s1246_s15 = smov (!%p512_p8), 124  }
  0x33   : > { %s534_s13 = scalar_lea.vmem (!%p512_p8), [#allocation4], %s1151_s11  ;;  %s541_s14 = scalar_lea.vmem (!%p512_p8), [#allocation5], %s1151_s11 }
  0x34   : > { %s1247_s16 = smov (!%p512_p8), 126   ;;  %s1248_s17 = smov (!%p512_p8), 127  }
  0x35   : > { %v1364_v14 = vld [vmem:[%s520_s9 + $0x8] sm:$0xff]  ;;  %v1366_v15 = vld [vmem:[%s520_s9] sm:$0xff]  ;;  %v1133_v25 = vld [vmem:[%s541_s14] sm:$0xff]  ;;  %vm704_vm0 = vcmask 1043456   ;;  %vm673_vm1 = vcmask 1014784   ;;  %vm660_vm2 = vcmask 1022976  }
  0x36   : > { %656 = vrot.lane.b32.xlu0 %v1364_v14, %s1245_s12  ;;  %652 = vrot.lane.b32.xlu1 %v1366_v15, %s1245_s12  ;;  %v683_v16 = vld [vmem:[%s534_s13 + $0x8] sm:$0xf]  ;;  %v686_v18 = vld [vmem:[%s541_s14 + $0x8] sm:$0xf]  ;;  %v706_v27 = vrot.slane %v1133_v25, 4  ;;  %vm647_vm3 = vcmask 1031168  }
  0x37   : > { %v692_v17 = vunpack.c.l.b16 %v683_v16  ;;  %v1129_v19 = vld [vmem:[%s527_s24 + $0x8] sm:$0xff]  ;;  %v1128_v20 = vld [vmem:[%s527_s24] sm:$0xff]  ;;  %v701_v22 = vunpack.c.l.b16 %v686_v18  ;;  %vm634_vm4 = vcmask 1039360   ;;  %v1249_v9 = vmov 0   ;;  %p587_p9 = scmp.lt.s32.totalorder %s1235_s26, 1 }
  0x38   : > { %v1382_v24 = vld [vmem:[%s534_s13] sm:$0xff]  ;;  %1201 = vset.pattern.permute.xlu1 %v1249_v9  ;;  %1200 = vset.pattern.permute.xlu0 %v1249_v9  ;;  %v1131_v13 = vld [vmem:[%s1492_s4 + $0x4] sm:$0xf0]  ;;  %vm818_vm5 = vcmask 261120   ;;  %vm775_vm6 = vcmask 982016  }
  0x39   : > { %v1372_v21 = vpack.c.b16 %v692_v17, %v692_v17  ;;  %v703_v23 = vpack.c.b16 %v701_v22, %v701_v22  ;;  %v705_v29 = vrot.slane %v1382_v24, 4  ;;  %v863_v6 = vld [vmem:[%s1494_s6 + $0x10] sm:$0xff]  ;;  %v862_v7 = vld [vmem:[%s1494_s6 + $0x8] sm:$0xff]  ;;  %v861_v8 = vld [vmem:[%s1494_s6] sm:$0xff]  ;;  %1199 = vset.pattern.permute.xlu2 %v1249_v9  ;;  %s1504_s26 = smov (!%p587_p9, %s1235_s26), 1 }
  0x3a   : > { %v1130_v10 = vld [vmem:[%s1492_s4 + $0x4] sm:$0xf]  ;;  %v1116_v11 = vld [vmem:[%s1492_s4 + $0x8] sm:$0xf0]  ;;  %v1114_v12 = vld [vmem:[%s1492_s4] sm:$0xf] }
  0x3b   : > { %748 = vrot.lane.b32.xlu2 %v1372_v21, %s1246_s15  ;;  %v707_v26 = vrot.slane %v1372_v21, 4  ;;  %v709_v28 = vrot.slane %v703_v23, 4  ;;  %v1115_v22 = vor.u32 %v1131_v13, %v1114_v12  ;;  %s1152_s21 = smul.u32 12, %s1504_s26 }
  0x3d   : > { %v708_v30 = vsel %vm704_vm0, %v705_v29, %v707_v26  ;;  %v710_v31 = vsel %vm704_vm0, %v706_v27, %v709_v28  ;;  %s594_s30 = scalar_lea.vmem %s1495_s7, %s1152_s21 }
  0x3e   : > { %658 = vrot.lane.b32.xlu0 %v1129_v19, %s1245_s12  ;;  %654 = vrot.lane.b32.xlu1 %v1128_v20, %s1245_s12 }
  0x43   : > { %750 = vrot.lane.b32.xlu2 %v703_v23, %s1246_s15 }
  0x46   : > { %643 = vrot.lane.b32.xlu0 %v1364_v14, %s1247_s16  ;;  %645 = vrot.lane.b32.xlu1 %v1129_v19, %s1247_s16 }
  0x4b   : > { %639 = vrot.lane.b32.xlu2 %v1366_v15, %s1247_s16 }
  0x4e   : > { %641 = vrot.lane.b32.xlu0 %v1128_v20, %s1247_s16  ;;  %744 = vrot.lane.b32.xlu1 %v1382_v24, %s1246_s15 }
  0x53   : > { %746 = vrot.lane.b32.xlu2 %v1133_v25, %s1246_s15 }
  0x56   : > { %630 = vrot.lane.b32.xlu0 %v1364_v14, %s1248_s17  ;;  %632 = vrot.lane.b32.xlu1 %v1129_v19, %s1248_s17 }
  0x5b   : > { %737 = vrot.lane.b32.xlu2 %v708_v30, %s1245_s12 }
  0x5e   : > { %739 = vrot.lane.b32.xlu0 %v710_v31, %s1245_s12  ;;  %726 = vrot.lane.b32.xlu1 %v1372_v21, %s1247_s16 }
  0x63   : > { %728 = vrot.lane.b32.xlu2 %v703_v23, %s1247_s16 }
  0x66   : > { %733 = vrot.lane.b32.xlu0 %v705_v29, %s1245_s12  ;;  %735 = vrot.lane.b32.xlu1 %v706_v27, %s1245_s12 }
  0x6b   : > { %626 = vrot.lane.b32.xlu2 %v1366_v15, %s1248_s17 }
  0x6e   : > { %628 = vrot.lane.b32.xlu0 %v1128_v20, %s1248_s17  ;;  %669 = vrot.lane.b32.xlu1 %v1364_v14, %s1246_s15 }
  0x73   : > { %671 = vrot.lane.b32.xlu2 %v1129_v19, %s1246_s15 }
  0x76   : > { %665 = vrot.lane.b32.xlu0 %v1366_v15, %s1246_s15  ;;  %667 = vrot.lane.b32.xlu1 %v1128_v20, %s1246_s15  ;;  %v1119_v20 = vor.u32 %v1130_v10, %v1116_v11 }
  0x7b   : > { %722 = vrot.lane.b32.xlu2 %v1382_v24, %s1247_s16 }
  0x7e   : > { %724 = vrot.lane.b32.xlu0 %v1133_v25, %s1247_s16  ;;  %715 = vrot.lane.b32.xlu1 %v708_v30, %s1248_s17 }
  0x83   : > { %717 = vrot.lane.b32.xlu2 %v710_v31, %s1248_s17  ;;  %v766_v31 = vld [vmem:[%s1493_s5 + $0x8] sm:$0xf] }
  0x86   : > { %711 = vrot.lane.b32.xlu0 %v705_v29, %s1248_s17  ;;  %713 = vrot.lane.b32.xlu1 %v706_v27, %s1248_s17 }
  0x8b   : > { %866 = vperm.xlu2 %1199, %v861_v8  }
  0x8e   : > { %876 = vperm.xlu1 %1201, %v863_v6   ;;  %871 = vperm.xlu0 %1200, %v862_v7  }
  0x95   : > { %v749_v32 = vpop.permute.xlu2 %748 }
  0x9d   : > { %v751_v33 = vpop.permute.xlu2 %750 }
  0x9e   : > { %v753_v34 = vsel %vm673_vm1, %v749_v32, %v751_v33 }
  0x9f   : > { %v783_v35 = vsel %vm704_vm0, %v753_v34, 0 }
  0xa0   : > { %785 = vmatpush.bf16.msra.mxu0 %v783_v35  ;;  %1140 = vmatpush.bf16.msra.mxu3 %v783_v35 }
  0xa5   : > { %v640_v38 = vpop.permute.xlu2 %639 }
  0xa8   : > { %v657_v36 = vpop.permute.xlu0 %656  ;;  %v653_v37 = vpop.permute.xlu1 %652 }
  0xad   : > { %v747_v43 = vpop.permute.xlu2 %746 }
  0xb0   : > { %v659_v39 = vpop.permute.xlu0 %658  ;;  %v655_v40 = vpop.permute.xlu1 %654 }
  0xb1   : > { %v662_v41 = vsel %vm660_vm2, %v657_v36, %v659_v39  ;;  %v661_v42 = vsel %vm660_vm2, %v653_v37, %v655_v40  ;;  %v1134_v39 = vld [vmem:[%s1493_s5] sm:$0xff] }
  0xb2   : > { %825 = vmatpush.bf16.msra.mxu1 %v662_v41 }
  0xb5   : > { %v738_v47 = vpop.permute.xlu2 %737 }
  0xb6   : > { %826 = vmatpush.bf16.msra.mxu1 %v661_v42 }
  0xb8   : > { %v644_v44 = vpop.permute.xlu0 %643  ;;  %v646_v45 = vpop.permute.xlu1 %645 }
  0xb9   : > { %v649_v46 = vsel %vm647_vm3, %v644_v44, %v646_v45 }
  0xba   : > { %827 = vmatpush.bf16.msra.mxu1 %v649_v46 }
  0xbd   : > { %v729_v55 = vpop.permute.xlu2 %728 }
  0xc0   : > { %v642_v48 = vpop.permute.xlu0 %641  ;;  %v745_v49 = vpop.permute.xlu1 %744 }
  0xc1   : > { %v752_v50 = vsel %vm673_vm1, %v745_v49, %v747_v43  ;;  %v648_v51 = vsel %vm647_vm3, %v640_v38, %v642_v48  ;;  %v772_v38 = vunpack.c.l.b16 %v766_v31 }
  0xc2   : > { %786 = vmatpush.bf16.msra.mxu0 %v752_v50  ;;  %1141 = vmatpush.bf16.msra.mxu3 %v752_v50 }
  0xc3   : > { %828 = vmatpush.bf16.msra.mxu1 %v648_v51  ;;  %v774_v40 = vpack.c.b16 %v772_v38, %v772_v38 }
  0xc5   : > { %v627_v59 = vpop.permute.xlu2 %626 }
  0xc8   : > { %v631_v52 = vpop.permute.xlu0 %630  ;;  %v633_v53 = vpop.permute.xlu1 %632 }
  0xc9   : > { %v636_v54 = vsel %vm634_vm4, %v631_v52, %v633_v53 }
  0xca   : > { %829 = vmatpush.bf16.msra.mxu1 %v636_v54 }
  0xcd   : > { %v672_v1 = vpop.permute.xlu2 %671 }
  0xd0   : > { %v740_v56 = vpop.permute.xlu0 %739  ;;  %v727_v57 = vpop.permute.xlu1 %726 }
  0xd1   : > { %v742_v58 = vsel %vm660_vm2, %v738_v47, %v740_v56  ;;  %v731_v62 = vsel %vm647_vm3, %v727_v57, %v729_v55 }
  0xd2   : > { %787 = vmatpush.bf16.msra.mxu0 %v742_v58  ;;  %1142 = vmatpush.bf16.msra.mxu3 %v742_v58 }
  0xd5   : > { %v723_v16 = vpop.permute.xlu2 %722 }
  0xd8   : > { %v734_v60 = vpop.permute.xlu0 %733  ;;  %v736_v61 = vpop.permute.xlu1 %735 }
  0xd9   : > { %v741_v63 = vsel %vm660_vm2, %v734_v60, %v736_v61 }
  0xda   : > { %v762_v0 = vsel %vm704_vm0, %v731_v62, %v741_v63 }
  0xdb   : > { %788 = vmatpush.bf16.msra.mxu0 %v762_v0  ;;  %1143 = vmatpush.bf16.msra.mxu3 %v762_v0 }
  0xdd   : > { %v718_v27 = vpop.permute.xlu2 %717 }
  0xe0   : > { %v629_v2 = vpop.permute.xlu0 %628  ;;  %v670_v3 = vpop.permute.xlu1 %669 }
  0xe1   : > { %v635_v4 = vsel %vm634_vm4, %v627_v59, %v629_v2  ;;  %v675_v5 = vsel %vm673_vm1, %v670_v3, %v672_v1 }
  0xe2   : > { %830 = vmatpush.bf16.msra.mxu1 %v635_v4  ;;  %849 = vmatpush.bf16.msra.mxu2 %v675_v5 }
  0xe5   : > { %v867_v43 = vpop.permute.xlu2 %866 }
  0xe6   : > { %831 = vmatpush.bf16.msra.mxu1 %v1364_v14  ;;  %v1250_v14 = vmov 1  }
  0xe7   : > { %1203 = vset.pattern.permute.xlu1 %v1250_v14  ;;  %1202 = vset.pattern.permute.xlu2 %v1250_v14 }
  0xe8   : > { %v666_v17 = vpop.permute.xlu0 %665  ;;  %v668_v18 = vpop.permute.xlu1 %667  ;;  %887 = vperm.xlu1 %1203, %v862_v7   ;;  %883 = vperm.xlu2 %1202, %v861_v8  }
  0xe9   : > { %v674_v19 = vsel %vm673_vm1, %v666_v17, %v668_v18  ;;  %1204 = vset.pattern.permute.xlu0 %v1250_v14 }
  0xea   : > { %850 = vmatpush.bf16.msra.mxu2 %v674_v19  ;;  %832 = vmatpush.bf16.msra.mxu1 %v1366_v15  ;;  %v680_v15 = vld [vmem:[%s1492_s4 + $0x10] sm:$0xff] }
  0xeb   : > { %v811_v29 = vunpack.c.h.b16 %v680_v15  ;;  %v810_v30 = vunpack.c.l.b16 %v680_v15 }
  0xed   : > { %1120 = vmatmul.msk.bf16.vlgmr.msra.gmra.mxu2 %vm818_vm5, %v1119_v20  ;;  %833 = vmatmul.bf16.vlgmr.msra.gmra.mxu1 %v1115_v22  ;;  %v815_v35 = vpack.c.b16 %v811_v29, %v811_v29  ;;  %v814_v36 = vpack.c.b16 %v810_v30, %v810_v30 }
  0xf0   : > { %v725_v23 = vpop.permute.xlu0 %724  ;;  %v716_v25 = vpop.permute.xlu1 %715  ;;  %891 = vperm.xlu2 %1202, %v863_v6  }
  0xf1   : > { %v730_v26 = vsel %vm647_vm3, %v723_v16, %v725_v23  ;;  %v720_v28 = vsel %vm634_vm4, %v716_v25, %v718_v27 }
  0xf2   : > { %789 = vmatpush.bf16.msra.mxu0 %v730_v26  ;;  %1144 = vmatpush.bf16.msra.mxu3 %v730_v26 }
  0xf6   : > { %790 = vmatpush.bf16.msra.mxu0 %v720_v28  ;;  %1145 = vmatpush.bf16.msra.mxu3 %v720_v28 }
  0xf8   : > { %v712_v32 = vpop.permute.xlu0 %711  ;;  %v714_v33 = vpop.permute.xlu1 %713 }
  0xf9   : > { %v719_v34 = vsel %vm634_vm4, %v712_v32, %v714_v33 }
  0xfa   : > { %v758_v37 = vsel %vm704_vm0, %v1372_v21, %v719_v34 }
  0xfb   : > { %791 = vmatpush.bf16.msra.mxu0 %v758_v37  ;;  %1146 = vmatpush.bf16.msra.mxu3 %v758_v37 }
  0xfd   : > { %1121 = vmatmul.msk.bf16.gmra.mxu2 %vm818_vm5, %v815_v35  ;;  %838 = vmatmul.bf16.gmra.mxu1 %v814_v36 }
  0xff   : > { %792 = vmatpush.bf16.msra.mxu0 %v1382_v24  ;;  %1147 = vmatpush.bf16.msra.mxu3 %v1382_v24 }
 0x100   : > { %v877_v50 = vpop.permute.xlu1 %876  ;;  %v872_v59 = vpop.permute.xlu0 %871 }
 0x102   : > { %1110 = vmatmul.msk.bf16.vlgmr.msra.gmra.mxu0 %vm775_vm6, %v1134_v39  ;;  %1111 = vmatmul.msk.bf16.vlgmr.msra.gmra.mxu3 %vm775_vm6, %v774_v40 }
 0x142   : > { %v884_v49 = vpop.permute.xlu2 %883 }
 0x14a   : > { %v892_v63 = vpop.permute.xlu2 %891 }
 0x15a   : > { %v888_v0 = vpop.permute.xlu1 %887 }
 0x16a   : > { %v834_v21 = vpop.f32.mrf.mxu1 }
 0x170   : > { %v852_v41 = vpop.f32.mrf.mxu2 }
 0x172   : > { %v836_v42 = vpop.f32.mrf.mxu1 }
 0x178   : > { %v854_v44 = vpop.f32.mrf.mxu2 }
 0x17a   : > { %v839_v45 = vpop.f32.mrf.mxu1 }
 0x17f   : > { %v794_v46 = vpop.f32.mrf.mxu0 }
 0x180   : > { %v835_v47 = vadd.f32 %v834_v21, %v794_v46  ;;  %v857_v48 = vpop.f32.mrf.mxu2 }
 0x182   : > { %v853_v51 = vadd.f32 %v852_v41, %v835_v47  ;;  %v841_v52 = vpop.f32.mrf.mxu1 }
 0x184   : > { %v879_v53 = vmul.f32 %v867_v43, %v853_v51 }
 0x185   : > { %v799_v24 = vpop.f32.mrf.mxu3 }
 0x186   : > { %v840_v54 = vadd.f32 %v839_v45, %v799_v24  ;;  %v894_v60 = vadd.f32 %v884_v49, %v879_v53 }
 0x187   : > { %v796_v55 = vpop.f32.mrf.mxu0 }
 0x188   : > { %v858_v56 = vadd.f32 %v857_v48, %v840_v54  ;;  %v837_v57 = vadd.f32 %v836_v42, %v796_v55  ;;  %v859_v58 = vpop.f32.mrf.mxu2  ;;  %v900_v4 = vmul.f32 0.1, %v894_v60  ;;  %vm897_vm8 = vcmp.ge.f32.partialorder %v894_v60, 0.0 }
 0x18a   : > { %v881_v61 = vmul.f32 %v877_v50, %v858_v56  ;;  %v855_v62 = vadd.f32 %v854_v44, %v837_v57  ;;  %v903_v10 = vsel %vm897_vm8, %v894_v60, %v900_v4 }
 0x18c   : > { %v896_v1 = vadd.f32 %v892_v63, %v881_v61  ;;  %v880_v2 = vmul.f32 %v872_v59, %v855_v62 }
 0x18d   : > { %v801_v3 = vpop.f32.mrf.mxu3 }
 0x18e   : > { %vm899_vm7 = vcmp.ge.f32.partialorder %v896_v1, 0.0  ;;  %v902_v5 = vmul.f32 0.1, %v896_v1  ;;  %v895_v6 = vadd.f32 %v888_v0, %v880_v2 }
 0x190   : > { %v905_v7 = vsel %vm899_vm7, %v896_v1, %v902_v5  ;;  %vm898_vm9 = vcmp.ge.f32.partialorder %v895_v6, 0.0  ;;  %v901_v8 = vmul.f32 0.1, %v895_v6 }
 0x191   : > { %v908_v9 = vpack.c.bf16 %v905_v7, %v905_v7 }
 0x192   : > { %v904_v11 = vsel %vm898_vm9, %v895_v6, %v901_v8 }
 0x193   : > { %911 = vst [vmem:[%s594_s30 + $0x8] sm:$0xf] %v908_v9  ;;  %v1138_v12 = vpack.c.bf16 %v904_v11, %v903_v10 }
 0x195   : > { %1139 = vst [vmem:[%s594_s30] sm:$0xff] %v1138_v12  }
 0x196 PF: > { %s17_s28 = sadd.s32 1, %s1243_s28   ;;  %s1497_s24 = smov %s1231_s25 }
 0x197   : > { %p14_p10 = scmp.ge.s32.totalorder %s17_s28, 4   ;;  %s1498_s25 = smov %s1330_s10 }
 0x198   : > { %s1499_s26 = smov %s1239_s27  ;;  %s1500_s27 = smov %s1502_s29 }
 0x199   :  { %16 = sbr.rel (!%p14_p10) target bundleno = 3 (0x3), region = 271 }

// kernel: _lambda_.17
= control target key start
LH: loop header
LB: loop body
LE: loop exit
PB: predicated region body
PF: predicated region fallthrough
CT: control target
= control target key end

     0   :  { %s1145_s24 = smov 0   ;;  %s1147_s25 = smov 0   ;;  %s1289_s0 = inlined_call_operand.vmem [shape: bf16[2,24,256], index: 0, kind: input, shape index: {}, may-alias: {0,1}]   ;;  %s1290_s1 = inlined_call_operand.vmem [shape: bf16[2,24,256], index: 1, kind: input, shape index: {}, may-alias: {0,1}]   ;;  %s1291_s2 = inlined_call_operand.vmem [shape: bf16[2,16,256], index: 2, kind: input, shape index: {}, may-alias: {2,3}]   ;;  %s1292_s3 = inlined_call_operand.vmem [shape: bf16[2,16,256], index: 3, kind: input, shape index: {}, may-alias: {2,3}]   ;;  %s1293_s4 = inlined_call_operand.vmem [shape: bf16[16,120], index: 4, kind: input, shape index: {}]   ;;  %s1294_s5 = inlined_call_operand.vmem [shape: bf16[16,80], index: 5, kind: input, shape index: {}]   ;;  %s1295_s6 = inlined_call_operand.vmem [shape: f32[16,2], index: 6, kind: input, shape index: {}]   ;;  %s1296_s7 = inlined_call_operand.vmem [shape: bf16[2,16,128], index: 7, kind: output, shape index: {}]  }
   0x1   :  { %s1149_s26 = smov 0   ;;  %s1151_s27 = smov 0  }
   0x2   :  { %s1153_s28 = smov 0  }
   0x3 LB: > { %s29_s29 = sadd.s32 1, %s1093_s27  ;;  %p45_p1 = scmp.ne.s32.totalorder %s1085_s25, %s1081_s24  ;;  %s1097_s28 = sphi %s1153_s28, %s17_s28   ;;  %s1093_s27 = sphi %s1151_s27, %s1301_s27   ;;  %s1089_s26 = sphi %s1149_s26, %s1300_s26   ;;  %s1085_s25 = sphi %s1147_s25, %s1299_s25   ;;  %s1081_s24 = sphi %s1145_s24, %s1298_s24  }
   0x4   : > { %p31_p0 = scmp.ge.s32.totalorder %s29_s29, 2  ;;  %p46_p2 = scmp.eq.s32.totalorder %s1097_s28, 0 }
   0x5   : > { %s38_s9 = sadd.s32 1, %s1085_s25  ;;  %p943_p5 = scmp.ge.s32.totalorder %s1097_s28, 2 }
   0x6   : > { %s1303_s29 = smov (%p31_p0, %s29_s29), 0  ;;  %p1176_p3 = por %p46_p2, %p45_p1 }
   0x7   : > { %s33_s8 = ssub.s32 %s1093_s27, %s1303_s29  ;;  %259 = sbr.rel (%p943_p5) target bundleno = 40 (0x28), region = 28 }
   0x8   : > { %p36_p4 = scmp.eq.s32.totalorder %s33_s8, 0 }
   0xa   : > { %s1184_s10 = scalar_select %p36_p4, %s1085_s25, %s38_s9  }
   0xc   : > { %262 = sbr.rel (!%p1176_p3) target bundleno = 20 (0x14), region = 32  ;;  %s264_s11 = sand.u32 (%p1176_p3), 1, %s1085_s25  }
   0xd   : > { %s1005_s12 = smul.u32 (%p1176_p3), 24, %s1093_s27 }
   0xe   : > { %s1004_s13 = smul.u32 (%p1176_p3), 12, %s264_s11 }
   0xf   : > { %s270_s16 = scalar_lea.vmem (%p1176_p3), %s1289_s0, %s1005_s12 }
  0x10   : > { %v287_v0 = vld [vmem:[%s270_s16] sm:$0xf] (%p1176_p3)  ;;  %v289_v1 = vld [vmem:[%s270_s16 + $0x8] sm:$0xf] (%p1176_p3)  ;;  %s266_s17 = scalar_lea.vmem (%p1176_p3), [#allocation2], %s1004_s13 }
  0x11   : > { %288 = vst [vmem:[%s266_s17] sm:$0xf] %v287_v0  ;;  %v291_v2 = vld [vmem:[%s270_s16 + $0x10] sm:$0xf] }
  0x12   : > { %290 = vst [vmem:[%s266_s17 + $0x4] sm:$0xf] %v289_v1 }
  0x13   : > { %292 = vst [vmem:[%s266_s17 + $0x8] sm:$0xf] %v291_v2 }
  0x14 PF: > { %322 = sbr.rel (!%p1176_p3) target bundleno = 28 (0x1c), region = 73  ;;  %s324_s18 = sand.u32 (%p1176_p3), 1, %s1085_s25  }
  0x15   : > { %s945_s19 = smul.u32 (%p1176_p3), 24, %s1093_s27 }
  0x16   : > { %s1006_s20 = smul.u32 (%p1176_p3), 12, %s324_s18 }
  0x17   : > { %s831_s23 = scalar_lea.vmem (%p1176_p3), %s1290_s1, %s945_s19 }
  0x18   : > { %v946_v3 = vld [vmem:[%s831_s23 + $0x4] sm:$0xf] (%p1176_p3)  ;;  %v947_v4 = vld [vmem:[%s831_s23 + $0xc] sm:$0xf] (%p1176_p3)  ;;  %s326_s8 = scalar_lea.vmem (%p1176_p3), [#allocation3], %s1006_s20 }
  0x19   : > { %349 = vst [vmem:[%s326_s8] sm:$0xf] %v946_v3  ;;  %v948_v5 = vld [vmem:[%s831_s23 + $0x14] sm:$0xf] }
  0x1a   : > { %351 = vst [vmem:[%s326_s8 + $0x4] sm:$0xf] %v947_v4 }
  0x1b   : > { %353 = vst [vmem:[%s326_s8 + $0x8] sm:$0xf] %v948_v5 }
  0x1c PF: > { %383 = sbr.rel (!%p1176_p3) target bundleno = 34 (0x22), region = 114  ;;  %s385_s9 = sand.u32 (%p1176_p3), 1, %s1085_s25  }
  0x1d   : > { %s990_s11 = sshll.u32 (%p1176_p3), %s1093_s27, 4  ;;  %s949_s12 = sshll.u32 (%p1176_p3), %s385_s9, 3 }
  0x1e   : > { %s391_s15 = scalar_lea.vmem (%p1176_p3), %s1291_s2, %s990_s11  ;;  %s387_s16 = scalar_lea.vmem (%p1176_p3), [#allocation4], %s949_s12 }
  0x1f   : > { %v408_v6 = vld [vmem:[%s391_s15] sm:$0xf] (%p1176_p3)  ;;  %v410_v7 = vld [vmem:[%s391_s15 + $0x8] sm:$0xf] (%p1176_p3) }
  0x20   : > { %409 = vst [vmem:[%s387_s16] sm:$0xf] (%p1176_p3), %v408_v6 }
  0x21   : > { %411 = vst [vmem:[%s387_s16 + $0x4] sm:$0xf] %v410_v7 }
  0x22 PF: > { %439 = sbr.rel (!%p1176_p3) target bundleno = 40 (0x28), region = 155  ;;  %s441_s17 = sand.u32 (%p1176_p3), 1, %s1085_s25  }
  0x23   : > { %s991_s18 = sshll.u32 (%p1176_p3), %s1093_s27, 4  ;;  %s952_s19 = sshll.u32 (%p1176_p3), %s441_s17, 3 }
  0x24   : > { %s844_s22 = scalar_lea.vmem (%p1176_p3), %s1292_s3, %s991_s18  ;;  %s443_s23 = scalar_lea.vmem (%p1176_p3), [#allocation5], %s952_s19 }
  0x25   : > { %v955_v8 = vld [vmem:[%s844_s22 + $0x4] sm:$0xf] (%p1176_p3)  ;;  %v956_v9 = vld [vmem:[%s844_s22 + $0xc] sm:$0xf] (%p1176_p3) }
  0x26   : > { %466 = vst [vmem:[%s443_s23] sm:$0xf] (%p1176_p3), %v955_v8 }
  0x27   : > { %468 = vst [vmem:[%s443_s23 + $0x4] sm:$0xf] %v956_v9 }
  0x28 PF: > { %p957_p6 = scmp.ge.s32.totalorder %s1097_s28, 1  ;;  %p495_p7 = scmp.lt.s32.totalorder %s1097_s28, 3 }
  0x2a   : > { %p496_p8 = pnand %p957_p6, %p495_p7 }
  0x2b   : > { %s502_s30 = sand.u32 (!%p496_p8), 1, %s1081_s24   ;;  %s1099_s12 = smov (!%p496_p8), 124  }
  0x2c   : > { %499 = sbr.rel (%p496_p8) target bundleno = 380 (0x17c), region = 196  ;;  %s1100_s24 = smov (!%p496_p8), 125  }
  0x2d   : > { %s1007_s8 = smul.u32 (!%p496_p8), 12, %s502_s30  ;;  %s958_s13 = sshll.u32 (!%p496_p8), %s502_s30, 3 }
  0x2e   : > { %s1101_s14 = smov (!%p496_p8), 126   ;;  %s518_s15 = scalar_lea.vmem (!%p496_p8), [#allocation4], %s958_s13 }
  0x2f   : > { %s504_s9 = scalar_lea.vmem (!%p496_p8), [#allocation2], %s1007_s8  ;;  %s511_s11 = scalar_lea.vmem (!%p496_p8), [#allocation3], %s1007_s8 }
  0x30   : > { %s525_s16 = scalar_lea.vmem (!%p496_p8), [#allocation5], %s958_s13  ;;  %s1102_s17 = smov (!%p496_p8), 127  }
  0x31   : > { %v1218_v10 = vld [vmem:[%s504_s9] sm:$0xff]  ;;  %v582_v11 = vld [vmem:[%s504_s9 + $0x8] sm:$0xf]  ;;  %vm603_vm0 = vcmask 1043456   ;;  %v994_v18 = vld [vmem:[%s511_s11] sm:$0xff]  ;;  %vm654_vm1 = vcmask 1014784  }
  0x32   : > { %v591_v12 = vunpack.c.l.b16 %v582_v11  ;;  %v585_v13 = vld [vmem:[%s511_s11 + $0x8] sm:$0xf]  ;;  %646 = vrot.lane.b32.xlu1 %v1218_v10, %s1099_s12  ;;  %v604_v16 = vrot.slane %v1218_v10, 4  ;;  %v605_v21 = vrot.slane %v994_v18, 4  ;;  %v1233_v24 = vld [vmem:[%s518_s15] sm:$0xff]  ;;  %vm642_vm2 = vcmask 1022976  }
  0x33   : > { %v600_v15 = vunpack.c.l.b16 %v585_v13  ;;  %v997_v25 = vld [vmem:[%s525_s16] sm:$0xff]  ;;  %vm630_vm3 = vcmask 1031168   ;;  %vm618_vm4 = vcmask 1039360   ;;  %v1103_v53 = vmov 0   ;;  %p571_p9 = scmp.lt.s32.totalorder %s1089_s26, 1 }
  0x34   : > { %v1222_v14 = vpack.c.b16 %v591_v12, %v591_v12  ;;  %v759_v51 = vld [vmem:[%s1295_s6] sm:$0xff]  ;;  %v760_v52 = vld [vmem:[%s1295_s6 + $0x8] sm:$0xff]  ;;  %1054 = vset.pattern.permute.xlu0 %v1103_v53  ;;  %1055 = vset.pattern.permute.xlu1 %v1103_v53  ;;  %v1104_v55 = vmov 1   ;;  %vm715_vm5 = vcmask 654336   ;;  %vm738_vm6 = vcmask 982016  }
  0x35   : > { %v602_v19 = vpack.c.b16 %v600_v15, %v600_v15  ;;  %1056 = vset.pattern.permute.xlu2 %v1104_v55  ;;  %v998_v5 = vld [vmem:[%s1294_s5] sm:$0xff]  ;;  %s1305_s26 = smov (!%p571_p9, %s1089_s26), 1 }
  0x36   : > { %650 = vrot.lane.b32.xlu0 %v1222_v14, %s1099_s12  ;;  %v606_v17 = vrot.slane %v1222_v14, 4  ;;  %v995_v6 = vld [vmem:[%s1293_s4] sm:$0xff]  ;;  %s992_s9 = sshll.u32 %s1305_s26, 3 }
  0x37   : > { %v608_v22 = vrot.slane %v602_v19, 4 }
  0x38   : > { %v607_v20 = vsel %vm603_vm0, %v604_v16, %v606_v17 }
  0x39   : > { %638 = vrot.lane.b32.xlu2 %v607_v20, %s1100_s24  ;;  %v609_v23 = vsel %vm603_vm0, %v605_v21, %v608_v22 }
  0x3a   : > { %648 = vrot.lane.b32.xlu1 %v994_v18, %s1099_s12 }
  0x3e   : > { %652 = vrot.lane.b32.xlu0 %v602_v19, %s1099_s12 }
  0x41   : > { %640 = vrot.lane.b32.xlu2 %v609_v23, %s1100_s24 }
  0x42   : > { %628 = vrot.lane.b32.xlu1 %v602_v19, %s1101_s14 }
  0x46   : > { %626 = vrot.lane.b32.xlu0 %v1222_v14, %s1101_s14 }
  0x49   : > { %634 = vrot.lane.b32.xlu2 %v604_v16, %s1100_s24 }
  0x4a   : > { %702 = vrot.lane.b32.xlu1 %v1233_v24, %s1099_s12 }
  0x4e   : > { %636 = vrot.lane.b32.xlu0 %v605_v21, %s1100_s24 }
  0x51   : > { %704 = vrot.lane.b32.xlu2 %v997_v25, %s1099_s12 }
  0x52   : > { %624 = vrot.lane.b32.xlu1 %v994_v18, %s1101_s14 }
  0x56   : > { %622 = vrot.lane.b32.xlu0 %v1218_v10, %s1101_s14 }
  0x59   : > { %696 = vrot.lane.b32.xlu2 %v1233_v24, %s1100_s24 }
  0x5a   : > { %614 = vrot.lane.b32.xlu1 %v607_v20, %s1102_s17 }
  0x5e   : > { %698 = vrot.lane.b32.xlu0 %v997_v25, %s1100_s24  ;;  %s578_s24 = scalar_lea.vmem %s1296_s7, %s992_s9 }
  0x61   : > { %616 = vrot.lane.b32.xlu2 %v609_v23, %s1102_s17 }
  0x62   : > { %692 = vrot.lane.b32.xlu1 %v997_v25, %s1101_s14 }
  0x66   : > { %690 = vrot.lane.b32.xlu0 %v1233_v24, %s1101_s14 }
  0x69   : > { %610 = vrot.lane.b32.xlu2 %v604_v16, %s1102_s17 }
  0x6a   : > { %684 = vrot.lane.b32.xlu1 %v1233_v24, %s1102_s17 }
  0x6e   : > { %612 = vrot.lane.b32.xlu0 %v605_v21, %s1102_s17 }
  0x71   : > { %686 = vrot.lane.b32.xlu2 %v997_v25, %s1102_s17 }
  0x72   : > { %768 = vperm.xlu1 %1055, %v760_v52  }
  0x76   : > { %763 = vperm.xlu0 %1054, %v759_v51  }
  0x79   : > { %774 = vperm.xlu2 %1056, %v759_v51  }
  0x7a   : > { %1057 = vset.pattern.permute.xlu1 %v1104_v55 }
  0x7b   : > { %778 = vperm.xlu1 %1057, %v760_v52  }
  0x7e   : > { %1058 = vset.pattern.permute.xlu0 %v1104_v55 }
  0x93   : > { %v639_v26 = vpop.permute.xlu2 %638 }
  0x9b   : > { %v641_v27 = vpop.permute.xlu2 %640 }
  0x9c   : > { %v644_v39 = vsel %vm642_vm2, %v639_v26, %v641_v27 }
  0xa3   : > { %v635_v30 = vpop.permute.xlu2 %634 }
  0xa4   : > { %v647_v28 = vpop.permute.xlu1 %646 }
  0xa8   : > { %v651_v29 = vpop.permute.xlu0 %650 }
  0xab   : > { %v705_v35 = vpop.permute.xlu2 %704 }
  0xac   : > { %v649_v31 = vpop.permute.xlu1 %648 }
  0xad   : > { %v655_v37 = vsel %vm654_vm1, %v647_v28, %v649_v31 }
  0xb0   : > { %v653_v32 = vpop.permute.xlu0 %652 }
  0xb1   : > { %v656_v33 = vsel %vm654_vm1, %v651_v29, %v653_v32 }
  0xb2   : > { %v743_v34 = vsel %vm603_vm0, %v656_v33, 0 }
  0xb3   : > { %745 = vmatpush.bf16.msra.mxu1 %v743_v34  ;;  %v697_v41 = vpop.permute.xlu2 %696 }
  0xb4   : > { %v629_v36 = vpop.permute.xlu1 %628 }
  0xb7   : > { %746 = vmatpush.bf16.msra.mxu1 %v655_v37 }
  0xb8   : > { %v627_v38 = vpop.permute.xlu0 %626 }
  0xb9   : > { %v632_v44 = vsel %vm630_vm3, %v627_v38, %v629_v36 }
  0xbb   : > { %747 = vmatpush.bf16.msra.mxu1 %v644_v39  ;;  %v617_v48 = vpop.permute.xlu2 %616 }
  0xbc   : > { %v703_v40 = vpop.permute.xlu1 %702 }
  0xbd   : > { %v706_v42 = vsel %vm654_vm1, %v703_v40, %v705_v35 }
  0xbe   : > { %722 = vmatpush.bf16.msra.mxu0 %v706_v42 }
  0xc0   : > { %v637_v43 = vpop.permute.xlu0 %636 }
  0xc1   : > { %v643_v45 = vsel %vm642_vm2, %v635_v30, %v637_v43 }
  0xc2   : > { %v665_v46 = vsel %vm603_vm0, %v632_v44, %v643_v45 }
  0xc3   : > { %748 = vmatpush.bf16.msra.mxu1 %v665_v46  ;;  %v611_v59 = vpop.permute.xlu2 %610 }
  0xc4   : > { %v625_v47 = vpop.permute.xlu1 %624 }
  0xc8   : > { %v623_v49 = vpop.permute.xlu0 %622 }
  0xc9   : > { %v631_v50 = vsel %vm630_vm3, %v623_v49, %v625_v47 }
  0xca   : > { %749 = vmatpush.bf16.msra.mxu1 %v631_v50 }
  0xcb   : > { %v687_v63 = vpop.permute.xlu2 %686 }
  0xcc   : > { %v615_v54 = vpop.permute.xlu1 %614 }
  0xcd   : > { %v620_v56 = vsel %vm618_vm4, %v615_v54, %v617_v48 }
  0xce   : > { %750 = vmatpush.bf16.msra.mxu1 %v620_v56 }
  0xd0   : > { %v699_v57 = vpop.permute.xlu0 %698 }
  0xd1   : > { %v700_v58 = vsel %vm642_vm2, %v697_v41, %v699_v57 }
  0xd2   : > { %723 = vmatpush.bf16.msra.mxu0 %v700_v58 }
  0xd4   : > { %v693_v60 = vpop.permute.xlu1 %692 }
  0xd8   : > { %v691_v61 = vpop.permute.xlu0 %690 }
  0xd9   : > { %v694_v62 = vsel %vm630_vm3, %v691_v61, %v693_v60 }
  0xda   : > { %724 = vmatpush.bf16.msra.mxu0 %v694_v62 }
  0xdc   : > { %v685_v0 = vpop.permute.xlu1 %684 }
  0xdd   : > { %v688_v1 = vsel %vm618_vm4, %v685_v0, %v687_v63 }
  0xde   : > { %725 = vmatpush.bf16.msra.mxu0 %v688_v1 }
  0xe0   : > { %v613_v2 = vpop.permute.xlu0 %612 }
  0xe1   : > { %v619_v3 = vsel %vm618_vm4, %v611_v59, %v613_v2 }
  0xe2   : > { %v661_v4 = vsel %vm603_vm0, %v1222_v14, %v619_v3  ;;  %726 = vmatpush.bf16.msra.mxu0 %v1233_v24  ;;  %v775_v14 = vpop.permute.xlu2 %774 }
  0xe3   : > { %751 = vmatpush.bf16.msra.mxu1 %v661_v4 }
  0xe4   : > { %v769_v9 = vpop.permute.xlu1 %768 }
  0xe5   : > { %982 = vmatmul.msk.bf16.vlgmr.msra.gmra.mxu0 %vm715_vm5, %v998_v5 }
  0xe7   : > { %752 = vmatpush.bf16.msra.mxu1 %v1218_v10 }
  0xe8   : > { %v764_v12 = vpop.permute.xlu0 %763 }
  0xea   : > { %987 = vmatmul.msk.bf16.vlgmr.msra.gmra.mxu1 %vm738_vm6, %v995_v6 }
  0xed   : > { %v779_v19 = vpop.permute.xlu1 %778 }
 0x162   : > { %v728_v7 = vpop.f32.mrf.mxu0 }
 0x167   : > { %v754_v8 = vpop.f32.mrf.mxu1 }
 0x168   : > { %v755_v11 = vadd.f32 %v754_v8, %v728_v7 }
 0x16a   : > { %v771_v13 = vmul.f32 %v764_v12, %v755_v11  ;;  %v730_v15 = vpop.f32.mrf.mxu0 }
 0x16c   : > { %v781_v17 = vadd.f32 %v775_v14, %v771_v13 }
 0x16e   : > { %v785_v21 = vmul.f32 0.1, %v781_v17  ;;  %vm783_vm7 = vcmp.ge.f32.partialorder %v781_v17, 0.0 }
 0x16f   : > { %v756_v16 = vpop.f32.mrf.mxu1 }
 0x170   : > { %v757_v18 = vadd.f32 %v756_v16, %v730_v15  ;;  %v787_v23 = vsel %vm783_vm7, %v781_v17, %v785_v21 }
 0x172   : > { %v772_v20 = vmul.f32 %v769_v9, %v757_v18 }
 0x174   : > { %v782_v22 = vadd.f32 %v779_v19, %v772_v20 }
 0x176   : > { %vm784_vm8 = vcmp.ge.f32.partialorder %v782_v22, 0.0  ;;  %v786_v10 = vmul.f32 0.1, %v782_v22 }
 0x178   : > { %v788_v24 = vsel %vm784_vm8, %v782_v22, %v786_v10 }
 0x179   : > { %v1002_v25 = vpack.c.bf16 %v788_v24, %v787_v23 }
 0x17b   : > { %1003 = vst [vmem:[%s578_s24] sm:$0xff] %v1002_v25  }
 0x17c PF: > { %s17_s28 = sadd.s32 1, %s1097_s28   ;;  %s1298_s24 = smov %s1085_s25 }
 0x17d   : > { %p14_p10 = scmp.ge.s32.totalorder %s17_s28, 4   ;;  %s1299_s25 = smov %s1184_s10 }
 0x17e   : > { %s1300_s26 = smov %s1093_s27  ;;  %s1301_s27 = smov %s1303_s29 }
 0x17f   :  { %16 = sbr.rel (!%p14_p10) target bundleno = 3 (0x3), region = 271 }

// kernel: _lambda_.19
= control target key start
LH: loop header
LB: loop body
LE: loop exit
PB: predicated region body
PF: predicated region fallthrough
CT: control target
= control target key end

     0   :  { %12 = vsyncpa [#allocation3], 0  ;;  %s930_s0 = inlined_call_operand.vmem [shape: bf16[2,8,256], index: 0, kind: input, shape index: {}, may-alias: {0,1}]   ;;  %s931_s1 = inlined_call_operand.vmem [shape: bf16[2,8,256], index: 1, kind: input, shape index: {}, may-alias: {0,1}]   ;;  %s932_s2 = inlined_call_operand.vmem [shape: bf16[2,3,256], index: 2, kind: input, shape index: {}, may-alias: {2,3}]   ;;  %s933_s3 = inlined_call_operand.vmem [shape: bf16[2,3,256], index: 3, kind: input, shape index: {}, may-alias: {2,3}]   ;;  %s934_s4 = inlined_call_operand.vmem [shape: bf16[2,8], index: 4, kind: input, shape index: {}]   ;;  %s935_s5 = inlined_call_operand.vmem [shape: bf16[2,3], index: 5, kind: input, shape index: {}]   ;;  %s936_s6 = inlined_call_operand.vmem [shape: f32[2,2], index: 6, kind: input, shape index: {}]   ;;  %s937_s7 = inlined_call_operand.hbm [shape: f32[2,2,128], index: 7, kind: output, shape index: {}]  }
   0x1   :  { %14 = vsyncpa [#allocation3 + $0x1], 0  ;;  %s821_s1 = smov 0   ;;  %s823_s24 = smov 0  }
   0x2   :  { %s825_s25 = smov 0   ;;  %s827_s3 = smov 0  }
   0x3   :  { %s829_s26 = smov 0   ;;  %s831_s27 = smov 0  }
   0x4 LB: > { %s618_s28 = sadd.s32 4294967295, %s776_s27   ;;  %s619_s29 = sadd.s32 4294967294, %s776_s27   ;;  %s776_s27 = sphi %s831_s27, %s20_s27   ;;  %s772_s26 = sphi %s829_s26, %s944_s26   ;;  %s768_s3 = sphi %s827_s3, %s943_s3   ;;  %s764_s25 = sphi %s825_s25, %s942_s25   ;;  %s760_s24 = sphi %s823_s24, %s941_s24   ;;  %s756_s1 = sphi %s821_s1, %s940_s1  }
   0x5   : > { %s32_s30 = sadd.s32 1, %s772_s26  ;;  %s220_s8 = sadd.s32 1, %s764_s25 }
   0x6   : > { %p34_p0 = scmp.ge.s32.totalorder %s32_s30, 2  ;;  %p230_p1 = scmp.ne.s32.totalorder %s764_s25, %s760_s24 }
   0x7   : > { %p231_p2 = scmp.eq.s32.totalorder %s618_s28, 1  ;;  %p236_p3 = scmp.ne.s32.totalorder %s760_s24, %s756_s1 }
   0x8   : > { %s946_s30 = smov (%p34_p0, %s32_s30), 0  ;;  %p237_p5 = scmp.eq.s32.totalorder %s619_s29, 1 }
   0x9   : > { %p861_p4 = por %p231_p2, %p230_p1  ;;  %s215_s10 = ssub.s32 %s772_s26, %s946_s30 }
   0xa   : > { %p622_p6 = scmp.ge.s32.totalorder %s776_s27, 1  ;;  %p218_p7 = scmp.eq.s32.totalorder %s215_s10, 0 }
   0xb   : > { %p868_p8 = por %p237_p5, %p236_p3  ;;  %p312_p9 = scmp.lt.s32.totalorder %s776_s27, 3 }
   0xc   : > { %s874_s12 = scalar_select %p218_p7, %s764_s25, %s220_s8  }
   0xd   : > { %p313_p10 = pnand %p622_p6, %p312_p9 }
   0xe   : > { %p373_p11 = scmp.lt.s32.totalorder (!%p313_p10), %s768_s3, 1  ;;  %s631_s15 = sshll.u32 (!%p313_p10), %s768_s3, 1 }
   0xf   : > { %316 = sbr.rel (%p313_p10) target bundleno = 173 (0xad), region = 48  ;;  %s485_s18 = scalar_lea.hbm (!%p313_p10), %s937_s7, %s631_s15 }
  0x10   : > { %s489_s21 = sshll.u32 (!%p313_p10), %s485_s18, 4  ;;  %s718_s8 = scalar_lea.hbm (!%p313_p10), %s937_s7, 4  ;;  %s490_s21 = int_to_ptr.hbm [resolvable:$true] %s489_s21 }
  0x14   : > { %vm418_vm0 = vcmask 1040384   ;;  %vm419_vm1 = vcmask 1041408   ;;  %v778_v0 = vmov 65535   ;;  %s374_s13 = scalar_select %p373_p11, %s768_s3, 1  ;;  %v459_v2 = vld [vmem:[%s936_s6] sm:$0x3] }
  0x15   : > { %v420_v1 = vsel %vm418_vm0, 4294967295, %v778_v0  ;;  %v779_v3 = vmov 0   ;;  %vm442_vm2 = vcmask 1043456   ;;  %v411_v9 = vld [vmem:[%s934_s4] sm:$0x1]  ;;  %vm438_vm3 = vcmask 64512  }
  0x16   : > { %694 = vset.pattern.permute.xlu0 %v779_v3  ;;  %s634_s16 = sshll.u32 %s374_s13, 3  ;;  %s635_s17 = sshll.u32 %s374_s13, 2  ;;  %v421_v4 = vsel %vm419_vm1, %v420_v1, 0  ;;  %v413_v10 = vld [vmem:[%s935_s5] sm:$0x1]  ;;  %vm414_vm4 = vcmask 23552  }
  0x17   : > { %462 = vperm.xlu0 %694, %v459_v2   ;;  %s380_s20 = scalar_lea.vmem %s930_s0, %s634_s16  ;;  %s398_s23 = scalar_lea.vmem %s932_s2, %s635_s17  ;;  %v780_v11 = vmov 1  }
  0x18   : > { %v410_v5 = vld [vmem:[%s380_s20] sm:$0xf]  ;;  %s370_s13 = sand.u32 1, %s760_s24  }
  0x19   : > { %v412_v6 = vld [vmem:[%s398_s23] sm:$0x3]  ;;  %v444_v7 = vsel %vm442_vm2, %v410_v5, 0  ;;  %s623_s14 = sshll.u32 %s370_s13, 1  ;;  %s474_s22 = scalar_lea.sflag [#allocation3], %s370_s13 }
  0x1a   : > { %v423_v8 = vand.u32 %v421_v4, %v412_v6  ;;  %453 = vmatpush.bf16.msra.mxu1 %v444_v7  ;;  %s372_s19 = scalar_lea.vmem [#allocation2], %s623_s14  ;;  %s712_s23 = sshra.s32 %s490_s21, 4  ;;  %s713_s23 = int_to_ptr.hbm [resolvable:$true] %s712_s23 }
  0x1b   : > { %s487_s20 = sshll.u32 %s372_s19, 4  ;;  %s714_s3 = scalar_lea.hbm %s713_s23, 2  ;;  %s488_s20 = int_to_ptr.vmem [resolvable:$true] %s487_s20 }
  0x1c   : > { %432 = vmatpush.bf16.msra.mxu0 %v423_v8  ;;  %p715_p12 = scmp.ne.s32.totalorder %s713_s23, %s714_s3  ;;  %p719_p1 = scmp.lt.s32.totalorder %s713_s23, %s937_s7 }
  0x1d   : > { %629 = vmatmul.msk.bf16.vlgmr.msra.gmra.mxu1 %vm438_vm3, %v411_v9  ;;  %p720_p2 = scmp.lt.s32.totalorder %s718_s8, %s714_s3 }
  0x1e   : > { %p716_p13 = pnand %p715_p12, %p861_p4 }
  0x1f   : > { %628 = vmatmul.msk.bf16.vlgmr.msra.gmra.mxu0 %vm414_vm4, %v413_v10  ;;  %695 = vset.pattern.permute.xlu0 %v780_v11  ;;  %p721_p3 = por %p720_p2, %p719_p1 }
  0x20   : > { %467 = vperm.xlu0 %695, %v459_v2   ;;  %p717_p0 = pneg %p716_p13 }
  0x22   : > { %p722_p5 = pnand %p721_p3, %p717_p0 }
  0x89   : > { %v463_v12 = vpop.permute.xlu0 %462 }
  0x92   : > { %v468_v16 = vpop.permute.xlu0 %467 }
  0x9a   : > { %v455_v13 = vpop.f32.mrf.mxu1 }
  0x9c   : > { %v434_v14 = vpop.f32.mrf.mxu0 }
  0x9d   : > { %v456_v15 = vadd.f32 %v455_v13, %v434_v14 }
  0x9f   : > { %v465_v17 = vmul.f32 %v463_v12, %v456_v15 }
  0xa1   : > { %v470_v18 = vadd.f32 %v468_v16, %v465_v17 }
  0xa2   : > { %v457_v19 = vpop.f32.mrf.mxu1 }
  0xa3   : > { %696 = vtanh.f32 %v470_v18 }
  0xa4   : > { %v436_v20 = vpop.f32.mrf.mxu0 }
  0xa9   : > { %v697_v21 = vpop.eup %696 }
  0xaa   : > { %472 = vst [vmem:[%s372_s19] sm:$0x3] %v697_v21 }
  0xab   : > { %725 = shalt.err (!%p722_p5)
}
  0xac   : > { %636 = dma.vmem_to_hbm [thread:$0]  (%p861_p4), %s488_s20, 32, %s490_s21, %s474_s22  }
  0xad PF: > { %p642_p6 = scmp.ge.s32.totalorder %s776_s27, 2  ;;  %s501_s13 = sand.u32 1, %s756_s1  }
  0xae   : > { %s502_s15 = scalar_lea.sflag [#allocation3], %s501_s13 }
  0xaf   : > { %p639_p7 = pnand %p642_p6, %p868_p8 }
  0xb1   : > { %p640_p9 = pneg %p639_p7 }
  0xb3   : > { %751 = dma.done.wait (%p640_p9), %s502_s15, 32  }
  0xb4   : > { %753 = vsyncadd (%p640_p9), %s502_s15, 4294967264  ;;  %s20_s27 = sadd.s32 1, %s776_s27   ;;  %s940_s1 = smov %s760_s24 }
  0xb5   : > { %p17_p10 = scmp.ge.s32.totalorder %s20_s27, 4   ;;  %s941_s24 = smov %s764_s25 }
  0xb6   : > { %s942_s25 = smov %s874_s12  ;;  %s943_s3 = smov %s772_s26 }
  0xb7   : > { %s944_s26 = smov %s946_s30  ;;  %19 = sbr.rel (!%p17_p10) target bundleno = 4 (0x4), region = 92 }
  0xbc   :  { %508 = vsyncpa [#allocation3], 1 }
  0xbd   :  { %510 = vsyncpa [#allocation3 + $0x1], 1 }

// kernel: _lambda_.18
= control target key start
LH: loop header
LB: loop body
LE: loop exit
PB: predicated region body
PF: predicated region fallthrough
CT: control target
= control target key end

     0   :  { %s938_s24 = smov 0   ;;  %s940_s25 = smov 0   ;;  %s1056_s0 = inlined_call_operand.vmem [shape: bf16[2,16,256], index: 0, kind: input, shape index: {}, may-alias: {0,1}]   ;;  %s1057_s1 = inlined_call_operand.vmem [shape: bf16[2,16,256], index: 1, kind: input, shape index: {}, may-alias: {0,1}]   ;;  %s1058_s2 = inlined_call_operand.vmem [shape: bf16[2,8,256], index: 2, kind: input, shape index: {}, may-alias: {2,3}]   ;;  %s1059_s3 = inlined_call_operand.vmem [shape: bf16[2,8,256], index: 3, kind: input, shape index: {}, may-alias: {2,3}]   ;;  %s1060_s4 = inlined_call_operand.vmem [shape: bf16[8,80], index: 4, kind: input, shape index: {}]   ;;  %s1061_s5 = inlined_call_operand.vmem [shape: bf16[8,40], index: 5, kind: input, shape index: {}]   ;;  %s1062_s6 = inlined_call_operand.vmem [shape: f32[8,2], index: 6, kind: input, shape index: {}]   ;;  %s1063_s7 = inlined_call_operand.vmem [shape: bf16[2,8,128], index: 7, kind: output, shape index: {}]  }
   0x1   :  { %s942_s26 = smov 0   ;;  %s944_s27 = smov 0  }
   0x2   :  { %s946_s28 = smov 0  }
   0x3 LB: > { %s29_s29 = sadd.s32 1, %s886_s27  ;;  %p45_p1 = scmp.ne.s32.totalorder %s878_s25, %s874_s24  ;;  %s890_s28 = sphi %s946_s28, %s17_s28   ;;  %s886_s27 = sphi %s944_s27, %s1068_s27   ;;  %s882_s26 = sphi %s942_s26, %s1067_s26   ;;  %s878_s25 = sphi %s940_s25, %s1066_s25   ;;  %s874_s24 = sphi %s938_s24, %s1065_s24  }
   0x4   : > { %p31_p0 = scmp.ge.s32.totalorder %s29_s29, 2  ;;  %p46_p2 = scmp.eq.s32.totalorder %s890_s28, 0 }
   0x5   : > { %s38_s9 = sadd.s32 1, %s878_s25  ;;  %p766_p5 = scmp.ge.s32.totalorder %s890_s28, 2 }
   0x6   : > { %s1070_s29 = smov (%p31_p0, %s29_s29), 0  ;;  %p969_p3 = por %p46_p2, %p45_p1 }
   0x7   : > { %s33_s8 = ssub.s32 %s886_s27, %s1070_s29  ;;  %259 = sbr.rel (%p766_p5) target bundleno = 24 (0x18), region = 28 }
   0x8   : > { %p36_p4 = scmp.eq.s32.totalorder %s33_s8, 0 }
   0xa   : > { %s977_s10 = scalar_select %p36_p4, %s878_s25, %s38_s9  }
   0xc   : > { %262 = sbr.rel (!%p969_p3) target bundleno = 18 (0x12), region = 32  ;;  %s264_s11 = sand.u32 (%p969_p3), 1, %s878_s25  }
   0xd   : > { %s795_s12 = sshll.u32 (%p969_p3), %s886_s27, 4  ;;  %s767_s13 = sshll.u32 (%p969_p3), %s264_s11, 3 }
   0xe   : > { %s270_s16 = scalar_lea.vmem (%p969_p3), %s1056_s0, %s795_s12  ;;  %s266_s17 = scalar_lea.vmem (%p969_p3), [#allocation2], %s767_s13 }
   0xf   : > { %v287_v0 = vld [vmem:[%s270_s16] sm:$0xf] (%p969_p3)  ;;  %v289_v1 = vld [vmem:[%s270_s16 + $0x8] sm:$0xf] (%p969_p3) }
  0x10   : > { %288 = vst [vmem:[%s266_s17] sm:$0xf] (%p969_p3), %v287_v0 }
  0x11   : > { %290 = vst [vmem:[%s266_s17 + $0x4] sm:$0xf] %v289_v1 }
  0x12 PF: > { %318 = sbr.rel (!%p969_p3) target bundleno = 24 (0x18), region = 73  ;;  %s320_s18 = sand.u32 (%p969_p3), 1, %s878_s25  }
  0x13   : > { %s796_s19 = sshll.u32 (%p969_p3), %s886_s27, 4  ;;  %s770_s20 = sshll.u32 (%p969_p3), %s320_s18, 3 }
  0x14   : > { %s663_s23 = scalar_lea.vmem (%p969_p3), %s1057_s1, %s796_s19  ;;  %s322_s8 = scalar_lea.vmem (%p969_p3), [#allocation3], %s770_s20 }
  0x15   : > { %v773_v2 = vld [vmem:[%s663_s23 + $0x4] sm:$0xf] (%p969_p3)  ;;  %v774_v3 = vld [vmem:[%s663_s23 + $0xc] sm:$0xf] (%p969_p3) }
  0x16   : > { %345 = vst [vmem:[%s322_s8] sm:$0xf] (%p969_p3), %v773_v2 }
  0x17   : > { %347 = vst [vmem:[%s322_s8 + $0x4] sm:$0xf] %v774_v3 }
  0x18 PF: > { %p775_p6 = scmp.ge.s32.totalorder %s890_s28, 1  ;;  %p398_p7 = scmp.lt.s32.totalorder %s890_s28, 3 }
  0x1a   : > { %p399_p8 = pnand %p775_p6, %p398_p7 }
  0x1b   : > { %s405_s30 = sand.u32 (!%p399_p8), 1, %s874_s24   ;;  %p467_p9 = scmp.lt.s32.totalorder (!%p399_p8), %s882_s26, 1 }
  0x1c   : > { %402 = sbr.rel (%p399_p8) target bundleno = 332 (0x14c), region = 122  ;;  %s776_s9 = sshll.u32 (!%p399_p8), %s405_s30, 3 }
  0x1d   : > { %s407_s11 = scalar_lea.vmem (!%p399_p8), [#allocation2], %s776_s9  ;;  %s892_s12 = smov (!%p399_p8), 125  }
  0x1e   : > { %s893_s13 = smov (!%p399_p8), 124   ;;  %s414_s24 = scalar_lea.vmem (!%p399_p8), [#allocation3], %s776_s9 }
  0x1f   : > { %s894_s22 = smov (!%p399_p8), 126   ;;  %s895_s23 = smov (!%p399_p8), 127  }
  0x21   : > { %v997_v4 = vld [vmem:[%s407_s11] sm:$0xff]  ;;  %s1072_s26 = smov (!%p467_p9, %s882_s26), 1  ;;  %v801_v5 = vld [vmem:[%s414_s24] sm:$0xff]  ;;  %vm533_vm0 = vcmask 1014784   ;;  %vm563_vm1 = vcmask 1043456   ;;  %vm526_vm2 = vcmask 1022976  }
  0x22   : > { %522 = vrot.lane.b32.xlu1 %v997_v4, %s892_s12  ;;  %529 = vrot.lane.b32.xlu0 %v997_v4, %s893_s13  ;;  %s797_s14 = sshll.u32 %s1072_s26, 3  ;;  %vm519_vm3 = vcmask 1031168   ;;  %v610_v21 = vld [vmem:[%s1062_s6] sm:$0xff]  ;;  %v896_v22 = vmov 0   ;;  %v897_v23 = vmov 1   ;;  %vm512_vm4 = vcmask 1039360  }
  0x23   : > { %s474_s17 = scalar_lea.vmem %s1058_s2, %s797_s14  ;;  %s799_s18 = sadd.s32 4, %s797_s14  ;;  %849 = vset.pattern.permute.xlu1 %v896_v22  ;;  %850 = vset.pattern.permute.xlu2 %v897_v23  ;;  %v536_v37 = vld [vmem:[%s1060_s4] sm:$0xf]  ;;  %vm593_vm5 = vcmask 654336   ;;  %vm573_vm6 = vcmask 326656  }
  0x24   : > { %v1009_v6 = vld [vmem:[%s474_s17] sm:$0xf]  ;;  %s483_s21 = scalar_lea.vmem %s1059_s3, %s799_s18  ;;  %851 = vset.pattern.permute.xlu0 %v897_v23  ;;  %s782_s14 = sshll.u32 %s1072_s26, 2 }
  0x25   : > { %558 = vrot.lane.b32.xlu2 %v1009_v6, %s893_s13  ;;  %v538_v7 = vld [vmem:[%s483_s21] sm:$0xf]  ;;  %v541_v8 = vrot.slane %v1009_v6, 4  ;;  %s491_s17 = scalar_lea.vmem %s1063_s7, %s782_s14 }
  0x26   : > { %v542_v9 = vrot.slane %v538_v7, 4  ;;  %v572_v41 = vld [vmem:[%s1061_s5] sm:$0xf] }
  0x2a   : > { %524 = vrot.lane.b32.xlu1 %v801_v5, %s892_s12  ;;  %531 = vrot.lane.b32.xlu0 %v801_v5, %s893_s13 }
  0x2d   : > { %560 = vrot.lane.b32.xlu2 %v538_v7, %s893_s13 }
  0x32   : > { %517 = vrot.lane.b32.xlu1 %v801_v5, %s894_s22  ;;  %515 = vrot.lane.b32.xlu0 %v997_v4, %s894_s22 }
  0x35   : > { %548 = vrot.lane.b32.xlu2 %v1009_v6, %s894_s22 }
  0x3a   : > { %553 = vrot.lane.b32.xlu1 %v541_v8, %s892_s12  ;;  %550 = vrot.lane.b32.xlu0 %v538_v7, %s894_s22 }
  0x3d   : > { %555 = vrot.lane.b32.xlu2 %v542_v9, %s892_s12 }
  0x42   : > { %510 = vrot.lane.b32.xlu1 %v801_v5, %s895_s23  ;;  %508 = vrot.lane.b32.xlu0 %v997_v4, %s895_s23 }
  0x45   : > { %543 = vrot.lane.b32.xlu2 %v541_v8, %s895_s23 }
  0x4a   : > { %545 = vrot.lane.b32.xlu0 %v542_v9, %s895_s23  ;;  %613 = vperm.xlu1 %849, %v610_v21  }
  0x4d   : > { %618 = vperm.xlu2 %850, %v610_v21  }
  0x7f   : > { %v559_v10 = vpop.permute.xlu2 %558 }
  0x87   : > { %v561_v11 = vpop.permute.xlu2 %560 }
  0x88   : > { %v562_v12 = vsel %vm533_vm0, %v559_v10, %v561_v11 }
  0x89   : > { %v578_v13 = vsel %vm563_vm1, %v562_v12, 0 }
  0x8a   : > { %585 = vmatpush.bf16.msra.mxu0 %v578_v13 }
  0x8f   : > { %v549_v19 = vpop.permute.xlu2 %548 }
  0x94   : > { %v523_v14 = vpop.permute.xlu1 %522  ;;  %v530_v15 = vpop.permute.xlu0 %529 }
  0x97   : > { %v556_v27 = vpop.permute.xlu2 %555 }
  0x9c   : > { %v525_v16 = vpop.permute.xlu1 %524  ;;  %v532_v17 = vpop.permute.xlu0 %531 }
  0x9d   : > { %v534_v18 = vsel %vm533_vm0, %v530_v15, %v532_v17  ;;  %v527_v20 = vsel %vm526_vm2, %v523_v14, %v525_v16 }
  0x9e   : > { %600 = vmatpush.bf16.msra.mxu1 %v534_v18 }
  0x9f   : > { %v544_v36 = vpop.permute.xlu2 %543 }
  0xa2   : > { %601 = vmatpush.bf16.msra.mxu1 %v527_v20 }
  0xa4   : > { %v518_v24 = vpop.permute.xlu1 %517  ;;  %v516_v25 = vpop.permute.xlu0 %515 }
  0xa5   : > { %v520_v26 = vsel %vm519_vm3, %v516_v25, %v518_v24 }
  0xa6   : > { %602 = vmatpush.bf16.msra.mxu1 %v520_v26 }
  0xa7   : > { %v619_v46 = vpop.permute.xlu2 %618 }
  0xac   : > { %v554_v28 = vpop.permute.xlu1 %553  ;;  %v551_v29 = vpop.permute.xlu0 %550 }
  0xad   : > { %v557_v30 = vsel %vm526_vm2, %v554_v28, %v556_v27  ;;  %v552_v31 = vsel %vm519_vm3, %v549_v19, %v551_v29 }
  0xae   : > { %v570_v32 = vsel %vm563_vm1, %v552_v31, %v557_v30 }
  0xaf   : > { %586 = vmatpush.bf16.msra.mxu0 %v570_v32 }
  0xb4   : > { %v511_v33 = vpop.permute.xlu1 %510  ;;  %v509_v34 = vpop.permute.xlu0 %508 }
  0xb5   : > { %v513_v35 = vsel %vm512_vm4, %v509_v34, %v511_v33 }
  0xb6   : > { %603 = vmatpush.bf16.msra.mxu1 %v513_v35 }
  0xba   : > { %604 = vmatpush.bf16.msra.mxu1 %v997_v4 }
  0xbc   : > { %v546_v38 = vpop.permute.xlu0 %545  ;;  %v614_v44 = vpop.permute.xlu1 %613 }
  0xbd   : > { %v547_v39 = vsel %vm512_vm4, %v544_v36, %v546_v38  ;;  %792 = vmatmul.msk.bf16.vlgmr.msra.gmra.mxu1 %vm593_vm5, %v536_v37 }
  0xbe   : > { %v566_v40 = vsel %vm563_vm1, %v1009_v6, %v547_v39 }
  0xbf   : > { %587 = vmatpush.bf16.msra.mxu0 %v566_v40 }
  0xc2   : > { %791 = vmatmul.msk.bf16.vlgmr.msra.gmra.mxu0 %vm573_vm6, %v572_v41 }
 0x13a   : > { %v606_v42 = vpop.f32.mrf.mxu1 }
 0x13f   : > { %v589_v43 = vpop.f32.mrf.mxu0 }
 0x140   : > { %v607_v45 = vadd.f32 %v606_v42, %v589_v43 }
 0x142   : > { %v616_v47 = vmul.f32 %v614_v44, %v607_v45  ;;  %v608_v48 = vpop.f32.mrf.mxu1 }
 0x144   : > { %v621_v49 = vadd.f32 %v619_v46, %v616_v47 }
 0x146   : > { %vm622_vm7 = vcmp.ge.f32.partialorder %v621_v49, 0.0  ;;  %v623_v50 = vmul.f32 0.1, %v621_v49 }
 0x147   : > { %v591_v51 = vpop.f32.mrf.mxu0 }
 0x148   : > { %v624_v52 = vsel %vm622_vm7, %v621_v49, %v623_v50 }
 0x149   : > { %v625_v53 = vpack.c.bf16 %v624_v52, %v624_v52 }
 0x14b   : > { %626 = vst [vmem:[%s491_s17] sm:$0xf] %v625_v53 }
 0x14c PF: > { %s17_s28 = sadd.s32 1, %s890_s28   ;;  %s1065_s24 = smov %s878_s25 }
 0x14d   : > { %p14_p10 = scmp.ge.s32.totalorder %s17_s28, 4   ;;  %s1066_s25 = smov %s977_s10 }
 0x14e   : > { %s1067_s26 = smov %s886_s27  ;;  %s1068_s27 = smov %s1070_s29 }
 0x14f   :  { %16 = sbr.rel (!%p14_p10) target bundleno = 3 (0x3), region = 179 }

</bundles_post_ra>
